<compile_context>
chip_gen: v7x
topology: tpu7x:2x2x1
jax: 0.10.0
libtpu: 0.0.40
codegen_flags: <defaults>
</compile_context>

<pallas_src>
import numpy as np
import jax
import jax.numpy as jnp
from jax import lax
from jax.experimental import pallas as pl
from jax.experimental.pallas import tpu as pltpu

# ----------------------------- model dims (synthetic, small) -----------------------------
VOCAB = 50
EMBED = 32        # opt.embed_dim
HIDDEN = 32       # opt.hidden_dim  (BiLSTM output dim = 2*HIDDEN = 64)
TAG_DIM = 4       # len(idx2tag)
POL_DIM = 4       # opt.polarities_dim
TARGET_DIM = 3    # len(idx2target)
EXPRESS_DIM = 3   # len(idx2express)
NODE_DIM = 100    # biaffine node dim (chunk of the 200-d head)

O_TOT = POL_DIM + TARGET_DIM          # 7 fused biaffine output channels (triplet | target)
BLK = 128                             # lane-aligned packing block
HEAD_W = 7 * BLK                      # fused head width: ap_node|ap_rep|op_node|op_rep|ex(200)|sen(4)


# ===================================== fused Pallas kernel =====================================

def ote_fused_kernel(idx_ref, mask_ref, emb_ref,
                     wi_ref, bi_ref, whf_ref, whb_ref,
                     w_head_ref, b_head_ref, w_tag_ref, b_tag_ref,
                     w_bia_ref, b_bia_ref,
                     tag_ref, sen_ref, bia_ref,
                     scrf, scrb):
    B, T = mask_ref.shape
    N = B * T
    H = HIDDEN
    vocab = emb_ref.shape[0]

    # ---- embedding lookup as one-hot matmul (rows t-major: row = t*B + b) ----
    # (embed_dropout is identity in eval mode)
    idx = idx_ref[...]                                                        # (N, 1) int32
    onehot = (lax.broadcasted_iota(jnp.int32, (N, vocab), 1) == idx).astype(jnp.float32)
    x_tm = jnp.dot(onehot, emb_ref[...], preferred_element_type=jnp.float32)  # (N, E)

    # ---- BiLSTM: input projection hoisted out of the recurrence (biases folded in) ----
    xproj = jnp.dot(x_tm, wi_ref[...], preferred_element_type=jnp.float32) + bi_ref[...]   # (N, 8H)
    mask = mask_ref[...]                                                      # (B, T)
    whf = whf_ref[...]
    whb = whb_ref[...]

    hf = jnp.zeros((B, H), jnp.float32); cf = jnp.zeros((B, H), jnp.float32)
    hb = jnp.zeros((B, H), jnp.float32); cb = jnp.zeros((B, H), jnp.float32)

    def lstm_gates(g):
        i = jax.nn.sigmoid(g[:, 0:H])
        f = jax.nn.sigmoid(g[:, H:2 * H])
        c = jnp.tanh(g[:, 2 * H:3 * H])
        o = jax.nn.sigmoid(g[:, 3 * H:4 * H])
        return i, f, c, o

    # fwd & bwd directions advanced together; T is small & static -> full unroll
    for t in range(T):
        tb = T - 1 - t
        gf = xproj[t * B:(t + 1) * B, 0:4 * H] + jnp.dot(hf, whf, preferred_element_type=jnp.float32)
        gb = xproj[tb * B:(tb + 1) * B, 4 * H:8 * H] + jnp.dot(hb, whb, preferred_element_type=jnp.float32)
        mf = mask[:, t:t + 1]
        mb = mask[:, tb:tb + 1]

        i_, f_, g_, o_ = lstm_gates(gf)
        cf_new = f_ * cf + i_ * g_
        hf_new = o_ * jnp.tanh(cf_new)
        scrf[t] = hf_new * mf                         # padded positions output 0
        hf = mf * hf_new + (1.0 - mf) * hf            # state frozen on padding
        cf = mf * cf_new + (1.0 - mf) * cf

        i_, f_, g_, o_ = lstm_gates(gb)
        cb_new = f_ * cb + i_ * g_
        hb_new = o_ * jnp.tanh(cb_new)
        scrb[tb] = hb_new * mb
        hb = mb * hb_new + (1.0 - mb) * hb
        cb = mb * cb_new + (1.0 - mb) * cb

    # regroup (T, B, H) x 2 -> (B*T, 2H) with row = b*T + t
    outf = scrf[...]
    outb = scrb[...]
    x_flat = jnp.concatenate(
        [jnp.concatenate([outf[:, b, :], outb[:, b, :]], axis=1) for b in range(B)],
        axis=0)                                                               # (N, 2H)

    # ---- fused FC heads: single (N, 2H) @ (2H, 896) matmul, 128-aligned column blocks ----
    # blocks: [ap_node | ap_rep | op_node | op_rep | express(200).. | sen(4)..]
    head_pre = jnp.dot(x_flat, w_head_ref[...], preferred_element_type=jnp.float32) + b_head_ref[...]
    head_act = jax.nn.relu(head_pre)

    # sentence polarity head (no relu): mean over the sequence of per-row projections
    sen_rows = head_pre[:, 6 * BLK:6 * BLK + POL_DIM]                         # (N, POL)
    sen_ref[...] = jnp.concatenate(
        [jnp.mean(sen_rows[b * T:(b + 1) * T, :], axis=0, keepdims=True) for b in range(B)],
        axis=0)                                                               # (B, POL)

    # fused ap/op/express tag heads -> one dense (N, 128) slab (single unmasked store)
    tag_ref[...] = jnp.dot(head_act, w_tag_ref[...], preferred_element_type=jnp.float32) + b_tag_ref[...]

    # ---- fused biaffines (triplet + target share ap_node/op_node), bias=(True, False) ----
    ap_node = head_act[:, 0:BLK]                 # (N, 128) zero-padded past NODE_DIM
    op_node = head_act[:, 2 * BLK:3 * BLK]       # (N, 128)
    # tmp[b*T + i, o*128 + c] = sum_e ap_node[b,i,e] * W[o*D + c, e] + W[o*D + c, D]
    tmp = jnp.dot(ap_node, w_bia_ref[...], preferred_element_type=jnp.float32) + b_bia_ref[...]   # (N, 7*128)

    rows = []
    for b in range(B):
        n2b = op_node[b * T:(b + 1) * T, :]      # (T, 128)
        per_o = []
        for o in range(O_TOT):
            t_bo = tmp[b * T:(b + 1) * T, o * BLK:(o + 1) * BLK]              # (T_i, 128)
            # res[j, i] = sum_c op_node[b,j,c] * tmp[b,i,(o,c)] == biaffine[b, j, i, o]
            per_o.append(lax.dot_general(n2b, t_bo, (((1,), (1,)), ((), ())),
                                         preferred_element_type=jnp.float32))
        rows.append(jnp.concatenate(per_o, axis=1))                           # (T_j, O_TOT*T_i)
    bia_ref[...] = jnp.concatenate(rows, axis=0)                              # (B*T_j, O_TOT*T_i)


# ===================================== wrapper =====================================

def ote_forward(packed, text_indices, text_mask):
    B, T = text_indices.shape
    N = B * T

    idx_tm = jnp.transpose(text_indices).reshape(N, 1).astype(jnp.int32)      # t-major row order
    mask_f = text_mask.astype(jnp.float32)

    tag_slab, sen_out, bia_slab = pl.pallas_call(
        ote_fused_kernel,
        out_shape=(jax.ShapeDtypeStruct((N, BLK), jnp.float32),
                   jax.ShapeDtypeStruct((B, POL_DIM), jnp.float32),
                   jax.ShapeDtypeStruct((N, O_TOT * T), jnp.float32)),
        scratch_shapes=[pltpu.VMEM((T, B, HIDDEN), jnp.float32),
                        pltpu.VMEM((T, B, HIDDEN), jnp.float32)],
    )(idx_tm, mask_f,
      packed['embedding'],
      packed['wi_cat'], packed['b_cat'], packed['wh_f'], packed['wh_b'],
      packed['w_head'], packed['b_head'],
      packed['w_tag'], packed['b_tag'],
      packed['w_bia'], packed['b_bia'])

    # tiny metadata-level splits back to the PyTorch output layouts
    ap_out = tag_slab[:, 0:TAG_DIM].reshape(B, T, TAG_DIM)
    op_out = tag_slab[:, TAG_DIM:2 * TAG_DIM].reshape(B, T, TAG_DIM)
    ex_out = tag_slab[:, 2 * TAG_DIM:2 * TAG_DIM + EXPRESS_DIM].reshape(B, T, EXPRESS_DIM)

    bia = bia_slab.reshape(B, T, O_TOT, T).transpose(0, 1, 3, 2)              # (B, len2, len1, O_TOT)
    triplet_out = bia[..., 0:POL_DIM]
    target_out = bia[..., POL_DIM:O_TOT]

    return [ap_out, op_out, triplet_out, sen_out, target_out, ex_out]


# ===================================== parameter init / packing =====================================

def init_params(key):
    ks = jax.random.split(key, 24)

    def w(k, shape, s=0.1):
        return (s * jax.random.normal(k, shape)).astype(jnp.float32)

    H4 = 4 * HIDDEN
    p = {}
    p['embedding'] = w(ks[0], (VOCAB, EMBED), 0.5)
    # LSTM weights stored pre-transposed vs torch: (E, 4H), (H, 4H); gate order i, f, g, o.
    p['lstm_wi_f'] = w(ks[1], (EMBED, H4))
    p['lstm_wh_f'] = w(ks[2], (HIDDEN, H4))
    p['lstm_b_f'] = w(ks[3], (H4,))
    p['lstm_wi_b'] = w(ks[4], (EMBED, H4))
    p['lstm_wh_b'] = w(ks[5], (HIDDEN, H4))
    p['lstm_b_b'] = w(ks[6], (H4,))
    # torch-style (out, in) Linear weights
    p['ap_fc_w'] = w(ks[7], (200, 2 * HIDDEN));    p['ap_fc_b'] = w(ks[8], (200,))
    p['op_fc_w'] = w(ks[9], (200, 2 * HIDDEN));    p['op_fc_b'] = w(ks[10], (200,))
    p['ex_fc_w'] = w(ks[11], (200, 2 * HIDDEN));   p['ex_fc_b'] = w(ks[12], (200,))
    p['sen_fc_w'] = w(ks[13], (POL_DIM, 2 * HIDDEN)); p['sen_fc_b'] = w(ks[14], (POL_DIM,))
    p['ap_tag_w'] = w(ks[15], (TAG_DIM, NODE_DIM)); p['ap_tag_b'] = w(ks[16], (TAG_DIM,))
    p['op_tag_w'] = w(ks[17], (TAG_DIM, NODE_DIM)); p['op_tag_b'] = w(ks[18], (TAG_DIM,))
    p['ex_tag_w'] = w(ks[19], (EXPRESS_DIM, 200));  p['ex_tag_b'] = w(ks[20], (EXPRESS_DIM,))
    # Biaffine linear weights: (out_features * in2, in1 + 1), no bias
    p['triplet_w'] = w(ks[21], (POL_DIM * NODE_DIM, NODE_DIM + 1))
    p['target_w'] = w(ks[22], (TARGET_DIM * NODE_DIM, NODE_DIM + 1))
    return p


def pack_params(p):
    """One-time host-side packing of torch-style parameters into lane-aligned kernel operands."""
    f32 = np.float32
    np_p = {k: np.asarray(v, dtype=f32) for k, v in p.items()}
    H, D = HIDDEN, NODE_DIM

    q = {}
    q['embedding'] = np_p['embedding']                                              # (V, E)

    # BiLSTM: both directions' input projections fused -> (E, 8H); biases folded in.
    q['wi_cat'] = np.concatenate([np_p['lstm_wi_f'], np_p['lstm_wi_b']], axis=1)    # (E, 8H)
    q['b_cat'] = np.concatenate([np_p['lstm_b_f'], np_p['lstm_b_b']])[None, :]      # (1, 8H)
    q['wh_f'] = np_p['lstm_wh_f']                                                   # (H, 4H)
    q['wh_b'] = np_p['lstm_wh_b']

    # Fused head projection (2H -> 896), 128-aligned blocks:
    #   blk0: ap_node  blk1: ap_rep  blk2: op_node  blk3: op_rep  blk4-5: express(200)  blk6: sen(4)
    Wh = np.zeros((2 * H, HEAD_W), f32)
    bh = np.zeros((1, HEAD_W), f32)
    ap_w, ap_b = np_p['ap_fc_w'].T, np_p['ap_fc_b']
    op_w, op_b = np_p['op_fc_w'].T, np_p['op_fc_b']
    ex_w, ex_b = np_p['ex_fc_w'].T, np_p['ex_fc_b']
    sen_w, sen_b = np_p['sen_fc_w'].T, np_p['sen_fc_b']
    Wh[:, 0:D] = ap_w[:, 0:D];                     bh[0, 0:D] = ap_b[0:D]
    Wh[:, BLK:BLK + D] = ap_w[:, D:2 * D];         bh[0, BLK:BLK + D] = ap_b[D:2 * D]
    Wh[:, 2 * BLK:2 * BLK + D] = op_w[:, 0:D];     bh[0, 2 * BLK:2 * BLK + D] = op_b[0:D]
    Wh[:, 3 * BLK:3 * BLK + D] = op_w[:, D:2 * D]; bh[0, 3 * BLK:3 * BLK + D] = op_b[D:2 * D]
    Wh[:, 4 * BLK:4 * BLK + 2 * D] = ex_w;         bh[0, 4 * BLK:4 * BLK + 2 * D] = ex_b
    Wh[:, 6 * BLK:6 * BLK + POL_DIM] = sen_w;      bh[0, 6 * BLK:6 * BLK + POL_DIM] = sen_b
    q['w_head'] = Wh
    q['b_head'] = bh

    # Fused tag heads (896 -> 128): ap_tag -> cols 0:4, op_tag -> 4:8, express_tag -> 8:11
    Wt = np.zeros((HEAD_W, BLK), f32)
    bt = np.zeros((1, BLK), f32)
    Wt[BLK:BLK + D, 0:TAG_DIM] = np_p['ap_tag_w'].T
    bt[0, 0:TAG_DIM] = np_p['ap_tag_b']
    Wt[3 * BLK:3 * BLK + D, TAG_DIM:2 * TAG_DIM] = np_p['op_tag_w'].T
    bt[0, TAG_DIM:2 * TAG_DIM] = np_p['op_tag_b']
    Wt[4 * BLK:4 * BLK + 2 * D, 2 * TAG_DIM:2 * TAG_DIM + EXPRESS_DIM] = np_p['ex_tag_w'].T
    bt[0, 2 * TAG_DIM:2 * TAG_DIM + EXPRESS_DIM] = np_p['ex_tag_b']
    q['w_tag'] = Wt
    q['b_tag'] = bt

    # Fused biaffine projection (128 -> 7*128): channels 0..3 = triplet, 4..6 = target.
    #   w_bia[e, o*128 + c] = W_torch[o_local*D + c, e]; b_bia holds the bias-(ones)-column.
    Wb = np.zeros((BLK, O_TOT * BLK), f32)
    bb = np.zeros((1, O_TOT * BLK), f32)
    for o in range(O_TOT):
        if o < POL_DIM:
            blk = np_p['triplet_w'][o * D:(o + 1) * D, :]                    # (D, D+1)
        else:
            o2 = o - POL_DIM
            blk = np_p['target_w'][o2 * D:(o2 + 1) * D, :]
        Wb[0:D, o * BLK:o * BLK + D] = blk[:, 0:D].T
        bb[0, o * BLK:o * BLK + D] = blk[:, D]
    q['w_bia'] = Wb
    q['b_bia'] = bb

    return {k: jnp.asarray(v) for k, v in q.items()}


# ===================================== numpy reference =====================================

def _sigmoid(x):
    return 1.0 / (1.0 + np.exp(-x))


def reference_forward(params, text_indices, text_mask):
    p = {k: np.asarray(v, dtype=np.float32) for k, v in params.items()}
    ti = np.asarray(text_indices)
    tm = np.asarray(text_mask, dtype=np.float32)
    B, T = ti.shape
    H = HIDDEN
    emb = p['embedding'][ti]                               # (B, T, E)

    def run_dir(wi, wh, b, reverse):
        h = np.zeros((B, H), np.float32)
        c = np.zeros((B, H), np.float32)
        out = np.zeros((B, T, H), np.float32)
        order = range(T - 1, -1, -1) if reverse else range(T)
        for t in order:
            xt = emb[:, t]
            m = tm[:, t][:, None]
            g = xt @ wi + h @ wh + b
            i = _sigmoid(g[:, :H]); f = _sigmoid(g[:, H:2 * H])
            gg = np.tanh(g[:, 2 * H:3 * H]); o = _sigmoid(g[:, 3 * H:])
            c_new = f * c + i * gg
            h_new = o * np.tanh(c_new)
            out[:, t] = h_new * m
            h = m * h_new + (1 - m) * h
            c = m * c_new + (1 - m) * c
        return out

    of = run_dir(p['lstm_wi_f'], p['lstm_wh_f'], p['lstm_b_f'], False)
    ob = run_dir(p['lstm_wi_b'], p['lstm_wh_b'], p['lstm_b_b'], True)
    out = np.concatenate([of, ob], axis=-1)                # (B, T, 2H)

    def lin(x, W, b):
        return x @ W.T + b

    relu = lambda x: np.maximum(x, 0.0)
    ap_full = relu(lin(out, p['ap_fc_w'], p['ap_fc_b']))
    op_full = relu(lin(out, p['op_fc_w'], p['op_fc_b']))
    ex_full = relu(lin(out, p['ex_fc_w'], p['ex_fc_b']))
    ap_node, ap_rep = ap_full[..., :NODE_DIM], ap_full[..., NODE_DIM:]
    op_node, op_rep = op_full[..., :NODE_DIM], op_full[..., NODE_DIM:]
    ap_out = lin(ap_rep, p['ap_tag_w'], p['ap_tag_b'])
    op_out = lin(op_rep, p['op_tag_w'], p['op_tag_b'])
    ex_out = lin(ex_full, p['ex_tag_w'], p['ex_tag_b'])

    def biaffine(in1, in2, W, O):
        Bb, L, D = in1.shape
        ones = np.ones((Bb, L, 1), np.float32)
        in1a = np.concatenate([in1, ones], axis=2)         # bias=(True, False)
        affine = np.einsum('ble,me->blm', in1a, W)         # (B, L, O*D)
        affine = affine.reshape(Bb, L * O, D)
        bi = np.einsum('bmd,bjd->bmj', affine, in2)        # (B, L*O, L)
        bi = np.transpose(bi, (0, 2, 1)).reshape(Bb, L, L, O)
        return bi

    triplet_out = biaffine(ap_node, op_node, p['triplet_w'], POL_DIM)
    target_out = biaffine(ap_node, op_node, p['target_w'], TARGET_DIM)
    sen_out = lin(out.mean(axis=1), p['sen_fc_w'], p['sen_fc_b'])
    return [ap_out, op_out, triplet_out, sen_out, target_out, ex_out]


# ===================================== main =====================================

if __name__ == "__main__":
    # TODO(synk): BERT branch and the host-side inference/decoding utilities are outside the
    # forward hot path and are not implemented (non-BERT embedding+BiLSTM branch is used).
    key = jax.random.PRNGKey(0)
    k_params, k_data = jax.random.split(key)
    params = init_params(k_params)
    packed = pack_params(params)          # one-time weight packing (not in the forward path)

    B, T = 2, 8
    text_indices = jax.random.randint(k_data, (B, T), 1, VOCAB, dtype=jnp.int32)
    lens = jnp.array([8, 5], dtype=jnp.int32)
    text_mask = (jnp.arange(T)[None, :] < lens[:, None]).astype(jnp.float32)

    fwd = jax.jit(ote_forward)
    outs = jax.block_until_ready(fwd(packed, text_indices, text_mask))

    refs = reference_forward(params, text_indices, text_mask)
    for got, ref in zip(outs, refs):
        np.testing.assert_allclose(np.asarray(got), ref, rtol=5e-2, atol=5e-2)

    print("KERNEL_OK")
</pallas_src>

<mosaic_0001>
module attributes {stable_mosaic.version = 11 : i64} {
  func.func @ote_fused_kernel(%arg0: memref<16x1xi32, #tpu.memory_space<vmem>>, %arg1: memref<2x8xf32, #tpu.memory_space<vmem>>, %arg2: memref<50x32xf32, #tpu.memory_space<vmem>>, %arg3: memref<32x256xf32, #tpu.memory_space<vmem>>, %arg4: memref<1x256xf32, #tpu.memory_space<vmem>>, %arg5: memref<32x128xf32, #tpu.memory_space<vmem>>, %arg6: memref<32x128xf32, #tpu.memory_space<vmem>>, %arg7: memref<64x896xf32, #tpu.memory_space<vmem>>, %arg8: memref<1x896xf32, #tpu.memory_space<vmem>>, %arg9: memref<896x128xf32, #tpu.memory_space<vmem>>, %arg10: memref<1x128xf32, #tpu.memory_space<vmem>>, %arg11: memref<128x896xf32, #tpu.memory_space<vmem>>, %arg12: memref<1x896xf32, #tpu.memory_space<vmem>>, %arg13: memref<16x128xf32, #tpu.memory_space<vmem>>, %arg14: memref<2x4xf32, #tpu.memory_space<vmem>>, %arg15: memref<16x56xf32, #tpu.memory_space<vmem>>, %arg16: memref<8x2x32xf32, #tpu.memory_space<vmem>>, %arg17: memref<8x2x32xf32, #tpu.memory_space<vmem>>) attributes {dimension_semantics = [], scalar_prefetch = 0 : i64, scratch_operands = 2 : i64, tpu.core_type = #tpu.core_type<tc>} {
    %c0 = arith.constant 0 : index
    %c0_0 = arith.constant 0 : index
    %0 = vector.load %arg0[%c0, %c0_0] : memref<16x1xi32, #tpu.memory_space<vmem>>, vector<16x1xi32>
    %1 = tpu.iota {dimensions = array<i32: 1>} : vector<16x50xi32>
    %2 = vector.broadcast %0 : vector<16x1xi32> to vector<16x50xi32>
    %3 = arith.cmpi eq, %1, %2 : vector<16x50xi32>
    %4 = arith.extui %3 : vector<16x50xi1> to vector<16x50xi32>
    %5 = arith.sitofp %4 : vector<16x50xi32> to vector<16x50xf32>
    %c0_1 = arith.constant 0 : index
    %c0_2 = arith.constant 0 : index
    %6 = vector.load %arg2[%c0_1, %c0_2] : memref<50x32xf32, #tpu.memory_space<vmem>>, vector<50x32xf32>
    %cst = arith.constant dense<0.000000e+00> : vector<16x32xf32>
    %7 = tpu.matmul %5, %6, %cst {dimension_numbers = #tpu.dot_dimension_numbers<[1], [0], [0], [1], [0, 0, 1, 1], [], []>} : vector<16x50xf32>, vector<50x32xf32>, vector<16x32xf32> -> vector<16x32xf32>
    %c0_3 = arith.constant 0 : index
    %c0_4 = arith.constant 0 : index
    %8 = vector.load %arg3[%c0_3, %c0_4] : memref<32x256xf32, #tpu.memory_space<vmem>>, vector<32x256xf32>
    %cst_5 = arith.constant dense<0.000000e+00> : vector<16x256xf32>
    %9 = tpu.matmul %7, %8, %cst_5 {dimension_numbers = #tpu.dot_dimension_numbers<[1], [0], [0], [1], [0, 0, 1, 1], [], []>} : vector<16x32xf32>, vector<32x256xf32>, vector<16x256xf32> -> vector<16x256xf32>
    %c0_6 = arith.constant 0 : index
    %c0_7 = arith.constant 0 : index
    %10 = vector.load %arg4[%c0_6, %c0_7] : memref<1x256xf32, #tpu.memory_space<vmem>>, vector<1x256xf32>
    %11 = vector.broadcast %10 : vector<1x256xf32> to vector<16x256xf32>
    %12 = arith.addf %9, %11 : vector<16x256xf32>
    %c0_8 = arith.constant 0 : index
    %c0_9 = arith.constant 0 : index
    %13 = vector.load %arg1[%c0_8, %c0_9] : memref<2x8xf32, #tpu.memory_space<vmem>>, vector<2x8xf32>
    %c0_10 = arith.constant 0 : index
    %c0_11 = arith.constant 0 : index
    %14 = vector.load %arg5[%c0_10, %c0_11] : memref<32x128xf32, #tpu.memory_space<vmem>>, vector<32x128xf32>
    %c0_12 = arith.constant 0 : index
    %c0_13 = arith.constant 0 : index
    %15 = vector.load %arg6[%c0_12, %c0_13] : memref<32x128xf32, #tpu.memory_space<vmem>>, vector<32x128xf32>
    %cst_14 = arith.constant 0.000000e+00 : f32
    %16 = vector.broadcast %cst_14 : f32 to vector<2x32xf32>
    %cst_15 = arith.constant 0.000000e+00 : f32
    %17 = vector.broadcast %cst_15 : f32 to vector<2x32xf32>
    %cst_16 = arith.constant 0.000000e+00 : f32
    %18 = vector.broadcast %cst_16 : f32 to vector<2x32xf32>
    %cst_17 = arith.constant 0.000000e+00 : f32
    %19 = vector.broadcast %cst_17 : f32 to vector<2x32xf32>
    %20 = vector.extract_strided_slice %12 {offsets = [0, 0], sizes = [2, 128], strides = [1, 1]} : vector<16x256xf32> to vector<2x128xf32>
    %cst_18 = arith.constant dense<0.000000e+00> : vector<2x128xf32>
    %21 = tpu.matmul %16, %14, %cst_18 {dimension_numbers = #tpu.dot_dimension_numbers<[1], [0], [0], [1], [0, 0, 1, 1], [], []>} : vector<2x32xf32>, vector<32x128xf32>, vector<2x128xf32> -> vector<2x128xf32>
    %22 = arith.addf %20, %21 : vector<2x128xf32>
    %23 = vector.extract_strided_slice %12 {offsets = [14, 128], sizes = [2, 128], strides = [1, 1]} : vector<16x256xf32> to vector<2x128xf32>
    %cst_19 = arith.constant dense<0.000000e+00> : vector<2x128xf32>
    %24 = tpu.matmul %18, %15, %cst_19 {dimension_numbers = #tpu.dot_dimension_numbers<[1], [0], [0], [1], [0, 0, 1, 1], [], []>} : vector<2x32xf32>, vector<32x128xf32>, vector<2x128xf32> -> vector<2x128xf32>
    %25 = arith.addf %23, %24 : vector<2x128xf32>
    %26 = vector.extract_strided_slice %13 {offsets = [0, 0], sizes = [2, 1], strides = [1, 1]} : vector<2x8xf32> to vector<2x1xf32>
    %27 = vector.extract_strided_slice %13 {offsets = [0, 7], sizes = [2, 1], strides = [1, 1]} : vector<2x8xf32> to vector<2x1xf32>
    %28 = vector.extract_strided_slice %22 {offsets = [0, 0], sizes = [2, 32], strides = [1, 1]} : vector<2x128xf32> to vector<2x32xf32>
    %29 = arith.negf %28 : vector<2x32xf32>
    %30 = math.exp %29 : vector<2x32xf32>
    %cst_20 = arith.constant 1.000000e+00 : f32
    %31 = vector.broadcast %cst_20 : f32 to vector<2x32xf32>
    %32 = arith.addf %31, %30 : vector<2x32xf32>
    %33 = arith.divf %31, %32 : vector<2x32xf32>
    %34 = vector.extract_strided_slice %22 {offsets = [0, 32], sizes = [2, 32], strides = [1, 1]} : vector<2x128xf32> to vector<2x32xf32>
    %35 = arith.negf %34 : vector<2x32xf32>
    %36 = math.exp %35 : vector<2x32xf32>
    %cst_21 = arith.constant 1.000000e+00 : f32
    %37 = vector.broadcast %cst_21 : f32 to vector<2x32xf32>
    %38 = arith.addf %37, %36 : vector<2x32xf32>
    %39 = arith.divf %37, %38 : vector<2x32xf32>
    %40 = vector.extract_strided_slice %22 {offsets = [0, 64], sizes = [2, 32], strides = [1, 1]} : vector<2x128xf32> to vector<2x32xf32>
    %41 = math.tanh %40 : vector<2x32xf32>
    %42 = vector.extract_strided_slice %22 {offsets = [0, 96], sizes = [2, 32], strides = [1, 1]} : vector<2x128xf32> to vector<2x32xf32>
    %43 = arith.negf %42 : vector<2x32xf32>
    %44 = math.exp %43 : vector<2x32xf32>
    %cst_22 = arith.constant 1.000000e+00 : f32
    %45 = vector.broadcast %cst_22 : f32 to vector<2x32xf32>
    %46 = arith.addf %45, %44 : vector<2x32xf32>
    %47 = arith.divf %45, %46 : vector<2x32xf32>
    %48 = arith.mulf %39, %17 : vector<2x32xf32>
    %49 = arith.mulf %33, %41 : vector<2x32xf32>
    %50 = arith.addf %48, %49 : vector<2x32xf32>
    %51 = math.tanh %50 : vector<2x32xf32>
    %52 = arith.mulf %47, %51 : vector<2x32xf32>
    %53 = vector.broadcast %26 : vector<2x1xf32> to vector<2x32xf32>
    %54 = arith.mulf %52, %53 : vector<2x32xf32>
    %c0_23 = arith.constant 0 : index
    %c0_24 = arith.constant 0 : index
    %c0_25 = arith.constant 0 : index
    %55 = vector.load %arg16[%c0_23, %c0_24, %c0_25] : memref<8x2x32xf32, #tpu.memory_space<vmem>>, vector<1x2x32xf32>
    %56 = vector.shape_cast %55 : vector<1x2x32xf32> to vector<2x32xf32>
    %57 = vector.shape_cast %54 : vector<2x32xf32> to vector<1x2x32xf32>
    tpu.vector_store %arg16[%c0_23, %c0_24, %c0_25], %57 {strides = array<i32>} : memref<8x2x32xf32, #tpu.memory_space<vmem>>, vector<1x2x32xf32>,
    %58 = vector.broadcast %26 : vector<2x1xf32> to vector<2x32xf32>
    %59 = arith.mulf %58, %52 : vector<2x32xf32>
    %cst_26 = arith.constant 1.000000e+00 : f32
    %60 = vector.broadcast %cst_26 : f32 to vector<2x1xf32>
    %61 = arith.subf %60, %26 : vector<2x1xf32>
    %62 = vector.broadcast %61 : vector<2x1xf32> to vector<2x32xf32>
    %63 = arith.mulf %62, %16 : vector<2x32xf32>
    %64 = arith.addf %59, %63 : vector<2x32xf32>
    %65 = vector.broadcast %26 : vector<2x1xf32> to vector<2x32xf32>
    %66 = arith.mulf %65, %50 : vector<2x32xf32>
    %cst_27 = arith.constant 1.000000e+00 : f32
    %67 = vector.broadcast %cst_27 : f32 to vector<2x1xf32>
    %68 = arith.subf %67, %26 : vector<2x1xf32>
    %69 = vector.broadcast %68 : vector<2x1xf32> to vector<2x32xf32>
    %70 = arith.mulf %69, %17 : vector<2x32xf32>
    %71 = arith.addf %66, %70 : vector<2x32xf32>
    %72 = vector.extract_strided_slice %25 {offsets = [0, 0], sizes = [2, 32], strides = [1, 1]} : vector<2x128xf32> to vector<2x32xf32>
    %73 = arith.negf %72 : vector<2x32xf32>
    %74 = math.exp %73 : vector<2x32xf32>
    %cst_28 = arith.constant 1.000000e+00 : f32
    %75 = vector.broadcast %cst_28 : f32 to vector<2x32xf32>
    %76 = arith.addf %75, %74 : vector<2x32xf32>
    %77 = arith.divf %75, %76 : vector<2x32xf32>
    %78 = vector.extract_strided_slice %25 {offsets = [0, 32], sizes = [2, 32], strides = [1, 1]} : vector<2x128xf32> to vector<2x32xf32>
    %79 = arith.negf %78 : vector<2x32xf32>
    %80 = math.exp %79 : vector<2x32xf32>
    %cst_29 = arith.constant 1.000000e+00 : f32
    %81 = vector.broadcast %cst_29 : f32 to vector<2x32xf32>
    %82 = arith.addf %81, %80 : vector<2x32xf32>
    %83 = arith.divf %81, %82 : vector<2x32xf32>
    %84 = vector.extract_strided_slice %25 {offsets = [0, 64], sizes = [2, 32], strides = [1, 1]} : vector<2x128xf32> to vector<2x32xf32>
    %85 = math.tanh %84 : vector<2x32xf32>
    %86 = vector.extract_strided_slice %25 {offsets = [0, 96], sizes = [2, 32], strides = [1, 1]} : vector<2x128xf32> to vector<2x32xf32>
    %87 = arith.negf %86 : vector<2x32xf32>
    %88 = math.exp %87 : vector<2x32xf32>
    %cst_30 = arith.constant 1.000000e+00 : f32
    %89 = vector.broadcast %cst_30 : f32 to vector<2x32xf32>
    %90 = arith.addf %89, %88 : vector<2x32xf32>
    %91 = arith.divf %89, %90 : vector<2x32xf32>
    %92 = arith.mulf %83, %19 : vector<2x32xf32>
    %93 = arith.mulf %77, %85 : vector<2x32xf32>
    %94 = arith.addf %92, %93 : vector<2x32xf32>
    %95 = math.tanh %94 : vector<2x32xf32>
    %96 = arith.mulf %91, %95 : vector<2x32xf32>
    %97 = vector.broadcast %27 : vector<2x1xf32> to vector<2x32xf32>
    %98 = arith.mulf %96, %97 : vector<2x32xf32>
    %c7 = arith.constant 7 : index
    %c0_31 = arith.constant 0 : index
    %c0_32 = arith.constant 0 : index
    %99 = vector.load %arg17[%c7, %c0_31, %c0_32] : memref<8x2x32xf32, #tpu.memory_space<vmem>>, vector<1x2x32xf32>
    %100 = vector.shape_cast %99 : vector<1x2x32xf32> to vector<2x32xf32>
    %101 = vector.shape_cast %98 : vector<2x32xf32> to vector<1x2x32xf32>
    tpu.vector_store %arg17[%c7, %c0_31, %c0_32], %101 {strides = array<i32>} : memref<8x2x32xf32, #tpu.memory_space<vmem>>, vector<1x2x32xf32>,
    %102 = vector.broadcast %27 : vector<2x1xf32> to vector<2x32xf32>
    %103 = arith.mulf %102, %96 : vector<2x32xf32>
    %cst_33 = arith.constant 1.000000e+00 : f32
    %104 = vector.broadcast %cst_33 : f32 to vector<2x1xf32>
    %105 = arith.subf %104, %27 : vector<2x1xf32>
    %106 = vector.broadcast %105 : vector<2x1xf32> to vector<2x32xf32>
    %107 = arith.mulf %106, %18 : vector<2x32xf32>
    %108 = arith.addf %103, %107 : vector<2x32xf32>
    %109 = vector.broadcast %27 : vector<2x1xf32> to vector<2x32xf32>
    %110 = arith.mulf %109, %94 : vector<2x32xf32>
    %cst_34 = arith.constant 1.000000e+00 : f32
    %111 = vector.broadcast %cst_34 : f32 to vector<2x1xf32>
    %112 = arith.subf %111, %27 : vector<2x1xf32>
    %113 = vector.broadcast %112 : vector<2x1xf32> to vector<2x32xf32>
    %114 = arith.mulf %113, %19 : vector<2x32xf32>
    %115 = arith.addf %110, %114 : vector<2x32xf32>
    %116 = vector.extract_strided_slice %12 {offsets = [2, 0], sizes = [2, 128], strides = [1, 1]} : vector<16x256xf32> to vector<2x128xf32>
    %cst_35 = arith.constant dense<0.000000e+00> : vector<2x128xf32>
    %117 = tpu.matmul %64, %14, %cst_35 {dimension_numbers = #tpu.dot_dimension_numbers<[1], [0], [0], [1], [0, 0, 1, 1], [], []>} : vector<2x32xf32>, vector<32x128xf32>, vector<2x128xf32> -> vector<2x128xf32>
    %118 = arith.addf %116, %117 : vector<2x128xf32>
    %119 = vector.extract_strided_slice %12 {offsets = [12, 128], sizes = [2, 128], strides = [1, 1]} : vector<16x256xf32> to vector<2x128xf32>
    %cst_36 = arith.constant dense<0.000000e+00> : vector<2x128xf32>
    %120 = tpu.matmul %108, %15, %cst_36 {dimension_numbers = #tpu.dot_dimension_numbers<[1], [0], [0], [1], [0, 0, 1, 1], [], []>} : vector<2x32xf32>, vector<32x128xf32>, vector<2x128xf32> -> vector<2x128xf32>
    %121 = arith.addf %119, %120 : vector<2x128xf32>
    %122 = vector.extract_strided_slice %13 {offsets = [0, 1], sizes = [2, 1], strides = [1, 1]} : vector<2x8xf32> to vector<2x1xf32>
    %123 = vector.extract_strided_slice %13 {offsets = [0, 6], sizes = [2, 1], strides = [1, 1]} : vector<2x8xf32> to vector<2x1xf32>
    %124 = vector.extract_strided_slice %118 {offsets = [0, 0], sizes = [2, 32], strides = [1, 1]} : vector<2x128xf32> to vector<2x32xf32>
    %125 = arith.negf %124 : vector<2x32xf32>
    %126 = math.exp %125 : vector<2x32xf32>
    %cst_37 = arith.constant 1.000000e+00 : f32
    %127 = vector.broadcast %cst_37 : f32 to vector<2x32xf32>
    %128 = arith.addf %127, %126 : vector<2x32xf32>
    %129 = arith.divf %127, %128 : vector<2x32xf32>
    %130 = vector.extract_strided_slice %118 {offsets = [0, 32], sizes = [2, 32], strides = [1, 1]} : vector<2x128xf32> to vector<2x32xf32>
    %131 = arith.negf %130 : vector<2x32xf32>
    %132 = math.exp %131 : vector<2x32xf32>
    %cst_38 = arith.constant 1.000000e+00 : f32
    %133 = vector.broadcast %cst_38 : f32 to vector<2x32xf32>
    %134 = arith.addf %133, %132 : vector<2x32xf32>
    %135 = arith.divf %133, %134 : vector<2x32xf32>
    %136 = vector.extract_strided_slice %118 {offsets = [0, 64], sizes = [2, 32], strides = [1, 1]} : vector<2x128xf32> to vector<2x32xf32>
    %137 = math.tanh %136 : vector<2x32xf32>
    %138 = vector.extract_strided_slice %118 {offsets = [0, 96], sizes = [2, 32], strides = [1, 1]} : vector<2x128xf32> to vector<2x32xf32>
    %139 = arith.negf %138 : vector<2x32xf32>
    %140 = math.exp %139 : vector<2x32xf32>
    %cst_39 = arith.constant 1.000000e+00 : f32
    %141 = vector.broadcast %cst_39 : f32 to vector<2x32xf32>
    %142 = arith.addf %141, %140 : vector<2x32xf32>
    %143 = arith.divf %141, %142 : vector<2x32xf32>
    %144 = arith.mulf %135, %71 : vector<2x32xf32>
    %145 = arith.mulf %129, %137 : vector<2x32xf32>
    %146 = arith.addf %144, %145 : vector<2x32xf32>
    %147 = math.tanh %146 : vector<2x32xf32>
    %148 = arith.mulf %143, %147 : vector<2x32xf32>
    %149 = vector.broadcast %122 : vector<2x1xf32> to vector<2x32xf32>
    %150 = arith.mulf %148, %149 : vector<2x32xf32>
    %c1 = arith.constant 1 : index
    %c0_40 = arith.constant 0 : index
    %c0_41 = arith.constant 0 : index
    %151 = vector.load %arg16[%c1, %c0_40, %c0_41] : memref<8x2x32xf32, #tpu.memory_space<vmem>>, vector<1x2x32xf32>
    %152 = vector.shape_cast %151 : vector<1x2x32xf32> to vector<2x32xf32>
    %153 = vector.shape_cast %150 : vector<2x32xf32> to vector<1x2x32xf32>
    tpu.vector_store %arg16[%c1, %c0_40, %c0_41], %153 {strides = array<i32>} : memref<8x2x32xf32, #tpu.memory_space<vmem>>, vector<1x2x32xf32>,
    %154 = vector.broadcast %122 : vector<2x1xf32> to vector<2x32xf32>
    %155 = arith.mulf %154, %148 : vector<2x32xf32>
    %cst_42 = arith.constant 1.000000e+00 : f32
    %156 = vector.broadcast %cst_42 : f32 to vector<2x1xf32>
    %157 = arith.subf %156, %122 : vector<2x1xf32>
    %158 = vector.broadcast %157 : vector<2x1xf32> to vector<2x32xf32>
    %159 = arith.mulf %158, %64 : vector<2x32xf32>
    %160 = arith.addf %155, %159 : vector<2x32xf32>
    %161 = vector.broadcast %122 : vector<2x1xf32> to vector<2x32xf32>
    %162 = arith.mulf %161, %146 : vector<2x32xf32>
    %cst_43 = arith.constant 1.000000e+00 : f32
    %163 = vector.broadcast %cst_43 : f32 to vector<2x1xf32>
    %164 = arith.subf %163, %122 : vector<2x1xf32>
    %165 = vector.broadcast %164 : vector<2x1xf32> to vector<2x32xf32>
    %166 = arith.mulf %165, %71 : vector<2x32xf32>
    %167 = arith.addf %162, %166 : vector<2x32xf32>
    %168 = vector.extract_strided_slice %121 {offsets = [0, 0], sizes = [2, 32], strides = [1, 1]} : vector<2x128xf32> to vector<2x32xf32>
    %169 = arith.negf %168 : vector<2x32xf32>
    %170 = math.exp %169 : vector<2x32xf32>
    %cst_44 = arith.constant 1.000000e+00 : f32
    %171 = vector.broadcast %cst_44 : f32 to vector<2x32xf32>
    %172 = arith.addf %171, %170 : vector<2x32xf32>
    %173 = arith.divf %171, %172 : vector<2x32xf32>
    %174 = vector.extract_strided_slice %121 {offsets = [0, 32], sizes = [2, 32], strides = [1, 1]} : vector<2x128xf32> to vector<2x32xf32>
    %175 = arith.negf %174 : vector<2x32xf32>
    %176 = math.exp %175 : vector<2x32xf32>
    %cst_45 = arith.constant 1.000000e+00 : f32
    %177 = vector.broadcast %cst_45 : f32 to vector<2x32xf32>
    %178 = arith.addf %177, %176 : vector<2x32xf32>
    %179 = arith.divf %177, %178 : vector<2x32xf32>
    %180 = vector.extract_strided_slice %121 {offsets = [0, 64], sizes = [2, 32], strides = [1, 1]} : vector<2x128xf32> to vector<2x32xf32>
    %181 = math.tanh %180 : vector<2x32xf32>
    %182 = vector.extract_strided_slice %121 {offsets = [0, 96], sizes = [2, 32], strides = [1, 1]} : vector<2x128xf32> to vector<2x32xf32>
    %183 = arith.negf %182 : vector<2x32xf32>
    %184 = math.exp %183 : vector<2x32xf32>
    %cst_46 = arith.constant 1.000000e+00 : f32
    %185 = vector.broadcast %cst_46 : f32 to vector<2x32xf32>
    %186 = arith.addf %185, %184 : vector<2x32xf32>
    %187 = arith.divf %185, %186 : vector<2x32xf32>
    %188 = arith.mulf %179, %115 : vector<2x32xf32>
    %189 = arith.mulf %173, %181 : vector<2x32xf32>
    %190 = arith.addf %188, %189 : vector<2x32xf32>
    %191 = math.tanh %190 : vector<2x32xf32>
    %192 = arith.mulf %187, %191 : vector<2x32xf32>
    %193 = vector.broadcast %123 : vector<2x1xf32> to vector<2x32xf32>
    %194 = arith.mulf %192, %193 : vector<2x32xf32>
    %c6 = arith.constant 6 : index
    %c0_47 = arith.constant 0 : index
    %c0_48 = arith.constant 0 : index
    %195 = vector.load %arg17[%c6, %c0_47, %c0_48] : memref<8x2x32xf32, #tpu.memory_space<vmem>>, vector<1x2x32xf32>
    %196 = vector.shape_cast %195 : vector<1x2x32xf32> to vector<2x32xf32>
    %197 = vector.shape_cast %194 : vector<2x32xf32> to vector<1x2x32xf32>
    tpu.vector_store %arg17[%c6, %c0_47, %c0_48], %197 {strides = array<i32>} : memref<8x2x32xf32, #tpu.memory_space<vmem>>, vector<1x2x32xf32>,
    %198 = vector.broadcast %123 : vector<2x1xf32> to vector<2x32xf32>
    %199 = arith.mulf %198, %192 : vector<2x32xf32>
    %cst_49 = arith.constant 1.000000e+00 : f32
    %200 = vector.broadcast %cst_49 : f32 to vector<2x1xf32>
    %201 = arith.subf %200, %123 : vector<2x1xf32>
    %202 = vector.broadcast %201 : vector<2x1xf32> to vector<2x32xf32>
    %203 = arith.mulf %202, %108 : vector<2x32xf32>
    %204 = arith.addf %199, %203 : vector<2x32xf32>
    %205 = vector.broadcast %123 : vector<2x1xf32> to vector<2x32xf32>
    %206 = arith.mulf %205, %190 : vector<2x32xf32>
    %cst_50 = arith.constant 1.000000e+00 : f32
    %207 = vector.broadcast %cst_50 : f32 to vector<2x1xf32>
    %208 = arith.subf %207, %123 : vector<2x1xf32>
    %209 = vector.broadcast %208 : vector<2x1xf32> to vector<2x32xf32>
    %210 = arith.mulf %209, %115 : vector<2x32xf32>
    %211 = arith.addf %206, %210 : vector<2x32xf32>
    %212 = vector.extract_strided_slice %12 {offsets = [4, 0], sizes = [2, 128], strides = [1, 1]} : vector<16x256xf32> to vector<2x128xf32>
    %cst_51 = arith.constant dense<0.000000e+00> : vector<2x128xf32>
    %213 = tpu.matmul %160, %14, %cst_51 {dimension_numbers = #tpu.dot_dimension_numbers<[1], [0], [0], [1], [0, 0, 1, 1], [], []>} : vector<2x32xf32>, vector<32x128xf32>, vector<2x128xf32> -> vector<2x128xf32>
    %214 = arith.addf %212, %213 : vector<2x128xf32>
    %215 = vector.extract_strided_slice %12 {offsets = [10, 128], sizes = [2, 128], strides = [1, 1]} : vector<16x256xf32> to vector<2x128xf32>
    %cst_52 = arith.constant dense<0.000000e+00> : vector<2x128xf32>
    %216 = tpu.matmul %204, %15, %cst_52 {dimension_numbers = #tpu.dot_dimension_numbers<[1], [0], [0], [1], [0, 0, 1, 1], [], []>} : vector<2x32xf32>, vector<32x128xf32>, vector<2x128xf32> -> vector<2x128xf32>
    %217 = arith.addf %215, %216 : vector<2x128xf32>
    %218 = vector.extract_strided_slice %13 {offsets = [0, 2], sizes = [2, 1], strides = [1, 1]} : vector<2x8xf32> to vector<2x1xf32>
    %219 = vector.extract_strided_slice %13 {offsets = [0, 5], sizes = [2, 1], strides = [1, 1]} : vector<2x8xf32> to vector<2x1xf32>
    %220 = vector.extract_strided_slice %214 {offsets = [0, 0], sizes = [2, 32], strides = [1, 1]} : vector<2x128xf32> to vector<2x32xf32>
    %221 = arith.negf %220 : vector<2x32xf32>
    %222 = math.exp %221 : vector<2x32xf32>
    %cst_53 = arith.constant 1.000000e+00 : f32
    %223 = vector.broadcast %cst_53 : f32 to vector<2x32xf32>
    %224 = arith.addf %223, %222 : vector<2x32xf32>
    %225 = arith.divf %223, %224 : vector<2x32xf32>
    %226 = vector.extract_strided_slice %214 {offsets = [0, 32], sizes = [2, 32], strides = [1, 1]} : vector<2x128xf32> to vector<2x32xf32>
    %227 = arith.negf %226 : vector<2x32xf32>
    %228 = math.exp %227 : vector<2x32xf32>
    %cst_54 = arith.constant 1.000000e+00 : f32
    %229 = vector.broadcast %cst_54 : f32 to vector<2x32xf32>
    %230 = arith.addf %229, %228 : vector<2x32xf32>
    %231 = arith.divf %229, %230 : vector<2x32xf32>
    %232 = vector.extract_strided_slice %214 {offsets = [0, 64], sizes = [2, 32], strides = [1, 1]} : vector<2x128xf32> to vector<2x32xf32>
    %233 = math.tanh %232 : vector<2x32xf32>
    %234 = vector.extract_strided_slice %214 {offsets = [0, 96], sizes = [2, 32], strides = [1, 1]} : vector<2x128xf32> to vector<2x32xf32>
    %235 = arith.negf %234 : vector<2x32xf32>
    %236 = math.exp %235 : vector<2x32xf32>
    %cst_55 = arith.constant 1.000000e+00 : f32
    %237 = vector.broadcast %cst_55 : f32 to vector<2x32xf32>
    %238 = arith.addf %237, %236 : vector<2x32xf32>
    %239 = arith.divf %237, %238 : vector<2x32xf32>
    %240 = arith.mulf %231, %167 : vector<2x32xf32>
    %241 = arith.mulf %225, %233 : vector<2x32xf32>
    %242 = arith.addf %240, %241 : vector<2x32xf32>
    %243 = math.tanh %242 : vector<2x32xf32>
    %244 = arith.mulf %239, %243 : vector<2x32xf32>
    %245 = vector.broadcast %218 : vector<2x1xf32> to vector<2x32xf32>
    %246 = arith.mulf %244, %245 : vector<2x32xf32>
    %c2 = arith.constant 2 : index
    %c0_56 = arith.constant 0 : index
    %c0_57 = arith.constant 0 : index
    %247 = vector.load %arg16[%c2, %c0_56, %c0_57] : memref<8x2x32xf32, #tpu.memory_space<vmem>>, vector<1x2x32xf32>
    %248 = vector.shape_cast %247 : vector<1x2x32xf32> to vector<2x32xf32>
    %249 = vector.shape_cast %246 : vector<2x32xf32> to vector<1x2x32xf32>
    tpu.vector_store %arg16[%c2, %c0_56, %c0_57], %249 {strides = array<i32>} : memref<8x2x32xf32, #tpu.memory_space<vmem>>, vector<1x2x32xf32>,
    %250 = vector.broadcast %218 : vector<2x1xf32> to vector<2x32xf32>
    %251 = arith.mulf %250, %244 : vector<2x32xf32>
    %cst_58 = arith.constant 1.000000e+00 : f32
    %252 = vector.broadcast %cst_58 : f32 to vector<2x1xf32>
    %253 = arith.subf %252, %218 : vector<2x1xf32>
    %254 = vector.broadcast %253 : vector<2x1xf32> to vector<2x32xf32>
    %255 = arith.mulf %254, %160 : vector<2x32xf32>
    %256 = arith.addf %251, %255 : vector<2x32xf32>
    %257 = vector.broadcast %218 : vector<2x1xf32> to vector<2x32xf32>
    %258 = arith.mulf %257, %242 : vector<2x32xf32>
    %cst_59 = arith.constant 1.000000e+00 : f32
    %259 = vector.broadcast %cst_59 : f32 to vector<2x1xf32>
    %260 = arith.subf %259, %218 : vector<2x1xf32>
    %261 = vector.broadcast %260 : vector<2x1xf32> to vector<2x32xf32>
    %262 = arith.mulf %261, %167 : vector<2x32xf32>
    %263 = arith.addf %258, %262 : vector<2x32xf32>
    %264 = vector.extract_strided_slice %217 {offsets = [0, 0], sizes = [2, 32], strides = [1, 1]} : vector<2x128xf32> to vector<2x32xf32>
    %265 = arith.negf %264 : vector<2x32xf32>
    %266 = math.exp %265 : vector<2x32xf32>
    %cst_60 = arith.constant 1.000000e+00 : f32
    %267 = vector.broadcast %cst_60 : f32 to vector<2x32xf32>
    %268 = arith.addf %267, %266 : vector<2x32xf32>
    %269 = arith.divf %267, %268 : vector<2x32xf32>
    %270 = vector.extract_strided_slice %217 {offsets = [0, 32], sizes = [2, 32], strides = [1, 1]} : vector<2x128xf32> to vector<2x32xf32>
    %271 = arith.negf %270 : vector<2x32xf32>
    %272 = math.exp %271 : vector<2x32xf32>
    %cst_61 = arith.constant 1.000000e+00 : f32
    %273 = vector.broadcast %cst_61 : f32 to vector<2x32xf32>
    %274 = arith.addf %273, %272 : vector<2x32xf32>
    %275 = arith.divf %273, %274 : vector<2x32xf32>
    %276 = vector.extract_strided_slice %217 {offsets = [0, 64], sizes = [2, 32], strides = [1, 1]} : vector<2x128xf32> to vector<2x32xf32>
    %277 = math.tanh %276 : vector<2x32xf32>
    %278 = vector.extract_strided_slice %217 {offsets = [0, 96], sizes = [2, 32], strides = [1, 1]} : vector<2x128xf32> to vector<2x32xf32>
    %279 = arith.negf %278 : vector<2x32xf32>
    %280 = math.exp %279 : vector<2x32xf32>
    %cst_62 = arith.constant 1.000000e+00 : f32
    %281 = vector.broadcast %cst_62 : f32 to vector<2x32xf32>
    %282 = arith.addf %281, %280 : vector<2x32xf32>
    %283 = arith.divf %281, %282 : vector<2x32xf32>
    %284 = arith.mulf %275, %211 : vector<2x32xf32>
    %285 = arith.mulf %269, %277 : vector<2x32xf32>
    %286 = arith.addf %284, %285 : vector<2x32xf32>
    %287 = math.tanh %286 : vector<2x32xf32>
    %288 = arith.mulf %283, %287 : vector<2x32xf32>
    %289 = vector.broadcast %219 : vector<2x1xf32> to vector<2x32xf32>
    %290 = arith.mulf %288, %289 : vector<2x32xf32>
    %c5 = arith.constant 5 : index
    %c0_63 = arith.constant 0 : index
    %c0_64 = arith.constant 0 : index
    %291 = vector.load %arg17[%c5, %c0_63, %c0_64] : memref<8x2x32xf32, #tpu.memory_space<vmem>>, vector<1x2x32xf32>
    %292 = vector.shape_cast %291 : vector<1x2x32xf32> to vector<2x32xf32>
    %293 = vector.shape_cast %290 : vector<2x32xf32> to vector<1x2x32xf32>
    tpu.vector_store %arg17[%c5, %c0_63, %c0_64], %293 {strides = array<i32>} : memref<8x2x32xf32, #tpu.memory_space<vmem>>, vector<1x2x32xf32>,
    %294 = vector.broadcast %219 : vector<2x1xf32> to vector<2x32xf32>
    %295 = arith.mulf %294, %288 : vector<2x32xf32>
    %cst_65 = arith.constant 1.000000e+00 : f32
    %296 = vector.broadcast %cst_65 : f32 to vector<2x1xf32>
    %297 = arith.subf %296, %219 : vector<2x1xf32>
    %298 = vector.broadcast %297 : vector<2x1xf32> to vector<2x32xf32>
    %299 = arith.mulf %298, %204 : vector<2x32xf32>
    %300 = arith.addf %295, %299 : vector<2x32xf32>
    %301 = vector.broadcast %219 : vector<2x1xf32> to vector<2x32xf32>
    %302 = arith.mulf %301, %286 : vector<2x32xf32>
    %cst_66 = arith.constant 1.000000e+00 : f32
    %303 = vector.broadcast %cst_66 : f32 to vector<2x1xf32>
    %304 = arith.subf %303, %219 : vector<2x1xf32>
    %305 = vector.broadcast %304 : vector<2x1xf32> to vector<2x32xf32>
    %306 = arith.mulf %305, %211 : vector<2x32xf32>
    %307 = arith.addf %302, %306 : vector<2x32xf32>
    %308 = vector.extract_strided_slice %12 {offsets = [6, 0], sizes = [2, 128], strides = [1, 1]} : vector<16x256xf32> to vector<2x128xf32>
    %cst_67 = arith.constant dense<0.000000e+00> : vector<2x128xf32>
    %309 = tpu.matmul %256, %14, %cst_67 {dimension_numbers = #tpu.dot_dimension_numbers<[1], [0], [0], [1], [0, 0, 1, 1], [], []>} : vector<2x32xf32>, vector<32x128xf32>, vector<2x128xf32> -> vector<2x128xf32>
    %310 = arith.addf %308, %309 : vector<2x128xf32>
    %311 = vector.extract_strided_slice %12 {offsets = [8, 128], sizes = [2, 128], strides = [1, 1]} : vector<16x256xf32> to vector<2x128xf32>
    %cst_68 = arith.constant dense<0.000000e+00> : vector<2x128xf32>
    %312 = tpu.matmul %300, %15, %cst_68 {dimension_numbers = #tpu.dot_dimension_numbers<[1], [0], [0], [1], [0, 0, 1, 1], [], []>} : vector<2x32xf32>, vector<32x128xf32>, vector<2x128xf32> -> vector<2x128xf32>
    %313 = arith.addf %311, %312 : vector<2x128xf32>
    %314 = vector.extract_strided_slice %13 {offsets = [0, 3], sizes = [2, 1], strides = [1, 1]} : vector<2x8xf32> to vector<2x1xf32>
    %315 = vector.extract_strided_slice %13 {offsets = [0, 4], sizes = [2, 1], strides = [1, 1]} : vector<2x8xf32> to vector<2x1xf32>
    %316 = vector.extract_strided_slice %310 {offsets = [0, 0], sizes = [2, 32], strides = [1, 1]} : vector<2x128xf32> to vector<2x32xf32>
    %317 = arith.negf %316 : vector<2x32xf32>
    %318 = math.exp %317 : vector<2x32xf32>
    %cst_69 = arith.constant 1.000000e+00 : f32
    %319 = vector.broadcast %cst_69 : f32 to vector<2x32xf32>
    %320 = arith.addf %319, %318 : vector<2x32xf32>
    %321 = arith.divf %319, %320 : vector<2x32xf32>
    %322 = vector.extract_strided_slice %310 {offsets = [0, 32], sizes = [2, 32], strides = [1, 1]} : vector<2x128xf32> to vector<2x32xf32>
    %323 = arith.negf %322 : vector<2x32xf32>
    %324 = math.exp %323 : vector<2x32xf32>
    %cst_70 = arith.constant 1.000000e+00 : f32
    %325 = vector.broadcast %cst_70 : f32 to vector<2x32xf32>
    %326 = arith.addf %325, %324 : vector<2x32xf32>
    %327 = arith.divf %325, %326 : vector<2x32xf32>
    %328 = vector.extract_strided_slice %310 {offsets = [0, 64], sizes = [2, 32], strides = [1, 1]} : vector<2x128xf32> to vector<2x32xf32>
    %329 = math.tanh %328 : vector<2x32xf32>
    %330 = vector.extract_strided_slice %310 {offsets = [0, 96], sizes = [2, 32], strides = [1, 1]} : vector<2x128xf32> to vector<2x32xf32>
    %331 = arith.negf %330 : vector<2x32xf32>
    %332 = math.exp %331 : vector<2x32xf32>
    %cst_71 = arith.constant 1.000000e+00 : f32
    %333 = vector.broadcast %cst_71 : f32 to vector<2x32xf32>
    %334 = arith.addf %333, %332 : vector<2x32xf32>
    %335 = arith.divf %333, %334 : vector<2x32xf32>
    %336 = arith.mulf %327, %263 : vector<2x32xf32>
    %337 = arith.mulf %321, %329 : vector<2x32xf32>
    %338 = arith.addf %336, %337 : vector<2x32xf32>
    %339 = math.tanh %338 : vector<2x32xf32>
    %340 = arith.mulf %335, %339 : vector<2x32xf32>
    %341 = vector.broadcast %314 : vector<2x1xf32> to vector<2x32xf32>
    %342 = arith.mulf %340, %341 : vector<2x32xf32>
    %c3 = arith.constant 3 : index
    %c0_72 = arith.constant 0 : index
    %c0_73 = arith.constant 0 : index
    %343 = vector.load %arg16[%c3, %c0_72, %c0_73] : memref<8x2x32xf32, #tpu.memory_space<vmem>>, vector<1x2x32xf32>
    %344 = vector.shape_cast %343 : vector<1x2x32xf32> to vector<2x32xf32>
    %345 = vector.shape_cast %342 : vector<2x32xf32> to vector<1x2x32xf32>
    tpu.vector_store %arg16[%c3, %c0_72, %c0_73], %345 {strides = array<i32>} : memref<8x2x32xf32, #tpu.memory_space<vmem>>, vector<1x2x32xf32>,
    %346 = vector.broadcast %314 : vector<2x1xf32> to vector<2x32xf32>
    %347 = arith.mulf %346, %340 : vector<2x32xf32>
    %cst_74 = arith.constant 1.000000e+00 : f32
    %348 = vector.broadcast %cst_74 : f32 to vector<2x1xf32>
    %349 = arith.subf %348, %314 : vector<2x1xf32>
    %350 = vector.broadcast %349 : vector<2x1xf32> to vector<2x32xf32>
    %351 = arith.mulf %350, %256 : vector<2x32xf32>
    %352 = arith.addf %347, %351 : vector<2x32xf32>
    %353 = vector.broadcast %314 : vector<2x1xf32> to vector<2x32xf32>
    %354 = arith.mulf %353, %338 : vector<2x32xf32>
    %cst_75 = arith.constant 1.000000e+00 : f32
    %355 = vector.broadcast %cst_75 : f32 to vector<2x1xf32>
    %356 = arith.subf %355, %314 : vector<2x1xf32>
    %357 = vector.broadcast %356 : vector<2x1xf32> to vector<2x32xf32>
    %358 = arith.mulf %357, %263 : vector<2x32xf32>
    %359 = arith.addf %354, %358 : vector<2x32xf32>
    %360 = vector.extract_strided_slice %313 {offsets = [0, 0], sizes = [2, 32], strides = [1, 1]} : vector<2x128xf32> to vector<2x32xf32>
    %361 = arith.negf %360 : vector<2x32xf32>
    %362 = math.exp %361 : vector<2x32xf32>
    %cst_76 = arith.constant 1.000000e+00 : f32
    %363 = vector.broadcast %cst_76 : f32 to vector<2x32xf32>
    %364 = arith.addf %363, %362 : vector<2x32xf32>
    %365 = arith.divf %363, %364 : vector<2x32xf32>
    %366 = vector.extract_strided_slice %313 {offsets = [0, 32], sizes = [2, 32], strides = [1, 1]} : vector<2x128xf32> to vector<2x32xf32>
    %367 = arith.negf %366 : vector<2x32xf32>
    %368 = math.exp %367 : vector<2x32xf32>
    %cst_77 = arith.constant 1.000000e+00 : f32
    %369 = vector.broadcast %cst_77 : f32 to vector<2x32xf32>
    %370 = arith.addf %369, %368 : vector<2x32xf32>
    %371 = arith.divf %369, %370 : vector<2x32xf32>
    %372 = vector.extract_strided_slice %313 {offsets = [0, 64], sizes = [2, 32], strides = [1, 1]} : vector<2x128xf32> to vector<2x32xf32>
    %373 = math.tanh %372 : vector<2x32xf32>
    %374 = vector.extract_strided_slice %313 {offsets = [0, 96], sizes = [2, 32], strides = [1, 1]} : vector<2x128xf32> to vector<2x32xf32>
    %375 = arith.negf %374 : vector<2x32xf32>
    %376 = math.exp %375 : vector<2x32xf32>
    %cst_78 = arith.constant 1.000000e+00 : f32
    %377 = vector.broadcast %cst_78 : f32 to vector<2x32xf32>
    %378 = arith.addf %377, %376 : vector<2x32xf32>
    %379 = arith.divf %377, %378 : vector<2x32xf32>
    %380 = arith.mulf %371, %307 : vector<2x32xf32>
    %381 = arith.mulf %365, %373 : vector<2x32xf32>
    %382 = arith.addf %380, %381 : vector<2x32xf32>
    %383 = math.tanh %382 : vector<2x32xf32>
    %384 = arith.mulf %379, %383 : vector<2x32xf32>
    %385 = vector.broadcast %315 : vector<2x1xf32> to vector<2x32xf32>
    %386 = arith.mulf %384, %385 : vector<2x32xf32>
    %c4 = arith.constant 4 : index
    %c0_79 = arith.constant 0 : index
    %c0_80 = arith.constant 0 : index
    %387 = vector.load %arg17[%c4, %c0_79, %c0_80] : memref<8x2x32xf32, #tpu.memory_space<vmem>>, vector<1x2x32xf32>
    %388 = vector.shape_cast %387 : vector<1x2x32xf32> to vector<2x32xf32>
    %389 = vector.shape_cast %386 : vector<2x32xf32> to vector<1x2x32xf32>
    tpu.vector_store %arg17[%c4, %c0_79, %c0_80], %389 {strides = array<i32>} : memref<8x2x32xf32, #tpu.memory_space<vmem>>, vector<1x2x32xf32>,
    %390 = vector.broadcast %315 : vector<2x1xf32> to vector<2x32xf32>
    %391 = arith.mulf %390, %384 : vector<2x32xf32>
    %cst_81 = arith.constant 1.000000e+00 : f32
    %392 = vector.broadcast %cst_81 : f32 to vector<2x1xf32>
    %393 = arith.subf %392, %315 : vector<2x1xf32>
    %394 = vector.broadcast %393 : vector<2x1xf32> to vector<2x32xf32>
    %395 = arith.mulf %394, %300 : vector<2x32xf32>
    %396 = arith.addf %391, %395 : vector<2x32xf32>
    %397 = vector.broadcast %315 : vector<2x1xf32> to vector<2x32xf32>
    %398 = arith.mulf %397, %382 : vector<2x32xf32>
    %cst_82 = arith.constant 1.000000e+00 : f32
    %399 = vector.broadcast %cst_82 : f32 to vector<2x1xf32>
    %400 = arith.subf %399, %315 : vector<2x1xf32>
    %401 = vector.broadcast %400 : vector<2x1xf32> to vector<2x32xf32>
    %402 = arith.mulf %401, %307 : vector<2x32xf32>
    %403 = arith.addf %398, %402 : vector<2x32xf32>
    %404 = vector.extract_strided_slice %12 {offsets = [8, 0], sizes = [2, 128], strides = [1, 1]} : vector<16x256xf32> to vector<2x128xf32>
    %cst_83 = arith.constant dense<0.000000e+00> : vector<2x128xf32>
    %405 = tpu.matmul %352, %14, %cst_83 {dimension_numbers = #tpu.dot_dimension_numbers<[1], [0], [0], [1], [0, 0, 1, 1], [], []>} : vector<2x32xf32>, vector<32x128xf32>, vector<2x128xf32> -> vector<2x128xf32>
    %406 = arith.addf %404, %405 : vector<2x128xf32>
    %407 = vector.extract_strided_slice %12 {offsets = [6, 128], sizes = [2, 128], strides = [1, 1]} : vector<16x256xf32> to vector<2x128xf32>
    %cst_84 = arith.constant dense<0.000000e+00> : vector<2x128xf32>
    %408 = tpu.matmul %396, %15, %cst_84 {dimension_numbers = #tpu.dot_dimension_numbers<[1], [0], [0], [1], [0, 0, 1, 1], [], []>} : vector<2x32xf32>, vector<32x128xf32>, vector<2x128xf32> -> vector<2x128xf32>
    %409 = arith.addf %407, %408 : vector<2x128xf32>
    %410 = vector.extract_strided_slice %13 {offsets = [0, 4], sizes = [2, 1], strides = [1, 1]} : vector<2x8xf32> to vector<2x1xf32>
    %411 = vector.extract_strided_slice %13 {offsets = [0, 3], sizes = [2, 1], strides = [1, 1]} : vector<2x8xf32> to vector<2x1xf32>
    %412 = vector.extract_strided_slice %406 {offsets = [0, 0], sizes = [2, 32], strides = [1, 1]} : vector<2x128xf32> to vector<2x32xf32>
    %413 = arith.negf %412 : vector<2x32xf32>
    %414 = math.exp %413 : vector<2x32xf32>
    %cst_85 = arith.constant 1.000000e+00 : f32
    %415 = vector.broadcast %cst_85 : f32 to vector<2x32xf32>
    %416 = arith.addf %415, %414 : vector<2x32xf32>
    %417 = arith.divf %415, %416 : vector<2x32xf32>
    %418 = vector.extract_strided_slice %406 {offsets = [0, 32], sizes = [2, 32], strides = [1, 1]} : vector<2x128xf32> to vector<2x32xf32>
    %419 = arith.negf %418 : vector<2x32xf32>
    %420 = math.exp %419 : vector<2x32xf32>
    %cst_86 = arith.constant 1.000000e+00 : f32
    %421 = vector.broadcast %cst_86 : f32 to vector<2x32xf32>
    %422 = arith.addf %421, %420 : vector<2x32xf32>
    %423 = arith.divf %421, %422 : vector<2x32xf32>
    %424 = vector.extract_strided_slice %406 {offsets = [0, 64], sizes = [2, 32], strides = [1, 1]} : vector<2x128xf32> to vector<2x32xf32>
    %425 = math.tanh %424 : vector<2x32xf32>
    %426 = vector.extract_strided_slice %406 {offsets = [0, 96], sizes = [2, 32], strides = [1, 1]} : vector<2x128xf32> to vector<2x32xf32>
    %427 = arith.negf %426 : vector<2x32xf32>
    %428 = math.exp %427 : vector<2x32xf32>
    %cst_87 = arith.constant 1.000000e+00 : f32
    %429 = vector.broadcast %cst_87 : f32 to vector<2x32xf32>
    %430 = arith.addf %429, %428 : vector<2x32xf32>
    %431 = arith.divf %429, %430 : vector<2x32xf32>
    %432 = arith.mulf %423, %359 : vector<2x32xf32>
    %433 = arith.mulf %417, %425 : vector<2x32xf32>
    %434 = arith.addf %432, %433 : vector<2x32xf32>
    %435 = math.tanh %434 : vector<2x32xf32>
    %436 = arith.mulf %431, %435 : vector<2x32xf32>
    %437 = vector.broadcast %410 : vector<2x1xf32> to vector<2x32xf32>
    %438 = arith.mulf %436, %437 : vector<2x32xf32>
    %c4_88 = arith.constant 4 : index
    %c0_89 = arith.constant 0 : index
    %c0_90 = arith.constant 0 : index
    %439 = vector.load %arg16[%c4_88, %c0_89, %c0_90] : memref<8x2x32xf32, #tpu.memory_space<vmem>>, vector<1x2x32xf32>
    %440 = vector.shape_cast %439 : vector<1x2x32xf32> to vector<2x32xf32>
    %441 = vector.shape_cast %438 : vector<2x32xf32> to vector<1x2x32xf32>
    tpu.vector_store %arg16[%c4_88, %c0_89, %c0_90], %441 {strides = array<i32>} : memref<8x2x32xf32, #tpu.memory_space<vmem>>, vector<1x2x32xf32>,
    %442 = vector.broadcast %410 : vector<2x1xf32> to vector<2x32xf32>
    %443 = arith.mulf %442, %436 : vector<2x32xf32>
    %cst_91 = arith.constant 1.000000e+00 : f32
    %444 = vector.broadcast %cst_91 : f32 to vector<2x1xf32>
    %445 = arith.subf %444, %410 : vector<2x1xf32>
    %446 = vector.broadcast %445 : vector<2x1xf32> to vector<2x32xf32>
    %447 = arith.mulf %446, %352 : vector<2x32xf32>
    %448 = arith.addf %443, %447 : vector<2x32xf32>
    %449 = vector.broadcast %410 : vector<2x1xf32> to vector<2x32xf32>
    %450 = arith.mulf %449, %434 : vector<2x32xf32>
    %cst_92 = arith.constant 1.000000e+00 : f32
    %451 = vector.broadcast %cst_92 : f32 to vector<2x1xf32>
    %452 = arith.subf %451, %410 : vector<2x1xf32>
    %453 = vector.broadcast %452 : vector<2x1xf32> to vector<2x32xf32>
    %454 = arith.mulf %453, %359 : vector<2x32xf32>
    %455 = arith.addf %450, %454 : vector<2x32xf32>
    %456 = vector.extract_strided_slice %409 {offsets = [0, 0], sizes = [2, 32], strides = [1, 1]} : vector<2x128xf32> to vector<2x32xf32>
    %457 = arith.negf %456 : vector<2x32xf32>
    %458 = math.exp %457 : vector<2x32xf32>
    %cst_93 = arith.constant 1.000000e+00 : f32
    %459 = vector.broadcast %cst_93 : f32 to vector<2x32xf32>
    %460 = arith.addf %459, %458 : vector<2x32xf32>
    %461 = arith.divf %459, %460 : vector<2x32xf32>
    %462 = vector.extract_strided_slice %409 {offsets = [0, 32], sizes = [2, 32], strides = [1, 1]} : vector<2x128xf32> to vector<2x32xf32>
    %463 = arith.negf %462 : vector<2x32xf32>
    %464 = math.exp %463 : vector<2x32xf32>
    %cst_94 = arith.constant 1.000000e+00 : f32
    %465 = vector.broadcast %cst_94 : f32 to vector<2x32xf32>
    %466 = arith.addf %465, %464 : vector<2x32xf32>
    %467 = arith.divf %465, %466 : vector<2x32xf32>
    %468 = vector.extract_strided_slice %409 {offsets = [0, 64], sizes = [2, 32], strides = [1, 1]} : vector<2x128xf32> to vector<2x32xf32>
    %469 = math.tanh %468 : vector<2x32xf32>
    %470 = vector.extract_strided_slice %409 {offsets = [0, 96], sizes = [2, 32], strides = [1, 1]} : vector<2x128xf32> to vector<2x32xf32>
    %471 = arith.negf %470 : vector<2x32xf32>
    %472 = math.exp %471 : vector<2x32xf32>
    %cst_95 = arith.constant 1.000000e+00 : f32
    %473 = vector.broadcast %cst_95 : f32 to vector<2x32xf32>
    %474 = arith.addf %473, %472 : vector<2x32xf32>
    %475 = arith.divf %473, %474 : vector<2x32xf32>
    %476 = arith.mulf %467, %403 : vector<2x32xf32>
    %477 = arith.mulf %461, %469 : vector<2x32xf32>
    %478 = arith.addf %476, %477 : vector<2x32xf32>
    %479 = math.tanh %478 : vector<2x32xf32>
    %480 = arith.mulf %475, %479 : vector<2x32xf32>
    %481 = vector.broadcast %411 : vector<2x1xf32> to vector<2x32xf32>
    %482 = arith.mulf %480, %481 : vector<2x32xf32>
    %c3_96 = arith.constant 3 : index
    %c0_97 = arith.constant 0 : index
    %c0_98 = arith.constant 0 : index
    %483 = vector.load %arg17[%c3_96, %c0_97, %c0_98] : memref<8x2x32xf32, #tpu.memory_space<vmem>>, vector<1x2x32xf32>
    %484 = vector.shape_cast %483 : vector<1x2x32xf32> to vector<2x32xf32>
    %485 = vector.shape_cast %482 : vector<2x32xf32> to vector<1x2x32xf32>
    tpu.vector_store %arg17[%c3_96, %c0_97, %c0_98], %485 {strides = array<i32>} : memref<8x2x32xf32, #tpu.memory_space<vmem>>, vector<1x2x32xf32>,
    %486 = vector.broadcast %411 : vector<2x1xf32> to vector<2x32xf32>
    %487 = arith.mulf %486, %480 : vector<2x32xf32>
    %cst_99 = arith.constant 1.000000e+00 : f32
    %488 = vector.broadcast %cst_99 : f32 to vector<2x1xf32>
    %489 = arith.subf %488, %411 : vector<2x1xf32>
    %490 = vector.broadcast %489 : vector<2x1xf32> to vector<2x32xf32>
    %491 = arith.mulf %490, %396 : vector<2x32xf32>
    %492 = arith.addf %487, %491 : vector<2x32xf32>
    %493 = vector.broadcast %411 : vector<2x1xf32> to vector<2x32xf32>
    %494 = arith.mulf %493, %478 : vector<2x32xf32>
    %cst_100 = arith.constant 1.000000e+00 : f32
    %495 = vector.broadcast %cst_100 : f32 to vector<2x1xf32>
    %496 = arith.subf %495, %411 : vector<2x1xf32>
    %497 = vector.broadcast %496 : vector<2x1xf32> to vector<2x32xf32>
    %498 = arith.mulf %497, %403 : vector<2x32xf32>
    %499 = arith.addf %494, %498 : vector<2x32xf32>
    %500 = vector.extract_strided_slice %12 {offsets = [10, 0], sizes = [2, 128], strides = [1, 1]} : vector<16x256xf32> to vector<2x128xf32>
    %cst_101 = arith.constant dense<0.000000e+00> : vector<2x128xf32>
    %501 = tpu.matmul %448, %14, %cst_101 {dimension_numbers = #tpu.dot_dimension_numbers<[1], [0], [0], [1], [0, 0, 1, 1], [], []>} : vector<2x32xf32>, vector<32x128xf32>, vector<2x128xf32> -> vector<2x128xf32>
    %502 = arith.addf %500, %501 : vector<2x128xf32>
    %503 = vector.extract_strided_slice %12 {offsets = [4, 128], sizes = [2, 128], strides = [1, 1]} : vector<16x256xf32> to vector<2x128xf32>
    %cst_102 = arith.constant dense<0.000000e+00> : vector<2x128xf32>
    %504 = tpu.matmul %492, %15, %cst_102 {dimension_numbers = #tpu.dot_dimension_numbers<[1], [0], [0], [1], [0, 0, 1, 1], [], []>} : vector<2x32xf32>, vector<32x128xf32>, vector<2x128xf32> -> vector<2x128xf32>
    %505 = arith.addf %503, %504 : vector<2x128xf32>
    %506 = vector.extract_strided_slice %13 {offsets = [0, 5], sizes = [2, 1], strides = [1, 1]} : vector<2x8xf32> to vector<2x1xf32>
    %507 = vector.extract_strided_slice %13 {offsets = [0, 2], sizes = [2, 1], strides = [1, 1]} : vector<2x8xf32> to vector<2x1xf32>
    %508 = vector.extract_strided_slice %502 {offsets = [0, 0], sizes = [2, 32], strides = [1, 1]} : vector<2x128xf32> to vector<2x32xf32>
    %509 = arith.negf %508 : vector<2x32xf32>
    %510 = math.exp %509 : vector<2x32xf32>
    %cst_103 = arith.constant 1.000000e+00 : f32
    %511 = vector.broadcast %cst_103 : f32 to vector<2x32xf32>
    %512 = arith.addf %511, %510 : vector<2x32xf32>
    %513 = arith.divf %511, %512 : vector<2x32xf32>
    %514 = vector.extract_strided_slice %502 {offsets = [0, 32], sizes = [2, 32], strides = [1, 1]} : vector<2x128xf32> to vector<2x32xf32>
    %515 = arith.negf %514 : vector<2x32xf32>
    %516 = math.exp %515 : vector<2x32xf32>
    %cst_104 = arith.constant 1.000000e+00 : f32
    %517 = vector.broadcast %cst_104 : f32 to vector<2x32xf32>
    %518 = arith.addf %517, %516 : vector<2x32xf32>
    %519 = arith.divf %517, %518 : vector<2x32xf32>
    %520 = vector.extract_strided_slice %502 {offsets = [0, 64], sizes = [2, 32], strides = [1, 1]} : vector<2x128xf32> to vector<2x32xf32>
    %521 = math.tanh %520 : vector<2x32xf32>
    %522 = vector.extract_strided_slice %502 {offsets = [0, 96], sizes = [2, 32], strides = [1, 1]} : vector<2x128xf32> to vector<2x32xf32>
    %523 = arith.negf %522 : vector<2x32xf32>
    %524 = math.exp %523 : vector<2x32xf32>
    %cst_105 = arith.constant 1.000000e+00 : f32
    %525 = vector.broadcast %cst_105 : f32 to vector<2x32xf32>
    %526 = arith.addf %525, %524 : vector<2x32xf32>
    %527 = arith.divf %525, %526 : vector<2x32xf32>
    %528 = arith.mulf %519, %455 : vector<2x32xf32>
    %529 = arith.mulf %513, %521 : vector<2x32xf32>
    %530 = arith.addf %528, %529 : vector<2x32xf32>
    %531 = math.tanh %530 : vector<2x32xf32>
    %532 = arith.mulf %527, %531 : vector<2x32xf32>
    %533 = vector.broadcast %506 : vector<2x1xf32> to vector<2x32xf32>
    %534 = arith.mulf %532, %533 : vector<2x32xf32>
    %c5_106 = arith.constant 5 : index
    %c0_107 = arith.constant 0 : index
    %c0_108 = arith.constant 0 : index
    %535 = vector.load %arg16[%c5_106, %c0_107, %c0_108] : memref<8x2x32xf32, #tpu.memory_space<vmem>>, vector<1x2x32xf32>
    %536 = vector.shape_cast %535 : vector<1x2x32xf32> to vector<2x32xf32>
    %537 = vector.shape_cast %534 : vector<2x32xf32> to vector<1x2x32xf32>
    tpu.vector_store %arg16[%c5_106, %c0_107, %c0_108], %537 {strides = array<i32>} : memref<8x2x32xf32, #tpu.memory_space<vmem>>, vector<1x2x32xf32>,
    %538 = vector.broadcast %506 : vector<2x1xf32> to vector<2x32xf32>
    %539 = arith.mulf %538, %532 : vector<2x32xf32>
    %cst_109 = arith.constant 1.000000e+00 : f32
    %540 = vector.broadcast %cst_109 : f32 to vector<2x1xf32>
    %541 = arith.subf %540, %506 : vector<2x1xf32>
    %542 = vector.broadcast %541 : vector<2x1xf32> to vector<2x32xf32>
    %543 = arith.mulf %542, %448 : vector<2x32xf32>
    %544 = arith.addf %539, %543 : vector<2x32xf32>
    %545 = vector.broadcast %506 : vector<2x1xf32> to vector<2x32xf32>
    %546 = arith.mulf %545, %530 : vector<2x32xf32>
    %cst_110 = arith.constant 1.000000e+00 : f32
    %547 = vector.broadcast %cst_110 : f32 to vector<2x1xf32>
    %548 = arith.subf %547, %506 : vector<2x1xf32>
    %549 = vector.broadcast %548 : vector<2x1xf32> to vector<2x32xf32>
    %550 = arith.mulf %549, %455 : vector<2x32xf32>
    %551 = arith.addf %546, %550 : vector<2x32xf32>
    %552 = vector.extract_strided_slice %505 {offsets = [0, 0], sizes = [2, 32], strides = [1, 1]} : vector<2x128xf32> to vector<2x32xf32>
    %553 = arith.negf %552 : vector<2x32xf32>
    %554 = math.exp %553 : vector<2x32xf32>
    %cst_111 = arith.constant 1.000000e+00 : f32
    %555 = vector.broadcast %cst_111 : f32 to vector<2x32xf32>
    %556 = arith.addf %555, %554 : vector<2x32xf32>
    %557 = arith.divf %555, %556 : vector<2x32xf32>
    %558 = vector.extract_strided_slice %505 {offsets = [0, 32], sizes = [2, 32], strides = [1, 1]} : vector<2x128xf32> to vector<2x32xf32>
    %559 = arith.negf %558 : vector<2x32xf32>
    %560 = math.exp %559 : vector<2x32xf32>
    %cst_112 = arith.constant 1.000000e+00 : f32
    %561 = vector.broadcast %cst_112 : f32 to vector<2x32xf32>
    %562 = arith.addf %561, %560 : vector<2x32xf32>
    %563 = arith.divf %561, %562 : vector<2x32xf32>
    %564 = vector.extract_strided_slice %505 {offsets = [0, 64], sizes = [2, 32], strides = [1, 1]} : vector<2x128xf32> to vector<2x32xf32>
    %565 = math.tanh %564 : vector<2x32xf32>
    %566 = vector.extract_strided_slice %505 {offsets = [0, 96], sizes = [2, 32], strides = [1, 1]} : vector<2x128xf32> to vector<2x32xf32>
    %567 = arith.negf %566 : vector<2x32xf32>
    %568 = math.exp %567 : vector<2x32xf32>
    %cst_113 = arith.constant 1.000000e+00 : f32
    %569 = vector.broadcast %cst_113 : f32 to vector<2x32xf32>
    %570 = arith.addf %569, %568 : vector<2x32xf32>
    %571 = arith.divf %569, %570 : vector<2x32xf32>
    %572 = arith.mulf %563, %499 : vector<2x32xf32>
    %573 = arith.mulf %557, %565 : vector<2x32xf32>
    %574 = arith.addf %572, %573 : vector<2x32xf32>
    %575 = math.tanh %574 : vector<2x32xf32>
    %576 = arith.mulf %571, %575 : vector<2x32xf32>
    %577 = vector.broadcast %507 : vector<2x1xf32> to vector<2x32xf32>
    %578 = arith.mulf %576, %577 : vector<2x32xf32>
    %c2_114 = arith.constant 2 : index
    %c0_115 = arith.constant 0 : index
    %c0_116 = arith.constant 0 : index
    %579 = vector.load %arg17[%c2_114, %c0_115, %c0_116] : memref<8x2x32xf32, #tpu.memory_space<vmem>>, vector<1x2x32xf32>
    %580 = vector.shape_cast %579 : vector<1x2x32xf32> to vector<2x32xf32>
    %581 = vector.shape_cast %578 : vector<2x32xf32> to vector<1x2x32xf32>
    tpu.vector_store %arg17[%c2_114, %c0_115, %c0_116], %581 {strides = array<i32>} : memref<8x2x32xf32, #tpu.memory_space<vmem>>, vector<1x2x32xf32>,
    %582 = vector.broadcast %507 : vector<2x1xf32> to vector<2x32xf32>
    %583 = arith.mulf %582, %576 : vector<2x32xf32>
    %cst_117 = arith.constant 1.000000e+00 : f32
    %584 = vector.broadcast %cst_117 : f32 to vector<2x1xf32>
    %585 = arith.subf %584, %507 : vector<2x1xf32>
    %586 = vector.broadcast %585 : vector<2x1xf32> to vector<2x32xf32>
    %587 = arith.mulf %586, %492 : vector<2x32xf32>
    %588 = arith.addf %583, %587 : vector<2x32xf32>
    %589 = vector.broadcast %507 : vector<2x1xf32> to vector<2x32xf32>
    %590 = arith.mulf %589, %574 : vector<2x32xf32>
    %cst_118 = arith.constant 1.000000e+00 : f32
    %591 = vector.broadcast %cst_118 : f32 to vector<2x1xf32>
    %592 = arith.subf %591, %507 : vector<2x1xf32>
    %593 = vector.broadcast %592 : vector<2x1xf32> to vector<2x32xf32>
    %594 = arith.mulf %593, %499 : vector<2x32xf32>
    %595 = arith.addf %590, %594 : vector<2x32xf32>
    %596 = vector.extract_strided_slice %12 {offsets = [12, 0], sizes = [2, 128], strides = [1, 1]} : vector<16x256xf32> to vector<2x128xf32>
    %cst_119 = arith.constant dense<0.000000e+00> : vector<2x128xf32>
    %597 = tpu.matmul %544, %14, %cst_119 {dimension_numbers = #tpu.dot_dimension_numbers<[1], [0], [0], [1], [0, 0, 1, 1], [], []>} : vector<2x32xf32>, vector<32x128xf32>, vector<2x128xf32> -> vector<2x128xf32>
    %598 = arith.addf %596, %597 : vector<2x128xf32>
    %599 = vector.extract_strided_slice %12 {offsets = [2, 128], sizes = [2, 128], strides = [1, 1]} : vector<16x256xf32> to vector<2x128xf32>
    %cst_120 = arith.constant dense<0.000000e+00> : vector<2x128xf32>
    %600 = tpu.matmul %588, %15, %cst_120 {dimension_numbers = #tpu.dot_dimension_numbers<[1], [0], [0], [1], [0, 0, 1, 1], [], []>} : vector<2x32xf32>, vector<32x128xf32>, vector<2x128xf32> -> vector<2x128xf32>
    %601 = arith.addf %599, %600 : vector<2x128xf32>
    %602 = vector.extract_strided_slice %13 {offsets = [0, 6], sizes = [2, 1], strides = [1, 1]} : vector<2x8xf32> to vector<2x1xf32>
    %603 = vector.extract_strided_slice %13 {offsets = [0, 1], sizes = [2, 1], strides = [1, 1]} : vector<2x8xf32> to vector<2x1xf32>
    %604 = vector.extract_strided_slice %598 {offsets = [0, 0], sizes = [2, 32], strides = [1, 1]} : vector<2x128xf32> to vector<2x32xf32>
    %605 = arith.negf %604 : vector<2x32xf32>
    %606 = math.exp %605 : vector<2x32xf32>
    %cst_121 = arith.constant 1.000000e+00 : f32
    %607 = vector.broadcast %cst_121 : f32 to vector<2x32xf32>
    %608 = arith.addf %607, %606 : vector<2x32xf32>
    %609 = arith.divf %607, %608 : vector<2x32xf32>
    %610 = vector.extract_strided_slice %598 {offsets = [0, 32], sizes = [2, 32], strides = [1, 1]} : vector<2x128xf32> to vector<2x32xf32>
    %611 = arith.negf %610 : vector<2x32xf32>
    %612 = math.exp %611 : vector<2x32xf32>
    %cst_122 = arith.constant 1.000000e+00 : f32
    %613 = vector.broadcast %cst_122 : f32 to vector<2x32xf32>
    %614 = arith.addf %613, %612 : vector<2x32xf32>
    %615 = arith.divf %613, %614 : vector<2x32xf32>
    %616 = vector.extract_strided_slice %598 {offsets = [0, 64], sizes = [2, 32], strides = [1, 1]} : vector<2x128xf32> to vector<2x32xf32>
    %617 = math.tanh %616 : vector<2x32xf32>
    %618 = vector.extract_strided_slice %598 {offsets = [0, 96], sizes = [2, 32], strides = [1, 1]} : vector<2x128xf32> to vector<2x32xf32>
    %619 = arith.negf %618 : vector<2x32xf32>
    %620 = math.exp %619 : vector<2x32xf32>
    %cst_123 = arith.constant 1.000000e+00 : f32
    %621 = vector.broadcast %cst_123 : f32 to vector<2x32xf32>
    %622 = arith.addf %621, %620 : vector<2x32xf32>
    %623 = arith.divf %621, %622 : vector<2x32xf32>
    %624 = arith.mulf %615, %551 : vector<2x32xf32>
    %625 = arith.mulf %609, %617 : vector<2x32xf32>
    %626 = arith.addf %624, %625 : vector<2x32xf32>
    %627 = math.tanh %626 : vector<2x32xf32>
    %628 = arith.mulf %623, %627 : vector<2x32xf32>
    %629 = vector.broadcast %602 : vector<2x1xf32> to vector<2x32xf32>
    %630 = arith.mulf %628, %629 : vector<2x32xf32>
    %c6_124 = arith.constant 6 : index
    %c0_125 = arith.constant 0 : index
    %c0_126 = arith.constant 0 : index
    %631 = vector.load %arg16[%c6_124, %c0_125, %c0_126] : memref<8x2x32xf32, #tpu.memory_space<vmem>>, vector<1x2x32xf32>
    %632 = vector.shape_cast %631 : vector<1x2x32xf32> to vector<2x32xf32>
    %633 = vector.shape_cast %630 : vector<2x32xf32> to vector<1x2x32xf32>
    tpu.vector_store %arg16[%c6_124, %c0_125, %c0_126], %633 {strides = array<i32>} : memref<8x2x32xf32, #tpu.memory_space<vmem>>, vector<1x2x32xf32>,
    %634 = vector.broadcast %602 : vector<2x1xf32> to vector<2x32xf32>
    %635 = arith.mulf %634, %628 : vector<2x32xf32>
    %cst_127 = arith.constant 1.000000e+00 : f32
    %636 = vector.broadcast %cst_127 : f32 to vector<2x1xf32>
    %637 = arith.subf %636, %602 : vector<2x1xf32>
    %638 = vector.broadcast %637 : vector<2x1xf32> to vector<2x32xf32>
    %639 = arith.mulf %638, %544 : vector<2x32xf32>
    %640 = arith.addf %635, %639 : vector<2x32xf32>
    %641 = vector.broadcast %602 : vector<2x1xf32> to vector<2x32xf32>
    %642 = arith.mulf %641, %626 : vector<2x32xf32>
    %cst_128 = arith.constant 1.000000e+00 : f32
    %643 = vector.broadcast %cst_128 : f32 to vector<2x1xf32>
    %644 = arith.subf %643, %602 : vector<2x1xf32>
    %645 = vector.broadcast %644 : vector<2x1xf32> to vector<2x32xf32>
    %646 = arith.mulf %645, %551 : vector<2x32xf32>
    %647 = arith.addf %642, %646 : vector<2x32xf32>
    %648 = vector.extract_strided_slice %601 {offsets = [0, 0], sizes = [2, 32], strides = [1, 1]} : vector<2x128xf32> to vector<2x32xf32>
    %649 = arith.negf %648 : vector<2x32xf32>
    %650 = math.exp %649 : vector<2x32xf32>
    %cst_129 = arith.constant 1.000000e+00 : f32
    %651 = vector.broadcast %cst_129 : f32 to vector<2x32xf32>
    %652 = arith.addf %651, %650 : vector<2x32xf32>
    %653 = arith.divf %651, %652 : vector<2x32xf32>
    %654 = vector.extract_strided_slice %601 {offsets = [0, 32], sizes = [2, 32], strides = [1, 1]} : vector<2x128xf32> to vector<2x32xf32>
    %655 = arith.negf %654 : vector<2x32xf32>
    %656 = math.exp %655 : vector<2x32xf32>
    %cst_130 = arith.constant 1.000000e+00 : f32
    %657 = vector.broadcast %cst_130 : f32 to vector<2x32xf32>
    %658 = arith.addf %657, %656 : vector<2x32xf32>
    %659 = arith.divf %657, %658 : vector<2x32xf32>
    %660 = vector.extract_strided_slice %601 {offsets = [0, 64], sizes = [2, 32], strides = [1, 1]} : vector<2x128xf32> to vector<2x32xf32>
    %661 = math.tanh %660 : vector<2x32xf32>
    %662 = vector.extract_strided_slice %601 {offsets = [0, 96], sizes = [2, 32], strides = [1, 1]} : vector<2x128xf32> to vector<2x32xf32>
    %663 = arith.negf %662 : vector<2x32xf32>
    %664 = math.exp %663 : vector<2x32xf32>
    %cst_131 = arith.constant 1.000000e+00 : f32
    %665 = vector.broadcast %cst_131 : f32 to vector<2x32xf32>
    %666 = arith.addf %665, %664 : vector<2x32xf32>
    %667 = arith.divf %665, %666 : vector<2x32xf32>
    %668 = arith.mulf %659, %595 : vector<2x32xf32>
    %669 = arith.mulf %653, %661 : vector<2x32xf32>
    %670 = arith.addf %668, %669 : vector<2x32xf32>
    %671 = math.tanh %670 : vector<2x32xf32>
    %672 = arith.mulf %667, %671 : vector<2x32xf32>
    %673 = vector.broadcast %603 : vector<2x1xf32> to vector<2x32xf32>
    %674 = arith.mulf %672, %673 : vector<2x32xf32>
    %c1_132 = arith.constant 1 : index
    %c0_133 = arith.constant 0 : index
    %c0_134 = arith.constant 0 : index
    %675 = vector.load %arg17[%c1_132, %c0_133, %c0_134] : memref<8x2x32xf32, #tpu.memory_space<vmem>>, vector<1x2x32xf32>
    %676 = vector.shape_cast %675 : vector<1x2x32xf32> to vector<2x32xf32>
    %677 = vector.shape_cast %674 : vector<2x32xf32> to vector<1x2x32xf32>
    tpu.vector_store %arg17[%c1_132, %c0_133, %c0_134], %677 {strides = array<i32>} : memref<8x2x32xf32, #tpu.memory_space<vmem>>, vector<1x2x32xf32>,
    %678 = vector.broadcast %603 : vector<2x1xf32> to vector<2x32xf32>
    %679 = arith.mulf %678, %672 : vector<2x32xf32>
    %cst_135 = arith.constant 1.000000e+00 : f32
    %680 = vector.broadcast %cst_135 : f32 to vector<2x1xf32>
    %681 = arith.subf %680, %603 : vector<2x1xf32>
    %682 = vector.broadcast %681 : vector<2x1xf32> to vector<2x32xf32>
    %683 = arith.mulf %682, %588 : vector<2x32xf32>
    %684 = arith.addf %679, %683 : vector<2x32xf32>
    %685 = vector.broadcast %603 : vector<2x1xf32> to vector<2x32xf32>
    %686 = arith.mulf %685, %670 : vector<2x32xf32>
    %cst_136 = arith.constant 1.000000e+00 : f32
    %687 = vector.broadcast %cst_136 : f32 to vector<2x1xf32>
    %688 = arith.subf %687, %603 : vector<2x1xf32>
    %689 = vector.broadcast %688 : vector<2x1xf32> to vector<2x32xf32>
    %690 = arith.mulf %689, %595 : vector<2x32xf32>
    %691 = arith.addf %686, %690 : vector<2x32xf32>
    %692 = vector.extract_strided_slice %12 {offsets = [14, 0], sizes = [2, 128], strides = [1, 1]} : vector<16x256xf32> to vector<2x128xf32>
    %cst_137 = arith.constant dense<0.000000e+00> : vector<2x128xf32>
    %693 = tpu.matmul %640, %14, %cst_137 {dimension_numbers = #tpu.dot_dimension_numbers<[1], [0], [0], [1], [0, 0, 1, 1], [], []>} : vector<2x32xf32>, vector<32x128xf32>, vector<2x128xf32> -> vector<2x128xf32>
    %694 = arith.addf %692, %693 : vector<2x128xf32>
    %695 = vector.extract_strided_slice %12 {offsets = [0, 128], sizes = [2, 128], strides = [1, 1]} : vector<16x256xf32> to vector<2x128xf32>
    %cst_138 = arith.constant dense<0.000000e+00> : vector<2x128xf32>
    %696 = tpu.matmul %684, %15, %cst_138 {dimension_numbers = #tpu.dot_dimension_numbers<[1], [0], [0], [1], [0, 0, 1, 1], [], []>} : vector<2x32xf32>, vector<32x128xf32>, vector<2x128xf32> -> vector<2x128xf32>
    %697 = arith.addf %695, %696 : vector<2x128xf32>
    %698 = vector.extract_strided_slice %13 {offsets = [0, 7], sizes = [2, 1], strides = [1, 1]} : vector<2x8xf32> to vector<2x1xf32>
    %699 = vector.extract_strided_slice %13 {offsets = [0, 0], sizes = [2, 1], strides = [1, 1]} : vector<2x8xf32> to vector<2x1xf32>
    %700 = vector.extract_strided_slice %694 {offsets = [0, 0], sizes = [2, 32], strides = [1, 1]} : vector<2x128xf32> to vector<2x32xf32>
    %701 = arith.negf %700 : vector<2x32xf32>
    %702 = math.exp %701 : vector<2x32xf32>
    %cst_139 = arith.constant 1.000000e+00 : f32
    %703 = vector.broadcast %cst_139 : f32 to vector<2x32xf32>
    %704 = arith.addf %703, %702 : vector<2x32xf32>
    %705 = arith.divf %703, %704 : vector<2x32xf32>
    %706 = vector.extract_strided_slice %694 {offsets = [0, 32], sizes = [2, 32], strides = [1, 1]} : vector<2x128xf32> to vector<2x32xf32>
    %707 = arith.negf %706 : vector<2x32xf32>
    %708 = math.exp %707 : vector<2x32xf32>
    %cst_140 = arith.constant 1.000000e+00 : f32
    %709 = vector.broadcast %cst_140 : f32 to vector<2x32xf32>
    %710 = arith.addf %709, %708 : vector<2x32xf32>
    %711 = arith.divf %709, %710 : vector<2x32xf32>
    %712 = vector.extract_strided_slice %694 {offsets = [0, 64], sizes = [2, 32], strides = [1, 1]} : vector<2x128xf32> to vector<2x32xf32>
    %713 = math.tanh %712 : vector<2x32xf32>
    %714 = vector.extract_strided_slice %694 {offsets = [0, 96], sizes = [2, 32], strides = [1, 1]} : vector<2x128xf32> to vector<2x32xf32>
    %715 = arith.negf %714 : vector<2x32xf32>
    %716 = math.exp %715 : vector<2x32xf32>
    %cst_141 = arith.constant 1.000000e+00 : f32
    %717 = vector.broadcast %cst_141 : f32 to vector<2x32xf32>
    %718 = arith.addf %717, %716 : vector<2x32xf32>
    %719 = arith.divf %717, %718 : vector<2x32xf32>
    %720 = arith.mulf %711, %647 : vector<2x32xf32>
    %721 = arith.mulf %705, %713 : vector<2x32xf32>
    %722 = arith.addf %720, %721 : vector<2x32xf32>
    %723 = math.tanh %722 : vector<2x32xf32>
    %724 = arith.mulf %719, %723 : vector<2x32xf32>
    %725 = vector.broadcast %698 : vector<2x1xf32> to vector<2x32xf32>
    %726 = arith.mulf %724, %725 : vector<2x32xf32>
    %c7_142 = arith.constant 7 : index
    %c0_143 = arith.constant 0 : index
    %c0_144 = arith.constant 0 : index
    %727 = vector.load %arg16[%c7_142, %c0_143, %c0_144] : memref<8x2x32xf32, #tpu.memory_space<vmem>>, vector<1x2x32xf32>
    %728 = vector.shape_cast %727 : vector<1x2x32xf32> to vector<2x32xf32>
    %729 = vector.shape_cast %726 : vector<2x32xf32> to vector<1x2x32xf32>
    tpu.vector_store %arg16[%c7_142, %c0_143, %c0_144], %729 {strides = array<i32>} : memref<8x2x32xf32, #tpu.memory_space<vmem>>, vector<1x2x32xf32>,
    %730 = vector.extract_strided_slice %697 {offsets = [0, 0], sizes = [2, 32], strides = [1, 1]} : vector<2x128xf32> to vector<2x32xf32>
    %731 = arith.negf %730 : vector<2x32xf32>
    %732 = math.exp %731 : vector<2x32xf32>
    %cst_145 = arith.constant 1.000000e+00 : f32
    %733 = vector.broadcast %cst_145 : f32 to vector<2x32xf32>
    %734 = arith.addf %733, %732 : vector<2x32xf32>
    %735 = arith.divf %733, %734 : vector<2x32xf32>
    %736 = vector.extract_strided_slice %697 {offsets = [0, 32], sizes = [2, 32], strides = [1, 1]} : vector<2x128xf32> to vector<2x32xf32>
    %737 = arith.negf %736 : vector<2x32xf32>
    %738 = math.exp %737 : vector<2x32xf32>
    %cst_146 = arith.constant 1.000000e+00 : f32
    %739 = vector.broadcast %cst_146 : f32 to vector<2x32xf32>
    %740 = arith.addf %739, %738 : vector<2x32xf32>
    %741 = arith.divf %739, %740 : vector<2x32xf32>
    %742 = vector.extract_strided_slice %697 {offsets = [0, 64], sizes = [2, 32], strides = [1, 1]} : vector<2x128xf32> to vector<2x32xf32>
    %743 = math.tanh %742 : vector<2x32xf32>
    %744 = vector.extract_strided_slice %697 {offsets = [0, 96], sizes = [2, 32], strides = [1, 1]} : vector<2x128xf32> to vector<2x32xf32>
    %745 = arith.negf %744 : vector<2x32xf32>
    %746 = math.exp %745 : vector<2x32xf32>
    %cst_147 = arith.constant 1.000000e+00 : f32
    %747 = vector.broadcast %cst_147 : f32 to vector<2x32xf32>
    %748 = arith.addf %747, %746 : vector<2x32xf32>
    %749 = arith.divf %747, %748 : vector<2x32xf32>
    %750 = arith.mulf %741, %691 : vector<2x32xf32>
    %751 = arith.mulf %735, %743 : vector<2x32xf32>
    %752 = arith.addf %750, %751 : vector<2x32xf32>
    %753 = math.tanh %752 : vector<2x32xf32>
    %754 = arith.mulf %749, %753 : vector<2x32xf32>
    %755 = vector.broadcast %699 : vector<2x1xf32> to vector<2x32xf32>
    %756 = arith.mulf %754, %755 : vector<2x32xf32>
    %c0_148 = arith.constant 0 : index
    %c0_149 = arith.constant 0 : index
    %c0_150 = arith.constant 0 : index
    %757 = vector.load %arg17[%c0_148, %c0_149, %c0_150] : memref<8x2x32xf32, #tpu.memory_space<vmem>>, vector<1x2x32xf32>
    %758 = vector.shape_cast %757 : vector<1x2x32xf32> to vector<2x32xf32>
    %759 = vector.shape_cast %756 : vector<2x32xf32> to vector<1x2x32xf32>
    tpu.vector_store %arg17[%c0_148, %c0_149, %c0_150], %759 {strides = array<i32>} : memref<8x2x32xf32, #tpu.memory_space<vmem>>, vector<1x2x32xf32>,
    %c0_151 = arith.constant 0 : index
    %c0_152 = arith.constant 0 : index
    %c0_153 = arith.constant 0 : index
    %760 = vector.load %arg16[%c0_151, %c0_152, %c0_153] : memref<8x2x32xf32, #tpu.memory_space<vmem>>, vector<8x2x32xf32>
    %c0_154 = arith.constant 0 : index
    %c0_155 = arith.constant 0 : index
    %c0_156 = arith.constant 0 : index
    %761 = vector.load %arg17[%c0_154, %c0_155, %c0_156] : memref<8x2x32xf32, #tpu.memory_space<vmem>>, vector<8x2x32xf32>
    %762 = vector.extract_strided_slice %760 {offsets = [0, 0, 0], sizes = [8, 1, 32], strides = [1, 1, 1]} : vector<8x2x32xf32> to vector<8x1x32xf32>
    %763 = vector.shape_cast %762 : vector<8x1x32xf32> to vector<8x32xf32>
    %764 = vector.extract_strided_slice %761 {offsets = [0, 0, 0], sizes = [8, 1, 32], strides = [1, 1, 1]} : vector<8x2x32xf32> to vector<8x1x32xf32>
    %765 = vector.shape_cast %764 : vector<8x1x32xf32> to vector<8x32xf32>
    %766 = tpu.concatenate %763, %765 in 1 : vector<8x32xf32>, vector<8x32xf32> -> vector<8x64xf32>
    %767 = vector.extract_strided_slice %760 {offsets = [0, 1, 0], sizes = [8, 1, 32], strides = [1, 1, 1]} : vector<8x2x32xf32> to vector<8x1x32xf32>
    %768 = vector.shape_cast %767 : vector<8x1x32xf32> to vector<8x32xf32>
    %769 = vector.extract_strided_slice %761 {offsets = [0, 1, 0], sizes = [8, 1, 32], strides = [1, 1, 1]} : vector<8x2x32xf32> to vector<8x1x32xf32>
    %770 = vector.shape_cast %769 : vector<8x1x32xf32> to vector<8x32xf32>
    %771 = tpu.concatenate %768, %770 in 1 : vector<8x32xf32>, vector<8x32xf32> -> vector<8x64xf32>
    %772 = tpu.concatenate %766, %771 in 0 : vector<8x64xf32>, vector<8x64xf32> -> vector<16x64xf32>
    %c0_157 = arith.constant 0 : index
    %c0_158 = arith.constant 0 : index
    %773 = vector.load %arg7[%c0_157, %c0_158] : memref<64x896xf32, #tpu.memory_space<vmem>>, vector<64x896xf32>
    %cst_159 = arith.constant dense<0.000000e+00> : vector<16x896xf32>
    %774 = tpu.matmul %772, %773, %cst_159 {dimension_numbers = #tpu.dot_dimension_numbers<[1], [0], [0], [1], [0, 0, 1, 1], [], []>} : vector<16x64xf32>, vector<64x896xf32>, vector<16x896xf32> -> vector<16x896xf32>
    %c0_160 = arith.constant 0 : index
    %c0_161 = arith.constant 0 : index
    %775 = vector.load %arg8[%c0_160, %c0_161] : memref<1x896xf32, #tpu.memory_space<vmem>>, vector<1x896xf32>
    %776 = vector.broadcast %775 : vector<1x896xf32> to vector<16x896xf32>
    %777 = arith.addf %774, %776 : vector<16x896xf32>
    %cst_162 = arith.constant 0.000000e+00 : f32
    %778 = vector.broadcast %cst_162 : f32 to vector<16x896xf32>
    %779 = arith.maximumf %777, %778 : vector<16x896xf32>
    %780 = vector.extract_strided_slice %777 {offsets = [0, 768], sizes = [16, 4], strides = [1, 1]} : vector<16x896xf32> to vector<16x4xf32>
    %781 = vector.extract_strided_slice %780 {offsets = [0, 0], sizes = [8, 4], strides = [1, 1]} : vector<16x4xf32> to vector<8x4xf32>
    %cst_163 = arith.constant dense<0.000000e+00> : vector<4xf32>
    %782 = vector.multi_reduction <add>, %781, %cst_163 [0] : vector<8x4xf32> to vector<4xf32>
    %783 = vector.shape_cast %782 : vector<4xf32> to vector<1x4xf32>
    %cst_164 = arith.constant 8.000000e+00 : f32
    %784 = vector.broadcast %cst_164 : f32 to vector<1x4xf32>
    %785 = arith.divf %783, %784 : vector<1x4xf32>
    %786 = vector.extract_strided_slice %780 {offsets = [8, 0], sizes = [8, 4], strides = [1, 1]} : vector<16x4xf32> to vector<8x4xf32>
    %cst_165 = arith.constant dense<0.000000e+00> : vector<4xf32>
    %787 = vector.multi_reduction <add>, %786, %cst_165 [0] : vector<8x4xf32> to vector<4xf32>
    %788 = vector.shape_cast %787 : vector<4xf32> to vector<1x4xf32>
    %cst_166 = arith.constant 8.000000e+00 : f32
    %789 = vector.broadcast %cst_166 : f32 to vector<1x4xf32>
    %790 = arith.divf %788, %789 : vector<1x4xf32>
    %791 = tpu.concatenate %785, %790 in 0 : vector<1x4xf32>, vector<1x4xf32> -> vector<2x4xf32>
    %c0_167 = arith.constant 0 : index
    %c0_168 = arith.constant 0 : index
    %792 = vector.load %arg14[%c0_167, %c0_168] : memref<2x4xf32, #tpu.memory_space<vmem>>, vector<2x4xf32>
    tpu.vector_store %arg14[%c0_167, %c0_168], %791 {strides = array<i32>} : memref<2x4xf32, #tpu.memory_space<vmem>>, vector<2x4xf32>,
    %c0_169 = arith.constant 0 : index
    %c0_170 = arith.constant 0 : index
    %793 = vector.load %arg9[%c0_169, %c0_170] : memref<896x128xf32, #tpu.memory_space<vmem>>, vector<896x128xf32>
    %cst_171 = arith.constant dense<0.000000e+00> : vector<16x128xf32>
    %794 = tpu.matmul %779, %793, %cst_171 {dimension_numbers = #tpu.dot_dimension_numbers<[1], [0], [0], [1], [0, 0, 1, 1], [], []>} : vector<16x896xf32>, vector<896x128xf32>, vector<16x128xf32> -> vector<16x128xf32>
    %c0_172 = arith.constant 0 : index
    %c0_173 = arith.constant 0 : index
    %795 = vector.load %arg10[%c0_172, %c0_173] : memref<1x128xf32, #tpu.memory_space<vmem>>, vector<1x128xf32>
    %796 = vector.broadcast %795 : vector<1x128xf32> to vector<16x128xf32>
    %797 = arith.addf %794, %796 : vector<16x128xf32>
    %c0_174 = arith.constant 0 : index
    %c0_175 = arith.constant 0 : index
    %798 = vector.load %arg13[%c0_174, %c0_175] : memref<16x128xf32, #tpu.memory_space<vmem>>, vector<16x128xf32>
    tpu.vector_store %arg13[%c0_174, %c0_175], %797 {strides = array<i32>} : memref<16x128xf32, #tpu.memory_space<vmem>>, vector<16x128xf32>,
    %799 = vector.extract_strided_slice %779 {offsets = [0, 0], sizes = [16, 128], strides = [1, 1]} : vector<16x896xf32> to vector<16x128xf32>
    %800 = vector.extract_strided_slice %779 {offsets = [0, 256], sizes = [16, 128], strides = [1, 1]} : vector<16x896xf32> to vector<16x128xf32>
    %c0_176 = arith.constant 0 : index
    %c0_177 = arith.constant 0 : index
    %801 = vector.load %arg11[%c0_176, %c0_177] : memref<128x896xf32, #tpu.memory_space<vmem>>, vector<128x896xf32>
    %cst_178 = arith.constant dense<0.000000e+00> : vector<16x896xf32>
    %802 = tpu.matmul %799, %801, %cst_178 {dimension_numbers = #tpu.dot_dimension_numbers<[1], [0], [0], [1], [0, 0, 1, 1], [], []>} : vector<16x128xf32>, vector<128x896xf32>, vector<16x896xf32> -> vector<16x896xf32>
    %c0_179 = arith.constant 0 : index
    %c0_180 = arith.constant 0 : index
    %803 = vector.load %arg12[%c0_179, %c0_180] : memref<1x896xf32, #tpu.memory_space<vmem>>, vector<1x896xf32>
    %804 = vector.broadcast %803 : vector<1x896xf32> to vector<16x896xf32>
    %805 = arith.addf %802, %804 : vector<16x896xf32>
    %806 = vector.extract_strided_slice %800 {offsets = [0, 0], sizes = [8, 128], strides = [1, 1]} : vector<16x128xf32> to vector<8x128xf32>
    %807 = vector.extract_strided_slice %805 {offsets = [0, 0], sizes = [8, 128], strides = [1, 1]} : vector<16x896xf32> to vector<8x128xf32>
    %cst_181 = arith.constant dense<0.000000e+00> : vector<8x8xf32>
    %808 = tpu.matmul %806, %807, %cst_181 {dimension_numbers = #tpu.dot_dimension_numbers<[1], [1], [0], [0], [0, 0, 1, 0], [], []>} : vector<8x128xf32>, vector<8x128xf32>, vector<8x8xf32> -> vector<8x8xf32>
    %809 = vector.extract_strided_slice %805 {offsets = [0, 128], sizes = [8, 128], strides = [1, 1]} : vector<16x896xf32> to vector<8x128xf32>
    %cst_182 = arith.constant dense<0.000000e+00> : vector<8x8xf32>
    %810 = tpu.matmul %806, %809, %cst_182 {dimension_numbers = #tpu.dot_dimension_numbers<[1], [1], [0], [0], [0, 0, 1, 0], [], []>} : vector<8x128xf32>, vector<8x128xf32>, vector<8x8xf32> -> vector<8x8xf32>
    %811 = vector.extract_strided_slice %805 {offsets = [0, 256], sizes = [8, 128], strides = [1, 1]} : vector<16x896xf32> to vector<8x128xf32>
    %cst_183 = arith.constant dense<0.000000e+00> : vector<8x8xf32>
    %812 = tpu.matmul %806, %811, %cst_183 {dimension_numbers = #tpu.dot_dimension_numbers<[1], [1], [0], [0], [0, 0, 1, 0], [], []>} : vector<8x128xf32>, vector<8x128xf32>, vector<8x8xf32> -> vector<8x8xf32>
    %813 = vector.extract_strided_slice %805 {offsets = [0, 384], sizes = [8, 128], strides = [1, 1]} : vector<16x896xf32> to vector<8x128xf32>
    %cst_184 = arith.constant dense<0.000000e+00> : vector<8x8xf32>
    %814 = tpu.matmul %806, %813, %cst_184 {dimension_numbers = #tpu.dot_dimension_numbers<[1], [1], [0], [0], [0, 0, 1, 0], [], []>} : vector<8x128xf32>, vector<8x128xf32>, vector<8x8xf32> -> vector<8x8xf32>
    %815 = vector.extract_strided_slice %805 {offsets = [0, 512], sizes = [8, 128], strides = [1, 1]} : vector<16x896xf32> to vector<8x128xf32>
    %cst_185 = arith.constant dense<0.000000e+00> : vector<8x8xf32>
    %816 = tpu.matmul %806, %815, %cst_185 {dimension_numbers = #tpu.dot_dimension_numbers<[1], [1], [0], [0], [0, 0, 1, 0], [], []>} : vector<8x128xf32>, vector<8x128xf32>, vector<8x8xf32> -> vector<8x8xf32>
    %817 = vector.extract_strided_slice %805 {offsets = [0, 640], sizes = [8, 128], strides = [1, 1]} : vector<16x896xf32> to vector<8x128xf32>
    %cst_186 = arith.constant dense<0.000000e+00> : vector<8x8xf32>
    %818 = tpu.matmul %806, %817, %cst_186 {dimension_numbers = #tpu.dot_dimension_numbers<[1], [1], [0], [0], [0, 0, 1, 0], [], []>} : vector<8x128xf32>, vector<8x128xf32>, vector<8x8xf32> -> vector<8x8xf32>
    %819 = vector.extract_strided_slice %805 {offsets = [0, 768], sizes = [8, 128], strides = [1, 1]} : vector<16x896xf32> to vector<8x128xf32>
    %cst_187 = arith.constant dense<0.000000e+00> : vector<8x8xf32>
    %820 = tpu.matmul %806, %819, %cst_187 {dimension_numbers = #tpu.dot_dimension_numbers<[1], [1], [0], [0], [0, 0, 1, 0], [], []>} : vector<8x128xf32>, vector<8x128xf32>, vector<8x8xf32> -> vector<8x8xf32>
    %821 = tpu.concatenate %808, %810, %812, %814, %816, %818, %820 in 1 : vector<8x8xf32>, vector<8x8xf32>, vector<8x8xf32>, vector<8x8xf32>, vector<8x8xf32>, vector<8x8xf32>, vector<8x8xf32> -> vector<8x56xf32>
    %822 = vector.extract_strided_slice %800 {offsets = [8, 0], sizes = [8, 128], strides = [1, 1]} : vector<16x128xf32> to vector<8x128xf32>
    %823 = vector.extract_strided_slice %805 {offsets = [8, 0], sizes = [8, 128], strides = [1, 1]} : vector<16x896xf32> to vector<8x128xf32>
    %cst_188 = arith.constant dense<0.000000e+00> : vector<8x8xf32>
    %824 = tpu.matmul %822, %823, %cst_188 {dimension_numbers = #tpu.dot_dimension_numbers<[1], [1], [0], [0], [0, 0, 1, 0], [], []>} : vector<8x128xf32>, vector<8x128xf32>, vector<8x8xf32> -> vector<8x8xf32>
    %825 = vector.extract_strided_slice %805 {offsets = [8, 128], sizes = [8, 128], strides = [1, 1]} : vector<16x896xf32> to vector<8x128xf32>
    %cst_189 = arith.constant dense<0.000000e+00> : vector<8x8xf32>
    %826 = tpu.matmul %822, %825, %cst_189 {dimension_numbers = #tpu.dot_dimension_numbers<[1], [1], [0], [0], [0, 0, 1, 0], [], []>} : vector<8x128xf32>, vector<8x128xf32>, vector<8x8xf32> -> vector<8x8xf32>
    %827 = vector.extract_strided_slice %805 {offsets = [8, 256], sizes = [8, 128], strides = [1, 1]} : vector<16x896xf32> to vector<8x128xf32>
    %cst_190 = arith.constant dense<0.000000e+00> : vector<8x8xf32>
    %828 = tpu.matmul %822, %827, %cst_190 {dimension_numbers = #tpu.dot_dimension_numbers<[1], [1], [0], [0], [0, 0, 1, 0], [], []>} : vector<8x128xf32>, vector<8x128xf32>, vector<8x8xf32> -> vector<8x8xf32>
    %829 = vector.extract_strided_slice %805 {offsets = [8, 384], sizes = [8, 128], strides = [1, 1]} : vector<16x896xf32> to vector<8x128xf32>
    %cst_191 = arith.constant dense<0.000000e+00> : vector<8x8xf32>
    %830 = tpu.matmul %822, %829, %cst_191 {dimension_numbers = #tpu.dot_dimension_numbers<[1], [1], [0], [0], [0, 0, 1, 0], [], []>} : vector<8x128xf32>, vector<8x128xf32>, vector<8x8xf32> -> vector<8x8xf32>
    %831 = vector.extract_strided_slice %805 {offsets = [8, 512], sizes = [8, 128], strides = [1, 1]} : vector<16x896xf32> to vector<8x128xf32>
    %cst_192 = arith.constant dense<0.000000e+00> : vector<8x8xf32>
    %832 = tpu.matmul %822, %831, %cst_192 {dimension_numbers = #tpu.dot_dimension_numbers<[1], [1], [0], [0], [0, 0, 1, 0], [], []>} : vector<8x128xf32>, vector<8x128xf32>, vector<8x8xf32> -> vector<8x8xf32>
    %833 = vector.extract_strided_slice %805 {offsets = [8, 640], sizes = [8, 128], strides = [1, 1]} : vector<16x896xf32> to vector<8x128xf32>
    %cst_193 = arith.constant dense<0.000000e+00> : vector<8x8xf32>
    %834 = tpu.matmul %822, %833, %cst_193 {dimension_numbers = #tpu.dot_dimension_numbers<[1], [1], [0], [0], [0, 0, 1, 0], [], []>} : vector<8x128xf32>, vector<8x128xf32>, vector<8x8xf32> -> vector<8x8xf32>
    %835 = vector.extract_strided_slice %805 {offsets = [8, 768], sizes = [8, 128], strides = [1, 1]} : vector<16x896xf32> to vector<8x128xf32>
    %cst_194 = arith.constant dense<0.000000e+00> : vector<8x8xf32>
    %836 = tpu.matmul %822, %835, %cst_194 {dimension_numbers = #tpu.dot_dimension_numbers<[1], [1], [0], [0], [0, 0, 1, 0], [], []>} : vector<8x128xf32>, vector<8x128xf32>, vector<8x8xf32> -> vector<8x8xf32>
    %837 = tpu.concatenate %824, %826, %828, %830, %832, %834, %836 in 1 : vector<8x8xf32>, vector<8x8xf32>, vector<8x8xf32>, vector<8x8xf32>, vector<8x8xf32>, vector<8x8xf32>, vector<8x8xf32> -> vector<8x56xf32>
    %838 = tpu.concatenate %821, %837 in 0 : vector<8x56xf32>, vector<8x56xf32> -> vector<16x56xf32>
    %c0_195 = arith.constant 0 : index
    %c0_196 = arith.constant 0 : index
    %839 = vector.load %arg15[%c0_195, %c0_196] : memref<16x56xf32, #tpu.memory_space<vmem>>, vector<16x56xf32>
    tpu.vector_store %arg15[%c0_195, %c0_196], %838 {strides = array<i32>} : memref<16x56xf32, #tpu.memory_space<vmem>>, vector<16x56xf32>,
    return
  }
}

</mosaic_0001>

<bundles_post_ra>
// kernel: ote_forward.1
= control target key start
LH: loop header
LB: loop body
LE: loop exit
PB: predicated region body
PF: predicated region fallthrough
CT: control target
= control target key end

     0   :  { %s7460_s0 = inlined_call_operand.vmem [shape: s32[16,1], index: 0, kind: input, shape index: {}]   ;;  %s7461_s1 = inlined_call_operand.hbm [shape: f32[2,8], index: 1, kind: input, shape index: {}]   ;;  %s7462_s2 = inlined_call_operand.vmem [shape: f32[50,32], index: 2, kind: input, shape index: {}]   ;;  %s7463_s3 = inlined_call_operand.vmem [shape: f32[32,256], index: 3, kind: input, shape index: {}]   ;;  %s7464_s4 = inlined_call_operand.vmem [shape: f32[1,256], index: 4, kind: input, shape index: {}]   ;;  %s7465_s5 = inlined_call_operand.vmem [shape: f32[32,128], index: 5, kind: input, shape index: {}]   ;;  %s7466_s6 = inlined_call_operand.vmem [shape: f32[32,128], index: 6, kind: input, shape index: {}]   ;;  %s7467_s7 = inlined_call_operand.hbm [shape: f32[64,896], index: 7, kind: input, shape index: {}]   ;;  %s7468_s8 = inlined_call_operand.vmem [shape: f32[1,896], index: 8, kind: input, shape index: {}]   ;;  %s7469_s9 = inlined_call_operand.hbm [shape: f32[896,128], index: 9, kind: input, shape index: {}]   ;;  %s7470_s10 = inlined_call_operand.hbm [shape: f32[1,128], index: 10, kind: input, shape index: {}]   ;;  %s7471_s11 = inlined_call_operand.hbm [shape: f32[128,896], index: 11, kind: input, shape index: {}]   ;;  %s7472_s12 = inlined_call_operand.hbm [shape: f32[1,896], index: 12, kind: input, shape index: {}]   ;;  %s7473_s13 = inlined_call_operand.vmem [shape: f32[16,128], index: 13, kind: output, shape index: {0}]   ;;  %s7474_s14 = inlined_call_operand.hbm [shape: f32[2,4], index: 14, kind: output, shape index: {1}]   ;;  %s7475_s15 = inlined_call_operand.vmem [shape: f32[16,56], index: 15, kind: output, shape index: {2}]  }
   0x1   :  { %7477 = sst [smem:[#allocation21_spill]] %s7475_s15 }
   0x2   :  { %21 = vsyncpa [#allocation5], 0 }
   0x3   :  { %22 = vsyncpa [#allocation8], 0 }
   0x4   :  { %23 = vsyncpa [#allocation11], 0 }
   0x5   :  { %24 = vsyncpa [#allocation14], 0 }
   0x6   :  { %25 = vsyncpa [#allocation6], 0  ;;  %s6385_s18 = smov [#allocation7]   ;;  %s6221_s22 = scalar_lea.hbm %s7467_s7, 7168 }
   0x7   :  { %s53_s19 = sshll.u32 %s6385_s18, 4  ;;  %p6222_p0 = scmp.ne.s32.totalorder %s7467_s7, %s6221_s22  ;;  %s54_s19 = int_to_ptr.vmem [resolvable:$true] %s53_s19 }
   0x8   :  { %p6225_p1 = scmp.lt.u32.totalorder %s6221_s22, %s7467_s7 }
   0xa   :  { %p6227_p2 = pnand %p6225_p1, %p6222_p0 }
   0xc   :  { %6230 = shalt.err (!%p6227_p2)
}
   0xd   :  { %s6231_s27 = scalar_lea.vmem %s54_s19, 7168  ;;  %p6236_p4 = scmp.lt.s32.totalorder %s54_s19, %s54_s19 }
   0xe   :  { %p6232_p3 = scmp.ne.s32.totalorder %s54_s19, %s6231_s27  ;;  %p6237_p5 = scmp.lt.s32.totalorder %s6231_s27, %s6231_s27 }
  0x10   :  { %p6238_p6 = por %p6237_p5, %p6236_p4 }
  0x12   :  { %p6239_p7 = pnand %p6238_p6, %p6232_p3 }
  0x14   :  { %6242 = shalt.err (!%p6239_p7)
}
  0x15   :  { %s6386_s28 = smov 896   ;;  %s6387_s29 = smov 56  }
  0x16   :  { %59 = dma.hbm_to_vmem [thread:$0]  %s7467_s7, 7168, %s54_s19, [#allocation8], %s6386_s28, %s6386_s28, %s6387_s29  }
  0x17   :  { %s6388_s17 = smov [#allocation10]   ;;  %s6389_s20 = smov [#allocation4]  }
  0x18   :  { %s80_s18 = sshll.u32 %s6388_s17, 4  ;;  %s34_s21 = sshll.u32 %s6389_s20, 4  ;;  %s81_s18 = int_to_ptr.vmem [resolvable:$true] %s80_s18  ;;  %s35_s21 = int_to_ptr.vmem [resolvable:$true] %s34_s21 }
  0x19   :  { %s6243_s24 = scalar_lea.hbm %s7470_s10, 16 }
  0x1a   :  { %p6244_p8 = scmp.ne.s32.totalorder %s7470_s10, %s6243_s24  ;;  %p6247_p9 = scmp.lt.u32.totalorder %s6243_s24, %s7470_s10 }
  0x1c   :  { %p6249_p10 = pnand %p6247_p9, %p6244_p8 }
  0x1e   :  { %6252 = shalt.err (!%p6249_p10)
}
  0x1f   :  { %s6253_s7 = scalar_lea.vmem %s81_s18, 16  ;;  %s6257_s19 = scalar_lea.vmem %s81_s18, 32 }
  0x20   :  { %p6254_p11 = scmp.ne.s32.totalorder %s81_s18, %s6253_s7  ;;  %p6258_p12 = scmp.lt.s32.totalorder %s81_s18, %s81_s18 }
  0x21   :  { %p6259_p13 = scmp.lt.s32.totalorder %s6257_s19, %s6253_s7 }
  0x23   :  { %p6260_p0 = por %p6259_p13, %p6258_p12 }
  0x25   :  { %p6261_p1 = pnand %p6260_p0, %p6254_p11 }
  0x27   :  { %6264 = shalt.err (!%p6261_p1)
}
  0x28   :  { %83 = dma.hbm_to_vmem [thread:$0]  %s7470_s10, 16, %s81_s18, [#allocation11]  }
  0x29   :  { %s6265_s15 = scalar_lea.hbm %s7461_s1, 32 }
  0x2a   :  { %p6266_p2 = scmp.ne.s32.totalorder %s7461_s1, %s6265_s15  ;;  %p6269_p3 = scmp.lt.u32.totalorder %s6265_s15, %s7461_s1 }
  0x2c   :  { %p6271_p4 = pnand %p6269_p3, %p6266_p2 }
  0x2e   :  { %6274 = shalt.err (!%p6271_p4)
}
  0x2f   :  { %s6275_s26 = scalar_lea.vmem %s35_s21, 32  ;;  %p6280_p6 = scmp.lt.s32.totalorder %s35_s21, %s35_s21 }
  0x30   :  { %p6276_p5 = scmp.ne.s32.totalorder %s35_s21, %s6275_s26  ;;  %p6281_p7 = scmp.lt.s32.totalorder %s6275_s26, %s6275_s26 }
  0x32   :  { %p6282_p8 = por %p6281_p7, %p6280_p6 }
  0x34   :  { %p6283_p9 = pnand %p6282_p8, %p6276_p5 }
  0x36   :  { %6286 = shalt.err (!%p6283_p9)
}
  0x37   :  { %37 = dma.hbm_to_vmem [thread:$0]  %s7461_s1, 32, %s35_s21, [#allocation5]  }
  0x38   :  { %s6390_s27 = smov [#allocation9]   ;;  %s6287_s16 = scalar_lea.hbm %s7469_s9, 14336 }
  0x39   :  { %s67_s7 = sshll.u32 %s6390_s27, 4  ;;  %p6288_p10 = scmp.ne.s32.totalorder %s7469_s9, %s6287_s16  ;;  %s68_s7 = int_to_ptr.vmem [resolvable:$true] %s67_s7 }
  0x3a   :  { %p6291_p11 = scmp.lt.u32.totalorder %s6287_s16, %s7469_s9 }
  0x3c   :  { %p6293_p12 = pnand %p6291_p11, %p6288_p10 }
  0x3e   :  { %6296 = shalt.err (!%p6293_p12)
}
  0x3f   :  { %s6297_s23 = scalar_lea.vmem %s68_s7, 14336  ;;  %p6302_p0 = scmp.lt.s32.totalorder %s68_s7, %s68_s7 }
  0x40   :  { %p6298_p13 = scmp.ne.s32.totalorder %s68_s7, %s6297_s23  ;;  %p6303_p1 = scmp.lt.s32.totalorder %s6297_s23, %s6297_s23 }
  0x42   :  { %p6304_p2 = por %p6303_p1, %p6302_p0 }
  0x44   :  { %p6305_p3 = pnand %p6304_p2, %p6298_p13 }
  0x46   :  { %6308 = shalt.err (!%p6305_p3)
}
  0x47   :  { %s6391_s1 = smov 128   ;;  %s6392_s21 = smov 8  }
  0x48   :  { %73 = dma.hbm_to_vmem [thread:$0]  %s7469_s9, 14336, %s68_s7, [#allocation8], %s6391_s1, %s6391_s1, %s6392_s21  }
  0x49   :  { %s6393_s26 = smov [#allocation12]   ;;  %s6394_s18 = smov [#allocation13]  }
  0x4a   :  { %s89_s10 = sshll.u32 %s6393_s26, 4  ;;  %s102_s27 = sshll.u32 %s6394_s18, 4  ;;  %s90_s10 = int_to_ptr.vmem [resolvable:$true] %s89_s10  ;;  %s103_s27 = int_to_ptr.vmem [resolvable:$true] %s102_s27 }
  0x4b   :  { %s6309_s16 = scalar_lea.hbm %s7471_s11, 14336 }
  0x4c   :  { %p6310_p4 = scmp.ne.s32.totalorder %s7471_s11, %s6309_s16  ;;  %p6313_p5 = scmp.lt.u32.totalorder %s6309_s16, %s7471_s11 }
  0x4e   :  { %p6315_p6 = pnand %p6313_p5, %p6310_p4 }
  0x50   :  { %6318 = shalt.err (!%p6315_p6)
}
  0x51   :  { %s6319_s9 = scalar_lea.vmem %s90_s10, 14336  ;;  %p6324_p8 = scmp.lt.s32.totalorder %s90_s10, %s90_s10 }
  0x52   :  { %p6320_p7 = scmp.ne.s32.totalorder %s90_s10, %s6319_s9  ;;  %p6325_p9 = scmp.lt.s32.totalorder %s6319_s9, %s6319_s9 }
  0x54   :  { %p6326_p10 = por %p6325_p9, %p6324_p8 }
  0x56   :  { %p6327_p11 = pnand %p6326_p10, %p6320_p7 }
  0x58   :  { %6330 = shalt.err (!%p6327_p11)
}
  0x59   :  { %95 = dma.hbm_to_vmem [thread:$0]  %s7471_s11, 14336, %s90_s10, [#allocation11], %s6386_s28, %s6386_s28, %s6387_s29  }
  0x5a   :  { %s6331_s25 = scalar_lea.hbm %s7472_s12, 112 }
  0x5b   :  { %p6332_p12 = scmp.ne.s32.totalorder %s7472_s12, %s6331_s25  ;;  %p6335_p13 = scmp.lt.u32.totalorder %s6331_s25, %s7472_s12 }
  0x5d   :  { %p6337_p0 = pnand %p6335_p13, %p6332_p12 }
  0x5f   :  { %6340 = shalt.err (!%p6337_p0)
}
  0x60   :  { %s6341_s16 = scalar_lea.vmem %s103_s27, 112  ;;  %s6345_s17 = scalar_lea.vmem %s103_s27, 128 }
  0x61   :  { %p6342_p1 = scmp.ne.s32.totalorder %s103_s27, %s6341_s16  ;;  %p6346_p2 = scmp.lt.s32.totalorder %s103_s27, %s103_s27 }
  0x62   :  { %p6347_p3 = scmp.lt.s32.totalorder %s6345_s17, %s6341_s16 }
  0x64   :  { %p6348_p4 = por %p6347_p3, %p6346_p2 }
  0x66   :  { %p6349_p5 = pnand %p6348_p4, %p6342_p1 }
  0x68   :  { %6352 = shalt.err (!%p6349_p5)
}
  0x69   :  { %105 = dma.hbm_to_vmem [thread:$0]  %s7472_s12, 112, %s103_s27, [#allocation14]  }
  0x6a   :  { %6375 = dma.done.wait [#allocation5], 32  }
  0x6b   :  { %6376 = vsyncadd [#allocation5], 4294967264 }
  0x6c   :  { %6377 = dma.done.wait [#allocation8], 21504  }
  0x6d   :  { %6378 = vsyncadd [#allocation8], 4294945792 }
  0x6e   :  { %6379 = dma.done.wait [#allocation11], 14352  }
  0x6f   :  { %6380 = vsyncadd [#allocation11], 4294952944 }
  0x70   :  { %6381 = dma.done.wait [#allocation14], 112  }
  0x71   :  { %6382 = vsyncadd [#allocation14], 4294967184  ;;  %v6395_v0 = vmov 0   ;;  %v124_v1 = vld [vmem:[%s7460_s0] sm:$0xff]  ;;  %v141_v3 = vld [vmem:[%s7462_s2 + $0x8] sm:$0xff]  ;;  %v6396_v9 = vmov 0.0   ;;  %v126_v27 = vlaneseq }
  0x72   :  { %6078 = vset.pattern.permute.xlu0 %v6395_v0  ;;  %v140_v2 = vld [vmem:[%s7462_s2] sm:$0xff]  ;;  %v142_v4 = vld [vmem:[%s7462_s2 + $0x10] sm:$0xff]  ;;  %v143_v5 = vld [vmem:[%s7462_s2 + $0x18] sm:$0xff]  ;;  %324 = vmatprep.mubr.f32.mxu1 %v6396_v9  ;;  %vm154_vm0 = vcmask 1041408   ;;  %v6397_v26 = vmov 0.0|0.0   ;;  %vm147_vm1 = vcmask 408576  }
  0x73   :  { %129 = vperm.xlu0 %6078, %v124_v1   ;;  %v125_v6 = vld [vmem:[%s7460_s0 + $0x8] sm:$0xff]  ;;  %v5613_v7 = vpack.c.bf16 %v141_v3, %v140_v2  ;;  %v5617_v8 = vpack.c.bf16 %v143_v5, %v142_v4  ;;  %v144_v10 = vld [vmem:[%s7462_s2 + $0x20] sm:$0xff]  ;;  %v236_v14 = vld [vmem:[%s7463_s3 + $0x18] sm:$0xff]  ;;  %v127_v28 = vand.u32 127, %v126_v27  ;;  %vm6398_vm4 = vmmov 0   ;;  %s6401_s12 = smov 32  }
  0x74   :  { %v145_v11 = vld [vmem:[%s7462_s2 + $0x28] sm:$0xff]  ;;  %v233_v15 = vld [vmem:[%s7463_s3] sm:$0xff]  ;;  %v235_v17 = vld [vmem:[%s7463_s3 + $0x10] sm:$0xff]  ;;  %vm253_vm5 = vcmask 261120   ;;  %v6399_v49 = vmov 7   ;;  %v6691_v50 = vshrl.u32 %v126_v27, 7 }
  0x75   :  { %5614 = vmatprep.subr.bf16.mxu0 %v5613_v7  ;;  %v5621_v12 = vpack.c.bf16 %v145_v11, %v144_v10  ;;  %v234_v13 = vld [vmem:[%s7463_s3 + $0x8] sm:$0xff]  ;;  %v240_v19 = vld [vmem:[%s7463_s3 + $0x38] sm:$0xff]  ;;  %v5627_v20 = vpack.c.bf16 %v235_v17, %v233_v15  ;;  %v237_v22 = vld [vmem:[%s7463_s3 + $0x20] sm:$0xff]  ;;  %6080 = vset.pattern.permute.xlu1 %v6399_v49  ;;  %s6402_s27 = smov 96   ;;  %vm792_vm6 = vcmask 257026   ;;  %vm576_vm7 = vcmask 261126  }
  0x76   :  { %5616 = vmatpush3.bf16.msra.mxu0 %v5613_v7  ;;  %v5625_v16 = vpack.c.bf16 %v236_v14, %v234_v13  ;;  %v238_v18 = vld [vmem:[%s7463_s3 + $0x28] sm:$0xff]  ;;  %v239_v23 = vld [vmem:[%s7463_s3 + $0x30] sm:$0xff]  ;;  %v342_v30 = vld [vmem:[%s7466_s6] sm:$0xff]  ;;  %v6694_v51 = vsub.s32 1, %v6691_v50  ;;  %v6701_v54 = vsub.s32 0, %v6691_v50  ;;  %vm856_vm8 = vcmask 259076  }
  0x77   :  { %132 = vperm.xlu0 %6078, %v125_v6   ;;  %5618 = vmatprep.subr.bf16.mxu0 %v5617_v8  ;;  %v5629_v21 = vpack.c.bf16 %v240_v19, %v238_v18  ;;  %v146_v24 = vld [vmem:[%s7462_s2 + $0x30] sm:$0x3]  ;;  %v5631_v25 = vpack.c.bf16 %v239_v23, %v237_v22  ;;  %v343_v31 = vld [vmem:[%s7466_s6 + $0x8] sm:$0xff]  ;;  %v345_v37 = vld [vmem:[%s7466_s6 + $0x18] sm:$0xff]  ;;  %vm528_vm9 = vcmask 254976   ;;  %vm2478_vm10 = vcmask 1043459  }
  0x78   :  { %5626 = vmatprep.subr.bf16.mxu1 %v5625_v16  ;;  %v6635_v34 = vpack.c.bf16 %v343_v31, %v342_v30  ;;  %v344_v36 = vld [vmem:[%s7466_s6 + $0x10] sm:$0xff]  ;;  %v338_v39 = vld [vmem:[%s7465_s5] sm:$0xff]  ;;  %v339_v40 = vld [vmem:[%s7465_s5 + $0x8] sm:$0xff]  ;;  %vm2475_vm11 = vcmask 1042434   ;;  %vm2481_vm12 = vcmask 1044484   ;;  %vm2472_vm13 = vcmask 1041409  }
  0x79   :  { %5628 = vmatpush1.bf16.msra.mxu1 %v5627_v20  ;;  %v6646_v38 = vpack.c.bf16 %v345_v37, %v344_v36  ;;  %v6665_v41 = vpack.c.bf16 %v339_v40, %v338_v39  ;;  %v340_v43 = vld [vmem:[%s7465_s5 + $0x10] sm:$0xff]  ;;  %v341_v44 = vld [vmem:[%s7465_s5 + $0x18] sm:$0xff]  ;;  %v241_v52 = vld [vmem:[%s7464_s4] sm:$0x3]  ;;  %s6400_s4 = smov 64   ;;  %vm2484_vm14 = vcmask 1045509  }
  0x7a   :  { %5620 = vmatpush3.bf16.msra.mxu0 %v5617_v8  ;;  %5630 = vmatprep.subr.bf16.mxu1 %v5629_v21  ;;  %v6676_v46 = vpack.c.bf16 %v341_v44, %v340_v43  ;;  %v250_v53 = vrot.slane %v241_v52, %v6694_v51  ;;  %v246_v58 = vrot.slane %v241_v52, %v6701_v54  ;;  %v6716_v8 = vld [vmem:[#allocation4] sm:$0x3]  ;;  %vm2487_vm15 = vcmask 1046534   ;;  %s6410_s24 = smov 24   ;;  %s6411_s3 = smov 40  }
  0x7b   :  { %5622 = vmatprep.subr.bf16.mxu0 %v5621_v12  ;;  %6079 = vset.pattern.permute.xlu0 %v6399_v49  ;;  %v6724_v22 = vsub.f32 1.0, %v6716_v8  ;;  %s6412_s2 = smov 48   ;;  %s6413_s25 = smov [#allocation15]  }
  0x7c   :  { %s4920_s26 = sshll.u32 %s6413_s25, 4  ;;  %s4921_s26 = int_to_ptr.vmem [resolvable:$true] %s4920_s26 }
  0x7d   :  { %5632 = vmatpush1.bf16.msra.mxu1 %v5631_v25  ;;  %s6353_s18 = scalar_lea.vmem %s4921_s26, 32  ;;  %p6358_p7 = scmp.lt.s32.totalorder %s4921_s26, %s4921_s26 }
  0x7e   :  { %5624 = vmatpush3.bf16.msra.mxu0 %v5621_v12  ;;  %5633 = vmatprep.subr.bf16.mxu1 %v6397_v26  ;;  %p6354_p6 = scmp.ne.s32.totalorder %s4921_s26, %s6353_s18  ;;  %p6359_p8 = scmp.lt.s32.totalorder %s6353_s18, %s6353_s18 }
  0x7f   :  { %5273 = vmatprep.subr.msk.mxu0 %vm154_vm0, %v146_v24 }
  0x80   :  { %p6360_p9 = por %p6359_p8, %p6358_p7 }
  0x82   :  { %5274 = vmatpush3.msk.msra.mxu0 %vm154_vm0, %v146_v24  ;;  %vm2490_vm0 = vcmask 1047559   ;;  %p6361_p10 = pnand %p6360_p9, %p6354_p6 }
  0x83   :  { %5639 = vmatprep.subr.bf16.mxu0 %v6397_v26 }
  0xf2   :  { %v130_v29 = vpop.permute.xlu0 %129 }
  0xf3   :  { %vm134_vm2 = vcmp.eq.s32.totalorder %v127_v28, %v130_v29 }
  0xf4   :  { %v4938_v32 = vsel %vm134_vm2, 1.0, %v6396_v9  ;;  %vm2543_vm2 = vcmask 1046528  }
  0xf5   :  { %5275 = vmatprep.mubr.msk.f32.mxu0 %vm147_vm1, %v4938_v32 }
  0xf6   :  { %v133_v33 = vpop.permute.xlu0 %132 }
  0xf7   :  { %vm135_vm3 = vcmp.eq.s32.totalorder %v127_v28, %v133_v33 }
  0xf8   :  { %v4939_v35 = vsel %vm135_vm3, 1.0, %v6396_v9  ;;  %vm2966_vm3 = vcmask 31744  }
  0xf9   :  { %5276 = vmatmul.mubr.msk.f32.vlgmr.msra.gmra.mrb[0].mxu0 %vm147_vm1, %v4939_v35  ;;  %vm2640_vm1 = vcmask 523264  }
  0xfa   :  { %5641 = vmatpush3.bf16.msra.mxu0 %v6635_v34  ;;  %5297 = vmatprep.mubr.msk.f32.mxu0 %vm6398_vm4, %v6396_v9 }
  0xfb   :  { %5642 = vmatprep.subr.bf16.mxu0 %v6397_v26 }
  0xfe   :  { %5644 = vmatpush3.bf16.msra.mxu0 %v6646_v38 }
  0xff   :  { %5651 = vmatprep.subr.bf16.mxu0 %v6397_v26 }
 0x101   :  { %5298 = vmatmul.mubr.f32.vlgmr.msra.gmra.mrb[2].mxu0 %v6396_v9 }
 0x102   :  { %5653 = vmatpush3.bf16.msra.mxu0 %v6635_v34  ;;  %5319 = vmatprep.mubr.msk.f32.mxu0 %vm6398_vm4, %v6396_v9 }
 0x103   :  { %5654 = vmatprep.subr.bf16.mxu0 %v6397_v26 }
 0x106   :  { %5656 = vmatpush3.bf16.msra.mxu0 %v6646_v38 }
 0x107   :  { %5663 = vmatprep.subr.bf16.mxu0 %v6397_v26 }
 0x1cc   :  { %v5277_v42 = vpop.f32.mrb[0].mxu0 }
 0x1cd   :  { %v224_v45 = vpop.f32.mrb[1].mxu0 }
 0x1ce   :  { %4943 = vmatmul.mubr.msk.f32.vlgmr.msra.gmra.mrb[0].mxu1 %vm253_vm5, %v224_v45 }
 0x1cf   :  { %5635 = vmatpush3.bf16.msra.mxu1 %v6665_v41  ;;  %330 = vmatprep.mubr.f32.mxu1 %v6396_v9 }
 0x1d0   :  { %5636 = vmatprep.subr.bf16.mxu1 %v6397_v26 }
 0x1d2   :  { %4944 = vmatmul.mubr.msk.f32.gmra.mrb[2].mxu1 %vm253_vm5, %v5277_v42 }
 0x1d3   :  { %5638 = vmatpush3.bf16.msra.mxu1 %v6676_v46  ;;  %5286 = vmatprep.mubr.msk.f32.mxu1 %vm6398_vm4, %v6396_v9 }
 0x1d4   :  { %5645 = vmatprep.subr.bf16.mxu1 %v6397_v26  ;;  %v486_v47 = vpop.f32.mrb[2].mxu0 }
 0x1d5   :  { %v5299_v48 = vpop.f32.mrb[3].mxu0  ;;  %v491_v60 = vrot.slane %v486_v47, 2 }
 0x1d6   :  { %5287 = vmatmul.mubr.f32.vlgmr.msra.gmra.mrb[4].mxu1 %v6396_v9 }
 0x1d7   :  { %5647 = vmatpush3.bf16.msra.mxu1 %v6665_v41  ;;  %5308 = vmatprep.mubr.msk.f32.mxu1 %vm6398_vm4, %v6396_v9 }
 0x1d8   :  { %5648 = vmatprep.subr.bf16.mxu1 %v6397_v26 }
 0x1db   :  { %5650 = vmatpush3.bf16.msra.mxu1 %v6676_v46 }
 0x1dc   :  { %5657 = vmatprep.subr.bf16.mxu1 %v6397_v26 }
 0x2a1   :  { %v326_v55 = vpop.f32.mrb[0].mxu1 }
 0x2a2   :  { %v328_v56 = vpop.f32.mrb[1].mxu1  ;;  %v6710_v1 = vadd.f32 %v326_v55, %v246_v58 }
 0x2a3   :  { %v6703_v57 = vadd.f32 %v328_v56, %v250_v53 }
 0x2a5   :  { %v332_v59 = vpop.f32.mrb[2].mxu1 }
 0x2a6   :  { %v6706_v61 = vadd.f32 %v332_v59, %v246_v58  ;;  %v334_v62 = vpop.f32.mrb[3].mxu1 }
 0x2a7   :  { %v6708_v63 = vadd.f32 %v334_v62, %v250_v53 }
 0x2a9   :  { %v493_v2 = vadd.f32 %v491_v60, %v6708_v63  ;;  %v415_v3 = vpop.f32.mrb[4].mxu1 }
 0x2aa   :  { %v419_v4 = vadd.f32 %v415_v3, %v6710_v1  ;;  %v5288_v5 = vpop.f32.mrb[5].mxu1 }
 0x2ab   :  { %6093 = vtanh.f32 %v493_v2  ;;  %v4946_v10 = vmul.f32 -1.442695, %v493_v2  ;;  %v6403_v5 = vmov 6  }
 0x2ac   :  { %6095 = vtanh.f32 %v419_v4  ;;  %v4945_v11 = vmul.f32 -1.442695, %v419_v4 }
 0x2ad   :  { %6097 = vpow2.f32 %v4946_v10 }
 0x2ae   :  { %6099 = vpow2.f32 %v4945_v11 }
 0x2b5   :  { %v6094_v6 = vpop.eup %6093 }
 0x2b6   :  { %v6096_v7 = vpop.eup %6095  ;;  %549 = vrot.lane.b32.xlu1 %v6094_v6, %s6400_s4 }
 0x2b7   :  { %503 = vrot.lane.b32.xlu0 %v6096_v7, %s6400_s4  ;;  %v6098_v12 = vpop.eup %6097 }
 0x2b8   :  { %v543_v13 = vadd.f32 1.0, %v6098_v12  ;;  %v6100_v14 = vpop.eup %6099 }
 0x2b9   :  { %v497_v15 = vadd.f32 1.0, %v6100_v14 }
 0x2ba   :  { %6101 = vrcp.f32 %v543_v13 }
 0x2bb   :  { %565 = vperm.xlu0 %6079, %v6716_v8   ;;  %6103 = vrcp.f32 %v497_v15 }
 0x2bf   :  { %6081 = vset.pattern.permute.xlu0 %v6395_v0 }
 0x2c0   :  { %520 = vperm.xlu0 %6081, %v6716_v8  }
 0x2c4   :  { %v6102_v16 = vpop.eup %6101 }
 0x2c5   :  { %v6104_v20 = vpop.eup %6103  ;;  %v547_v23 = vmul.f32 0.0, %v6102_v16 }
 0x2c6   :  { %v501_v28 = vmul.f32 0.0, %v6104_v20 }
 0x328   :  { %v550_v17 = vpop.permute.xlu1 %549 }
 0x329   :  { %v552_v18 = vmul.f32 %v6102_v16, %v550_v17  ;;  %v504_v19 = vpop.permute.xlu0 %503 }
 0x32a   :  { %v506_v21 = vmul.f32 %v6104_v20, %v504_v19 }
 0x32b   :  { %554 = vrot.lane.b32.xlu1 %v552_v18, %s6401_s12  ;;  %v6404_v18 = vmov 1  }
 0x32c   :  { %6084 = vset.pattern.permute.xlu0 %v6404_v18 }
 0x32f   :  { %508 = vrot.lane.b32.xlu1 %v506_v21, %s6401_s12 }
 0x333   :  { %579 = vperm.xlu1 %6080, %v6724_v22  }
 0x337   :  { %6082 = vset.pattern.permute.xlu1 %v6395_v0 }
 0x33a   :  { %v6731_v33 = vpop.permute.xlu0 %565 }
 0x33b   :  { %v568_v0 = vrot.slane %v6731_v33, 2 }
 0x33f   :  { %v6741_v45 = vpop.permute.xlu0 %520 }
 0x39d   :  { %v555_v24 = vpop.permute.xlu1 %554 }
 0x39e   :  { %v557_v25 = vadd.f32 %v555_v24, %v547_v23 }
 0x3a0   :  { %6105 = vtanh.f32 %v557_v25  ;;  %v588_v44 = vrot.slane %v557_v25, 6 }
 0x3a1   :  { %v509_v27 = vpop.permute.xlu1 %508 }
 0x3a2   :  { %v511_v29 = vadd.f32 %v509_v27, %v501_v28 }
 0x3a4   :  { %6107 = vtanh.f32 %v511_v29  ;;  %v538_v49 = vmul.f32 %v6741_v45, %v511_v29 }
 0x3aa   :  { %v6106_v30 = vpop.eup %6105 }
 0x3ab   :  { %560 = vrot.lane.b32.xlu1 %v6106_v30, %s6400_s4 }
 0x3ae   :  { %v6108_v31 = vpop.eup %6107 }
 0x3af   :  { %533 = vperm.xlu1 %6082, %v6724_v22  }
 0x3b2   :  { %v580_v32 = vpop.permute.xlu1 %579 }
 0x3b3   :  { %514 = vrot.lane.b32.xlu1 %v6108_v31, %s6400_s4  ;;  %v582_v35 = vmul.f32 0.0, %v580_v32 }
 0x3b4   :  { %6083 = vset.pattern.permute.xlu1 %v6403_v5 }
 0x3b5   :  { %v584_v39 = vrot.slane %v582_v35, 2 }
 0x41d   :  { %v561_v36 = vpop.permute.xlu1 %560 }
 0x41e   :  { %v563_v37 = vmul.f32 %v6102_v16, %v561_v36 }
 0x420   :  { %v6736_v40 = vmul.f32 %v568_v0, %v563_v37 }
 0x422   :  { %v586_v42 = vadd.f32 %v584_v39, %v6736_v40 }
 0x424   :  { %v674_v43 = vrot.slane %v586_v42, 6 }
 0x426   :  { %675 = vrot.lane.b32.xlu0 %v674_v43, %s6401_s12 }
 0x42a   :  { %589 = vrot.lane.b32.xlu0 %v588_v44, %s6402_s27 }
 0x42e   :  { %v534_v47 = vpop.permute.xlu1 %533 }
 0x42f   :  { %v536_v48 = vmul.f32 0.0, %v534_v47 }
 0x431   :  { %v6744_v52 = vadd.f32 %v538_v49, %v536_v48 }
 0x432   :  { %v515_v53 = vpop.permute.xlu1 %514 }
 0x433   :  { %v517_v55 = vmul.f32 %v6104_v20, %v515_v53 }
 0x435   :  { %v6747_v56 = vmul.f32 %v6741_v45, %v517_v55 }
 0x437   :  { %v6750_v58 = vadd.f32 %v536_v48, %v6747_v56  ;;  %v761_v48 = vrot.slane %v6744_v52, 6 }
 0x439   :  { %595 = vrot.lane.b32.xlu1 %v6750_v58, %s6401_s12 }
 0x498   :  { %v676_v59 = vpop.permute.xlu0 %675 }
 0x499   :  { %5320 = vmatmul.mubr.msk.f32.vlgmr.msra.gmra.mrb[4].mxu0 %vm253_vm5, %v676_v59 }
 0x49a   :  { %5665 = vmatpush3.bf16.msra.mxu0 %v6635_v34  ;;  %5341 = vmatprep.mubr.msk.f32.mxu0 %vm6398_vm4, %v6396_v9 }
 0x49b   :  { %5666 = vmatprep.subr.bf16.mxu0 %v6397_v26 }
 0x49c   :  { %v590_v60 = vpop.permute.xlu0 %589 }
 0x49d   :  { %v592_v62 = vmul.f32 %v590_v60, %v6731_v33 }
 0x49e   :  { %5668 = vmatpush3.bf16.msra.mxu0 %v6646_v38 }
 0x49f   :  { %v6761_v2 = vadd.f32 %v592_v62, %v582_v35  ;;  %5675 = vmatprep.subr.bf16.mxu0 %v6397_v26 }
 0x4a1   :  { %v823_v3 = vrot.slane %v6761_v2, 4 }
 0x4a3   :  { %824 = vrot.lane.b32.xlu0 %v823_v3, %s6401_s12 }
 0x4ab   :  { %v596_v4 = vpop.permute.xlu1 %595 }
 0x4ac   :  { %5309 = vmatmul.mubr.msk.f32.vlgmr.msra.gmra.mrb[6].mxu1 %vm253_vm5, %v596_v4 }
 0x4ad   :  { %5659 = vmatpush3.bf16.msra.mxu1 %v6665_v41  ;;  %5330 = vmatprep.mubr.msk.f32.mxu1 %vm6398_vm4, %v6396_v9 }
 0x4ae   :  { %5660 = vmatprep.subr.bf16.mxu1 %v6397_v26 }
 0x4b1   :  { %5662 = vmatpush3.bf16.msra.mxu1 %v6676_v46 }
 0x4b2   :  { %5669 = vmatprep.subr.bf16.mxu1 %v6397_v26 }
 0x515   :  { %v825_v39 = vpop.permute.xlu0 %824 }
 0x56c   :  { %v745_v6 = vpop.f32.mrb[4].mxu0 }
 0x56d   :  { %v750_v7 = vrot.slane %v745_v6, 4  ;;  %v5321_v10 = vpop.f32.mrb[5].mxu0 }
 0x56f   :  { %v752_v11 = vadd.f32 %v750_v7, %v6708_v63 }
 0x571   :  { %6109 = vtanh.f32 %v752_v11  ;;  %v4950_v19 = vmul.f32 -1.442695, %v752_v11 }
 0x57b   :  { %v6110_v12 = vpop.eup %6109 }
 0x57c   :  { %829 = vrot.lane.b32.xlu1 %v6110_v12, %s6400_s4 }
 0x57f   :  { %v665_v13 = vpop.f32.mrb[6].mxu1 }
 0x580   :  { %v670_v14 = vrot.slane %v665_v13, 6  ;;  %v5310_v15 = vpop.f32.mrb[7].mxu1 }
 0x582   :  { %v672_v16 = vadd.f32 %v670_v14, %v6710_v1 }
 0x584   :  { %6111 = vtanh.f32 %v672_v16  ;;  %v4949_v23 = vmul.f32 -1.442695, %v672_v16 }
 0x585   :  { %6113 = vpow2.f32 %v4950_v19 }
 0x58e   :  { %v6112_v17 = vpop.eup %6111 }
 0x58f   :  { %765 = vrot.lane.b32.xlu1 %v6112_v17, %s6400_s4  ;;  %v6114_v20 = vpop.eup %6113 }
 0x590   :  { %v818_v21 = vadd.f32 1.0, %v6114_v20 }
 0x592   :  { %6115 = vrcp.f32 %v818_v21 }
 0x593   :  { %859 = vperm.xlu1 %6083, %v6724_v22   ;;  %6117 = vpow2.f32 %v4949_v23 }
 0x597   :  { %845 = vperm.xlu1 %6083, %v6716_v8  }
 0x59b   :  { %6085 = vset.pattern.permute.xlu1 %v6404_v18 }
 0x59c   :  { %v6116_v24 = vpop.eup %6115 }
 0x59d   :  { %v6118_v28 = vpop.eup %6117  ;;  %v827_v42 = vmul.f32 %v6116_v24, %v825_v39 }
 0x59e   :  { %v756_v29 = vadd.f32 1.0, %v6118_v28 }
 0x5a0   :  { %6119 = vrcp.f32 %v756_v29 }
 0x5aa   :  { %v6120_v30 = vpop.eup %6119 }
 0x5ab   :  { %v763_v49 = vmul.f32 %v6120_v30, %v761_v48 }
 0x5ee   :  { %v830_v25 = vpop.permute.xlu1 %829 }
 0x5ef   :  { %v832_v27 = vmul.f32 %v6116_v24, %v830_v25 }
 0x5f1   :  { %834 = vrot.lane.b32.xlu0 %v832_v27, %s6401_s12 }
 0x601   :  { %v766_v31 = vpop.permute.xlu1 %765 }
 0x602   :  { %v768_v32 = vmul.f32 %v6120_v30, %v766_v31 }
 0x604   :  { %770 = vrot.lane.b32.xlu0 %v768_v32, %s6401_s12 }
 0x612   :  { %v6781_v35 = vpop.permute.xlu1 %859 }
 0x613   :  { %v863_v36 = vmul.f32 %v6781_v35, %v676_v59  ;;  %v876_v25 = vmul.f32 %v6781_v35, %v6761_v2  ;;  %v6405_v2 = vmov 5  }
 0x615   :  { %v865_v37 = vrot.slane %v863_v36, 4 }
 0x616   :  { %v6790_v60 = vpop.permute.xlu1 %845 }
 0x617   :  { %866 = vrot.lane.b32.xlu1 %v865_v37, %s6402_s27  ;;  %v848_v4 = vrot.slane %v6790_v60, 4 }
 0x61b   :  { %795 = vperm.xlu1 %6085, %v6724_v22  }
 0x61f   :  { %6086 = vset.pattern.permute.xlu1 %v6405_v2 }
 0x663   :  { %v835_v43 = vpop.permute.xlu0 %834 }
 0x664   :  { %v837_v44 = vadd.f32 %v835_v43, %v827_v42 }
 0x666   :  { %6121 = vtanh.f32 %v837_v44  ;;  %v871_v11 = vrot.slane %v837_v44, 4 }
 0x670   :  { %v6122_v47 = vpop.eup %6121 }
 0x671   :  { %840 = vrot.lane.b32.xlu0 %v6122_v47, %s6400_s4 }
 0x675   :  { %781 = vperm.xlu0 %6084, %v6716_v8  }
 0x676   :  { %v771_v53 = vpop.permute.xlu0 %770 }
 0x677   :  { %v773_v55 = vadd.f32 %v771_v53, %v763_v49  ;;  %v6406_v53 = vmov 2  }
 0x679   :  { %6123 = vtanh.f32 %v773_v55  ;;  %v804_v12 = vrot.slane %v773_v55, 2  ;;  %6087 = vset.pattern.permute.xlu0 %v6405_v2 }
 0x683   :  { %v6124_v59 = vpop.eup %6123 }
 0x684   :  { %776 = vrot.lane.b32.xlu1 %v6124_v59, %s6400_s4 }
 0x689   :  { %v867_v6 = vpop.permute.xlu1 %866 }
 0x69a   :  { %v6800_v13 = vpop.permute.xlu1 %795 }
 0x69b   :  { %v798_v16 = vmul.f32 %v6800_v13, %v6750_v58  ;;  %v809_v42 = vmul.f32 %v6800_v13, %v6744_v52 }
 0x69d   :  { %v800_v20 = vrot.slane %v798_v16, 6 }
 0x6e3   :  { %v841_v62 = vpop.permute.xlu0 %840 }
 0x6e4   :  { %v843_v3 = vmul.f32 %v6116_v24, %v841_v62 }
 0x6e6   :  { %v6795_v5 = vmul.f32 %v848_v4, %v843_v3 }
 0x6e8   :  { %v869_v7 = vadd.f32 %v867_v6, %v6795_v5 }
 0x6ea   :  { %v959_v10 = vrot.slane %v869_v7, 4 }
 0x6ec   :  { %960 = vrot.lane.b32.xlu0 %v959_v10, %s6401_s12 }
 0x6f0   :  { %872 = vrot.lane.b32.xlu0 %v871_v11, %s6402_s27 }
 0x6f4   :  { %805 = vrot.lane.b32.xlu0 %v804_v12, %s6402_s27  ;;  %v6803_v14 = vpop.permute.xlu0 %781 }
 0x6f5   :  { %v784_v15 = vrot.slane %v6803_v14, 6 }
 0x6f6   :  { %v777_v17 = vpop.permute.xlu1 %776 }
 0x6f7   :  { %v779_v18 = vmul.f32 %v6120_v30, %v777_v17 }
 0x6f9   :  { %v6810_v19 = vmul.f32 %v784_v15, %v779_v18 }
 0x6fb   :  { %v802_v21 = vadd.f32 %v800_v20, %v6810_v19 }
 0x6fd   :  { %v879_v23 = vrot.slane %v802_v21, 2 }
 0x6ff   :  { %880 = vrot.lane.b32.xlu1 %v879_v23, %s6401_s12 }
 0x75e   :  { %v6814_v24 = vpop.permute.xlu0 %960 }
 0x75f   :  { %5342 = vmatmul.mubr.msk.f32.vlgmr.msra.gmra.mrb[6].mxu0 %vm253_vm5, %v6814_v24 }
 0x760   :  { %5677 = vmatpush3.bf16.msra.mxu0 %v6635_v34  ;;  %5363 = vmatprep.mubr.msk.f32.mxu0 %vm6398_vm4, %v6396_v9 }
 0x761   :  { %5678 = vmatprep.subr.bf16.mxu0 %v6397_v26 }
 0x762   :  { %v873_v58 = vpop.permute.xlu0 %872 }
 0x763   :  { %v875_v27 = vmul.f32 %v873_v58, %v6790_v60 }
 0x764   :  { %5680 = vmatpush3.bf16.msra.mxu0 %v6646_v38 }
 0x765   :  { %v6826_v28 = vadd.f32 %v876_v25, %v875_v27  ;;  %5687 = vmatprep.subr.bf16.mxu0 %v6397_v26 }
 0x766   :  { %v806_v6 = vpop.permute.xlu0 %805 }
 0x767   :  { %v1108_v29 = vrot.slane %v6826_v28, 6  ;;  %v808_v12 = vmul.f32 %v806_v6, %v6803_v14 }
 0x769   :  { %1109 = vrot.lane.b32.xlu0 %v1108_v29, %s6401_s12 }
 0x771   :  { %v6831_v30 = vpop.permute.xlu1 %880 }
 0x772   :  { %5331 = vmatmul.mubr.msk.f32.vlgmr.msra.gmra.mrb[8].mxu1 %vm253_vm5, %v6831_v30 }
 0x773   :  { %5671 = vmatpush3.bf16.msra.mxu1 %v6665_v41  ;;  %5352 = vmatprep.mubr.msk.f32.mxu1 %vm6398_vm4, %v6396_v9 }
 0x774   :  { %5672 = vmatprep.subr.bf16.mxu1 %v6397_v26 }
 0x777   :  { %5674 = vmatpush3.bf16.msra.mxu1 %v6676_v46 }
 0x778   :  { %5681 = vmatprep.subr.bf16.mxu1 %v6397_v26 }
 0x7db   :  { %v1110_v2 = vpop.permute.xlu0 %1109 }
 0x832   :  { %v1030_v31 = vpop.f32.mrb[6].mxu0 }
 0x833   :  { %v1035_v32 = vrot.slane %v1030_v31, 6  ;;  %v5343_v36 = vpop.f32.mrb[7].mxu0 }
 0x835   :  { %v1037_v37 = vadd.f32 %v1035_v32, %v6708_v63 }
 0x837   :  { %6125 = vtanh.f32 %v1037_v37  ;;  %v4954_v55 = vmul.f32 -1.442695, %v1037_v37 }
 0x841   :  { %v6126_v39 = vpop.eup %6125 }
 0x842   :  { %1114 = vrot.lane.b32.xlu1 %v6126_v39, %s6400_s4 }
 0x845   :  { %v950_v43 = vpop.f32.mrb[8].mxu1 }
 0x846   :  { %v955_v44 = vrot.slane %v950_v43, 4  ;;  %811 = vrot.lane.b32.xlu1 %v809_v42, %s6402_s27  ;;  %v5332_v47 = vpop.f32.mrb[9].mxu1 }
 0x848   :  { %v957_v48 = vadd.f32 %v955_v44, %v6710_v1 }
 0x84a   :  { %6127 = vtanh.f32 %v957_v48  ;;  %v4953_v52 = vmul.f32 -1.442695, %v957_v48 }
 0x84b   :  { %6129 = vpow2.f32 %v4954_v55 }
 0x854   :  { %v6128_v49 = vpop.eup %6127 }
 0x855   :  { %1052 = vrot.lane.b32.xlu1 %v6128_v49, %s6400_s4  ;;  %v6130_v59 = vpop.eup %6129 }
 0x856   :  { %v1103_v62 = vadd.f32 1.0, %v6130_v59 }
 0x858   :  { %6131 = vrcp.f32 %v1103_v62 }
 0x859   :  { %1143 = vperm.xlu1 %6086, %v6724_v22   ;;  %6133 = vpow2.f32 %v4953_v52 }
 0x85d   :  { %6088 = vset.pattern.permute.xlu1 %v6406_v53 }
 0x862   :  { %v6132_v3 = vpop.eup %6131 }
 0x863   :  { %v6134_v11 = vpop.eup %6133  ;;  %v1112_v31 = vmul.f32 %v6132_v3, %v1110_v2 }
 0x864   :  { %v1041_v17 = vadd.f32 1.0, %v6134_v11 }
 0x866   :  { %6135 = vrcp.f32 %v1041_v17 }
 0x870   :  { %v6136_v21 = vpop.eup %6135 }
 0x8b4   :  { %v1115_v7 = vpop.permute.xlu1 %1114 }
 0x8b5   :  { %v1117_v10 = vmul.f32 %v6132_v3, %v1115_v7 }
 0x8b7   :  { %1119 = vrot.lane.b32.xlu0 %v1117_v10, %s6401_s12 }
 0x8b8   :  { %v812_v16 = vpop.permute.xlu1 %811 }
 0x8b9   :  { %v6851_v18 = vadd.f32 %v812_v16, %v808_v12 }
 0x8bb   :  { %v1046_v20 = vrot.slane %v6851_v18, 4 }
 0x8bd   :  { %1047 = vrot.lane.b32.xlu0 %v1046_v20, %s6401_s12 }
 0x8c1   :  { %1130 = vperm.xlu0 %6087, %v6716_v8  }
 0x8c7   :  { %v1053_v23 = vpop.permute.xlu1 %1052 }
 0x8c8   :  { %v1055_v58 = vmul.f32 %v6136_v21, %v1053_v23 }
 0x8ca   :  { %1057 = vrot.lane.b32.xlu1 %v1055_v58, %s6401_s12 }
 0x8ce   :  { %1081 = vperm.xlu1 %6088, %v6724_v22  }
 0x8d8   :  { %v6858_v25 = vpop.permute.xlu1 %1143 }
 0x8d9   :  { %v1147_v27 = vmul.f32 %v6858_v25, %v6814_v24 }
 0x8db   :  { %v1149_v29 = vrot.slane %v1147_v27, 6 }
 0x8dd   :  { %1150 = vrot.lane.b32.xlu0 %v1149_v29, %s6402_s27 }
 0x929   :  { %v1120_v32 = vpop.permute.xlu0 %1119 }
 0x92a   :  { %v1122_v36 = vadd.f32 %v1120_v32, %v1112_v31 }
 0x92c   :  { %6137 = vtanh.f32 %v1122_v36 }
 0x92f   :  { %v1048_v39 = vpop.permute.xlu0 %1047 }
 0x930   :  { %v1050_v42 = vmul.f32 %v6136_v21, %v1048_v39 }
 0x936   :  { %v6138_v37 = vpop.eup %6137 }
 0x937   :  { %1125 = vrot.lane.b32.xlu1 %v6138_v37, %s6400_s4 }
 0x93b   :  { %1068 = vperm.xlu1 %6088, %v6716_v8  }
 0x93c   :  { %v1058_v43 = vpop.permute.xlu1 %1057 }
 0x93d   :  { %v1060_v44 = vadd.f32 %v1058_v43, %v1050_v42  ;;  %v1160_v43 = vmul.f32 %v6858_v25, %v6826_v28 }
 0x93f   :  { %6139 = vtanh.f32 %v1060_v44  ;;  %v1093_v11 = vrot.slane %v1060_v44, 4 }
 0x940   :  { %v6871_v53 = vpop.permute.xlu0 %1130 }
 0x941   :  { %v1133_v55 = vrot.slane %v6871_v53, 6 }
 0x949   :  { %v6140_v47 = vpop.eup %6139 }
 0x94a   :  { %1063 = vrot.lane.b32.xlu0 %v6140_v47, %s6400_s4 }
 0x94d   :  { %v6866_v24 = vpop.permute.xlu1 %1081 }
 0x94e   :  { %v1085_v48 = vmul.f32 %v6866_v24, %v6831_v30  ;;  %v1155_v30 = vrot.slane %v1122_v36, 2  ;;  %v6407_v36 = vmov 4   ;;  %v1098_v28 = vmul.f32 %v6866_v24, %v6851_v18 }
 0x94f   :  { %v1151_v6 = vpop.permute.xlu0 %1150  ;;  %6089 = vset.pattern.permute.xlu0 %v6407_v36 }
 0x950   :  { %v1087_v49 = vrot.slane %v1085_v48, 4 }
 0x952   :  { %1088 = vrot.lane.b32.xlu1 %v1087_v49, %s6402_s27 }
 0x9a9   :  { %v1126_v59 = vpop.permute.xlu1 %1125 }
 0x9aa   :  { %v1128_v62 = vmul.f32 %v6132_v3, %v1126_v59 }
 0x9ac   :  { %v6876_v52 = vmul.f32 %v1133_v55, %v1128_v62  ;;  %v6408_v62 = vmov 3  }
 0x9ad   :  { %6090 = vset.pattern.permute.xlu1 %v6408_v62 }
 0x9ae   :  { %v1153_v7 = vadd.f32 %v1151_v6, %v6876_v52 }
 0x9b0   :  { %v1243_v10 = vrot.slane %v1153_v7, 2 }
 0x9b2   :  { %1244 = vrot.lane.b32.xlu0 %v1243_v10, %s6401_s12 }
 0x9b6   :  { %1156 = vrot.lane.b32.xlu0 %v1155_v30, %s6402_s27 }
 0x9ba   :  { %1094 = vrot.lane.b32.xlu0 %v1093_v11, %s6402_s27  ;;  %v6882_v16 = vpop.permute.xlu1 %1068 }
 0x9bb   :  { %v1071_v17 = vrot.slane %v6882_v16, 4 }
 0x9bc   :  { %v1064_v12 = vpop.permute.xlu0 %1063 }
 0x9bd   :  { %v1066_v3 = vmul.f32 %v6136_v21, %v1064_v12 }
 0x9bf   :  { %v6887_v20 = vmul.f32 %v1071_v17, %v1066_v3 }
 0x9c4   :  { %v1089_v23 = vpop.permute.xlu1 %1088 }
 0x9c5   :  { %v1091_v58 = vadd.f32 %v1089_v23, %v6887_v20 }
 0x9c7   :  { %v1163_v27 = vrot.slane %v1091_v58, 4 }
 0x9c9   :  { %1164 = vrot.lane.b32.xlu1 %v1163_v27, %s6401_s12 }
 0xa24   :  { %v6891_v29 = vpop.permute.xlu0 %1244 }
 0xa25   :  { %5364 = vmatmul.mubr.msk.f32.vlgmr.msra.gmra.mrb[8].mxu0 %vm253_vm5, %v6891_v29 }
 0xa26   :  { %5689 = vmatpush3.bf16.msra.mxu0 %v6635_v34  ;;  %5385 = vmatprep.mubr.msk.f32.mxu0 %vm6398_vm4, %v6396_v9 }
 0xa27   :  { %5690 = vmatprep.subr.bf16.mxu0 %v6397_v26 }
 0xa28   :  { %v1157_v37 = vpop.permute.xlu0 %1156 }
 0xa29   :  { %v1159_v39 = vmul.f32 %v1157_v37, %v6871_v53 }
 0xa2a   :  { %5692 = vmatpush3.bf16.msra.mxu0 %v6646_v38 }
 0xa2b   :  { %5699 = vmatprep.subr.bf16.mxu0 %v6397_v26  ;;  %v6916_v44 = vadd.f32 %v1160_v43, %v1159_v39 }
 0xa2c   :  { %v1095_v59 = vpop.permute.xlu0 %1094 }
 0xa2d   :  { %v1097_v6 = vmul.f32 %v1095_v59, %v6882_v16 }
 0xa2f   :  { %v6924_v7 = vadd.f32 %v1098_v28, %v1097_v6 }
 0xa31   :  { %v1327_v30 = vrot.slane %v6924_v7, 2 }
 0xa3b   :  { %v6901_v21 = vpop.permute.xlu1 %1164 }
 0xa3c   :  { %5353 = vmatmul.mubr.msk.f32.vlgmr.msra.gmra.mrb[10].mxu1 %vm253_vm5, %v6901_v21 }
 0xa3d   :  { %5683 = vmatpush3.bf16.msra.mxu1 %v6665_v41  ;;  %5374 = vmatprep.mubr.msk.f32.mxu1 %vm6398_vm4, %v6396_v9 }
 0xa3e   :  { %5684 = vmatprep.subr.bf16.mxu1 %v6397_v26 }
 0xa41   :  { %5686 = vmatpush3.bf16.msra.mxu1 %v6676_v46 }
 0xa42   :  { %5693 = vmatprep.subr.bf16.mxu1 %v6397_v26 }
 0xaf8   :  { %v1314_v2 = vpop.f32.mrb[8].mxu0 }
 0xaf9   :  { %v1318_v31 = vadd.f32 %v1314_v2, %v6708_v63  ;;  %v5365_v32 = vpop.f32.mrb[9].mxu0 }
 0xafb   :  { %6141 = vtanh.f32 %v1318_v31  ;;  %v4958_v11 = vmul.f32 -1.442695, %v1318_v31 }
 0xb05   :  { %v6142_v42 = vpop.eup %6141 }
 0xb06   :  { %1394 = vrot.lane.b32.xlu1 %v6142_v42, %s6400_s4 }
 0xb0a   :  { %1389 = vrot.lane.b32.xlu1 %v6916_v44, %s6401_s12 }
 0xb0f   :  { %v1234_v47 = vpop.f32.mrb[10].mxu1 }
 0xb10   :  { %v1239_v63 = vrot.slane %v1234_v47, 2  ;;  %v5354_v48 = vpop.f32.mrb[11].mxu1 }
 0xb12   :  { %v1241_v49 = vadd.f32 %v1239_v63, %v6710_v1 }
 0xb14   :  { %6143 = vtanh.f32 %v1241_v49  ;;  %v4957_v3 = vmul.f32 -1.442695, %v1241_v49 }
 0xb15   :  { %6145 = vpow2.f32 %v4958_v11 }
 0xb1e   :  { %v6144_v10 = vpop.eup %6143 }
 0xb1f   :  { %1333 = vrot.lane.b32.xlu1 %v6144_v10, %s6400_s4  ;;  %v6146_v1 = vpop.eup %6145 }
 0xb20   :  { %v1384_v12 = vadd.f32 1.0, %v6146_v1 }
 0xb22   :  { %6147 = vrcp.f32 %v1384_v12 }
 0xb23   :  { %1328 = vrot.lane.b32.xlu1 %v1327_v30, %s6401_s12  ;;  %6149 = vpow2.f32 %v4957_v3 }
 0xb2c   :  { %v6148_v23 = vpop.eup %6147 }
 0xb2d   :  { %v6150_v18 = vpop.eup %6149 }
 0xb2e   :  { %v1322_v2 = vadd.f32 1.0, %v6150_v18 }
 0xb30   :  { %6151 = vrcp.f32 %v1322_v2 }
 0xb3a   :  { %v6152_v32 = vpop.eup %6151 }
 0xb78   :  { %v1395_v58 = vpop.permute.xlu1 %1394 }
 0xb79   :  { %v1397_v27 = vmul.f32 %v6148_v23, %v1395_v58 }
 0xb7b   :  { %1399 = vrot.lane.b32.xlu0 %v1397_v27, %s6401_s12 }
 0xb7c   :  { %v1390_v31 = vpop.permute.xlu1 %1389 }
 0xb7d   :  { %v1392_v42 = vmul.f32 %v6148_v23, %v1390_v31 }
 0xb7f   :  { %1421 = vperm.xlu0 %6089, %v6724_v22  }
 0xb83   :  { %1410 = vperm.xlu0 %6089, %v6716_v8  }
 0xb87   :  { %6091 = vset.pattern.permute.xlu0 %v6408_v62 }
 0xb91   :  { %v1334_v37 = vpop.permute.xlu1 %1333 }
 0xb92   :  { %v1336_v39 = vmul.f32 %v6152_v32, %v1334_v37 }
 0xb94   :  { %1338 = vrot.lane.b32.xlu1 %v1336_v39, %s6401_s12 }
 0xb95   :  { %v1329_v59 = vpop.permute.xlu1 %1328 }
 0xb98   :  { %1362 = vperm.xlu1 %6090, %v6724_v22   ;;  %v1331_v22 = vmul.f32 %v6152_v32, %v1329_v59 }
 0xbed   :  { %v1400_v43 = vpop.permute.xlu0 %1399 }
 0xbee   :  { %v6934_v47 = vadd.f32 %v1400_v43, %v1392_v42 }
 0xbf0   :  { %6153 = vtanh.f32 %v6934_v47 }
 0xbfa   :  { %v6154_v63 = vpop.eup %6153 }
 0xbfb   :  { %1405 = vrot.lane.b32.xlu0 %v6154_v63, %s6400_s4 }
 0xbfe   :  { %v6938_v48 = vpop.permute.xlu0 %1421 }
 0xbff   :  { %v1425_v49 = vmul.f32 %v6938_v48, %v6891_v29  ;;  %1349 = vperm.xlu0 %6091, %v6716_v8   ;;  %v1432_v39 = vmul.f32 %v6938_v48, %v6916_v44 }
 0xc01   :  { %1427 = vrot.lane.b32.xlu1 %v1425_v49, %s6402_s27 }
 0xc02   :  { %v6950_v8 = vpop.permute.xlu0 %1410 }
 0xc03   :  { %6092 = vset.pattern.permute.xlu0 %v6407_v36 }
 0xc06   :  { %v1339_v62 = vpop.permute.xlu1 %1338 }
 0xc07   :  { %v1341_v6 = vadd.f32 %v1339_v62, %v1331_v22 }
 0xc09   :  { %6155 = vtanh.f32 %v1341_v6  ;;  %v1374_v22 = vrot.slane %v1341_v6, 6 }
 0xc13   :  { %v6156_v28 = vpop.eup %6155 }
 0xc14   :  { %1344 = vrot.lane.b32.xlu1 %v6156_v28, %s6400_s4 }
 0xc17   :  { %v6945_v10 = vpop.permute.xlu1 %1362 }
 0xc18   :  { %v1366_v30 = vmul.f32 %v6945_v10, %v6901_v21 }
 0xc1a   :  { %v1368_v11 = vrot.slane %v1366_v30, 2 }
 0xc1c   :  { %1369 = vrot.lane.b32.xlu0 %v1368_v11, %s6402_s27 }
 0xc6d   :  { %v1406_v29 = vpop.permute.xlu0 %1405 }
 0xc6e   :  { %v1408_v1 = vmul.f32 %v6148_v23, %v1406_v29 }
 0xc70   :  { %v6953_v36 = vmul.f32 %v6950_v8, %v1408_v1 }
 0xc73   :  { %v1428_v12 = vpop.permute.xlu1 %1427 }
 0xc74   :  { %v6956_v3 = vadd.f32 %v1428_v12, %v6953_v36 }
 0xc76   :  { %1516 = vrot.lane.b32.xlu1 %v6956_v3, %s6401_s12 }
 0xc7e   :  { %v6960_v58 = vpop.permute.xlu0 %1349 }
 0xc7f   :  { %v1352_v27 = vrot.slane %v6960_v58, 2 }
 0xc86   :  { %v1345_v21 = vpop.permute.xlu1 %1344 }
 0xc87   :  { %v1347_v18 = vmul.f32 %v6152_v32, %v1345_v21 }
 0xc89   :  { %v6965_v2 = vmul.f32 %v1352_v27, %v1347_v18 }
 0xc8e   :  { %v1370_v23 = vpop.permute.xlu0 %1369 }
 0xc8f   :  { %v1372_v31 = vadd.f32 %v1370_v23, %v6965_v2 }
 0xc91   :  { %v1439_v37 = vrot.slane %v1372_v31, 6 }
 0xc93   :  { %1440 = vrot.lane.b32.xlu1 %v1439_v37, %s6401_s12  ;;  %v1379_v37 = vmul.f32 %v6945_v10, %v6924_v7 }
 0xc97   :  { %1434 = vrot.lane.b32.xlu1 %v1432_v39, %s6401_s12 }
 0xce8   :  { %v1517_v42 = vpop.permute.xlu1 %1516 }
 0xce9   :  { %5386 = vmatmul.mubr.msk.f32.vlgmr.msra.gmra.mrb[10].mxu0 %vm253_vm5, %v1517_v42 }
 0xcea   :  { %5701 = vmatpush3.bf16.msra.mxu0 %v6635_v34  ;;  %5407 = vmatprep.mubr.msk.f32.mxu0 %vm6398_vm4, %v6396_v9 }
 0xceb   :  { %5702 = vmatprep.subr.bf16.mxu0 %v6397_v26 }
 0xcee   :  { %5704 = vmatpush3.bf16.msra.mxu0 %v6646_v38 }
 0xcef   :  { %5711 = vmatprep.subr.bf16.mxu0 %v6397_v26 }
 0xd05   :  { %v1441_v32 = vpop.permute.xlu1 %1440 }
 0xd06   :  { %5375 = vmatmul.mubr.msk.f32.vlgmr.msra.gmra.mrb[12].mxu1 %vm253_vm5, %v1441_v32 }
 0xd07   :  { %5695 = vmatpush3.bf16.msra.mxu1 %v6665_v41  ;;  %5396 = vmatprep.mubr.msk.f32.mxu1 %vm6398_vm4, %v6396_v9 }
 0xd08   :  { %5696 = vmatprep.subr.bf16.mxu1 %v6397_v26 }
 0xd0b   :  { %5698 = vmatpush3.bf16.msra.mxu1 %v6676_v46 }
 0xd0c   :  { %5705 = vmatprep.subr.bf16.mxu1 %v6397_v26 }
 0xdbc   :  { %v1586_v44 = vpop.f32.mrb[10].mxu0 }
 0xdbd   :  { %v1591_v43 = vrot.slane %v1586_v44, 2  ;;  %v5387_v63 = vpop.f32.mrb[11].mxu0 }
 0xdbf   :  { %v1593_v49 = vadd.f32 %v1591_v43, %v6703_v57 }
 0xdc1   :  { %6157 = vtanh.f32 %v1593_v49  ;;  %v4962_v29 = vmul.f32 -1.442695, %v1593_v49 }
 0xdcb   :  { %v6158_v59 = vpop.eup %6157 }
 0xdcc   :  { %1655 = vrot.lane.b32.xlu0 %v6158_v59, %s6400_s4 }
 0xdd0   :  { %1375 = vrot.lane.b32.xlu0 %v1374_v22, %s6402_s27  ;;  %v1435_v22 = vpop.permute.xlu1 %1434 }
 0xdd9   :  { %v1510_v62 = vpop.f32.mrb[12].mxu1 }
 0xdda   :  { %v1514_v28 = vadd.f32 %v1510_v62, %v6706_v61  ;;  %v5376_v30 = vpop.f32.mrb[13].mxu1  ;;  %v1431_v62 = vmul.f32 %v6950_v8, %v6934_v47 }
 0xddc   :  { %6159 = vtanh.f32 %v1514_v28  ;;  %v4961_v21 = vmul.f32 -1.442695, %v1514_v28  ;;  %v1437_v7 = vadd.f32 %v1435_v22, %v1431_v62 }
 0xddd   :  { %6161 = vpow2.f32 %v4962_v29 }
 0xdde   :  { %v1651_v28 = vrot.slane %v1437_v7, 2 }
 0xde6   :  { %v6160_v11 = vpop.eup %6159 }
 0xde7   :  { %1607 = vrot.lane.b32.xlu0 %v6160_v11, %s6400_s4  ;;  %v6162_v1 = vpop.eup %6161 }
 0xde8   :  { %v1646_v12 = vadd.f32 1.0, %v6162_v1 }
 0xdea   :  { %6163 = vrcp.f32 %v1646_v12  ;;  %v1630_v12 = vmul.f32 %v1441_v32, %v6938_v48 }
 0xdeb   :  { %6165 = vpow2.f32 %v4961_v21 }
 0xdf4   :  { %v6164_v18 = vpop.eup %6163 }
 0xdf5   :  { %v6166_v44 = vpop.eup %6165  ;;  %v1653_v30 = vmul.f32 %v6164_v18, %v1651_v28 }
 0xdf6   :  { %v1597_v43 = vadd.f32 1.0, %v6166_v44 }
 0xdf8   :  { %6167 = vrcp.f32 %v1597_v43 }
 0xe02   :  { %v6168_v63 = vpop.eup %6167 }
 0xe3e   :  { %v1656_v23 = vpop.permute.xlu0 %1655 }
 0xe3f   :  { %v1658_v6 = vmul.f32 %v6164_v18, %v1656_v23 }
 0xe41   :  { %1660 = vrot.lane.b32.xlu1 %v1658_v6, %s6401_s12 }
 0xe42   :  { %v1376_v31 = vpop.permute.xlu0 %1375 }
 0xe43   :  { %v1378_v39 = vmul.f32 %v1376_v31, %v6960_v58 }
 0xe45   :  { %v6995_v42 = vadd.f32 %v1379_v37, %v1378_v39  ;;  %v1677_v37 = vmul.f32 %v6956_v3, %v6945_v10 }
 0xe47   :  { %1602 = vrot.lane.b32.xlu1 %v6995_v42, %s6401_s12  ;;  %v1679_v43 = vrot.slane %v1677_v37, 2 }
 0xe59   :  { %v1608_v49 = vpop.permute.xlu0 %1607 }
 0xe5a   :  { %v1610_v59 = vmul.f32 %v6168_v63, %v1608_v49 }
 0xe5c   :  { %1612 = vrot.lane.b32.xlu0 %v1610_v59, %s6401_s12 }
 0xeb3   :  { %v1661_v11 = vpop.permute.xlu1 %1660 }
 0xeb4   :  { %v1663_v29 = vadd.f32 %v1661_v11, %v1653_v30 }
 0xeb6   :  { %6169 = vtanh.f32 %v1663_v29  ;;  %v1683_v22 = vrot.slane %v1663_v29, 6 }
 0xeb9   :  { %v1603_v21 = vpop.permute.xlu1 %1602 }
 0xeba   :  { %v1605_v23 = vmul.f32 %v6168_v63, %v1603_v21 }
 0xec0   :  { %v6170_v1 = vpop.eup %6169 }
 0xec1   :  { %1666 = vrot.lane.b32.xlu1 %v6170_v1, %s6400_s4 }
 0xec5   :  { %1632 = vrot.lane.b32.xlu1 %v1630_v12, %s6402_s27 }
 0xece   :  { %v1613_v6 = vpop.permute.xlu0 %1612 }
 0xecf   :  { %v7005_v31 = vadd.f32 %v1613_v6, %v1605_v23 }
 0xed1   :  { %6171 = vtanh.f32 %v7005_v31 }
 0xedb   :  { %v6172_v47 = vpop.eup %6171 }
 0xedc   :  { %1618 = vrot.lane.b32.xlu0 %v6172_v47, %s6400_s4 }
 0xf33   :  { %v1667_v39 = vpop.permute.xlu1 %1666 }
 0xf34   :  { %v1669_v44 = vmul.f32 %v6164_v18, %v1667_v39 }
 0xf36   :  { %v7013_v32 = vmul.f32 %v1669_v44, %v1352_v27  ;;  %v1688_v27 = vmul.f32 %v1437_v7, %v6945_v10 }
 0xf37   :  { %v1633_v3 = vpop.permute.xlu1 %1632 }
 0xf38   :  { %v1681_v49 = vadd.f32 %v1679_v43, %v7013_v32 }
 0xf3a   :  { %v1774_v59 = vrot.slane %v1681_v49, 6 }
 0xf3c   :  { %1775 = vrot.lane.b32.xlu0 %v1774_v59, %s6401_s12  ;;  %v1637_v59 = vmul.f32 %v6938_v48, %v6995_v42 }
 0xf40   :  { %1684 = vrot.lane.b32.xlu0 %v1683_v22, %s6402_s27 }
 0xf4e   :  { %v1619_v62 = vpop.permute.xlu0 %1618 }
 0xf4f   :  { %v1621_v28 = vmul.f32 %v6168_v63, %v1619_v62 }
 0xf51   :  { %v7019_v30 = vmul.f32 %v1621_v28, %v6950_v8 }
 0xf53   :  { %v7022_v18 = vadd.f32 %v1633_v3, %v7019_v30 }
 0xf55   :  { %1695 = vrot.lane.b32.xlu1 %v7022_v18, %s6401_s12 }
 0xf59   :  { %1690 = vrot.lane.b32.xlu1 %v1688_v27, %s6402_s27 }
 0xfae   :  { %v1776_v11 = vpop.permute.xlu0 %1775 }
 0xfaf   :  { %5408 = vmatmul.mubr.msk.f32.vlgmr.msra.gmra.mrb[12].mxu0 %vm253_vm5, %v1776_v11  ;;  %v1941_v48 = vmul.f32 %v1776_v11, %v6866_v24 }
 0xfb0   :  { %5713 = vmatpush3.bf16.msra.mxu0 %v6635_v34  ;;  %5429 = vmatprep.mubr.msk.f32.mxu0 %vm6398_vm4, %v6396_v9 }
 0xfb1   :  { %5714 = vmatprep.subr.bf16.mxu0 %v6397_v26 }
 0xfb2   :  { %v1685_v63 = vpop.permute.xlu0 %1684 }
 0xfb3   :  { %v1687_v10 = vmul.f32 %v1685_v63, %v6960_v58 }
 0xfb4   :  { %5716 = vmatpush3.bf16.msra.mxu0 %v6646_v38 }
 0xfb5   :  { %5723 = vmatprep.subr.bf16.mxu0 %v6397_v26 }
 0xfc7   :  { %v1696_v29 = vpop.permute.xlu1 %1695 }
 0xfc8   :  { %5397 = vmatmul.mubr.msk.f32.vlgmr.msra.gmra.mrb[14].mxu1 %vm253_vm5, %v1696_v29 }
 0xfc9   :  { %5707 = vmatpush3.bf16.msra.mxu1 %v6665_v41  ;;  %5418 = vmatprep.mubr.msk.f32.mxu1 %vm6398_vm4, %v6396_v9 }
 0xfca   :  { %5708 = vmatprep.subr.bf16.mxu1 %v6397_v26 }
 0xfcb   :  { %v1691_v7 = vpop.permute.xlu1 %1690 }
 0xfcc   :  { %v7041_v1 = vadd.f32 %v1691_v7, %v1687_v10 }
 0xfcd   :  { %5710 = vmatpush3.bf16.msra.mxu1 %v6676_v46 }
 0xfce   :  { %v1912_v12 = vrot.slane %v7041_v1, 4  ;;  %5717 = vmatprep.subr.bf16.mxu1 %v6397_v26 }
 0xfd0   :  { %1913 = vrot.lane.b32.xlu1 %v1912_v12, %s6401_s12 }
0x1082   :  { %v1845_v21 = vpop.f32.mrb[12].mxu0 }
0x1083   :  { %v1850_v23 = vrot.slane %v1845_v21, 4  ;;  %v5409_v6 = vpop.f32.mrb[13].mxu0 }
0x1084   :  { %v1914_v6 = vpop.permute.xlu1 %1913 }
0x1085   :  { %v1852_v47 = vadd.f32 %v1850_v23, %v6703_v57  ;;  %v1943_v23 = vrot.slane %v1941_v48, 4  ;;  %v1887_v48 = vmul.f32 %v7022_v18, %v6858_v25 }
0x1087   :  { %6173 = vtanh.f32 %v1852_v47  ;;  %v4966_v22 = vmul.f32 -1.442695, %v1852_v47 }
0x1091   :  { %v6174_v58 = vpop.eup %6173 }
0x1092   :  { %1918 = vrot.lane.b32.xlu0 %v6174_v58, %s6400_s4 }
0x109b   :  { %v1765_v37 = vpop.f32.mrb[14].mxu1 }
0x109c   :  { %v1770_v39 = vrot.slane %v1765_v37, 6  ;;  %v5398_v44 = vpop.f32.mrb[15].mxu1 }
0x109e   :  { %v1772_v43 = vadd.f32 %v1770_v39, %v6706_v61 }
0x10a0   :  { %6175 = vtanh.f32 %v1772_v43  ;;  %v4965_v3 = vmul.f32 -1.442695, %v1772_v43  ;;  %v1636_v43 = vmul.f32 %v7005_v31, %v6950_v8 }
0x10a1   :  { %6177 = vpow2.f32 %v4966_v22 }
0x10aa   :  { %v6176_v49 = vpop.eup %6175 }
0x10ab   :  { %1865 = vrot.lane.b32.xlu0 %v6176_v49, %s6400_s4  ;;  %v6178_v62 = vpop.eup %6177 }
0x10ac   :  { %v1907_v28 = vadd.f32 1.0, %v6178_v62 }
0x10ae   :  { %6179 = vrcp.f32 %v1907_v28 }
0x10af   :  { %1639 = vrot.lane.b32.xlu0 %v1637_v59, %s6401_s12  ;;  %6181 = vpow2.f32 %v4965_v3 }
0x10b8   :  { %v6180_v27 = vpop.eup %6179 }
0x10b9   :  { %v6182_v10 = vpop.eup %6181  ;;  %v1916_v47 = vmul.f32 %v6180_v27, %v1914_v6 }
0x10ba   :  { %v1856_v7 = vadd.f32 1.0, %v6182_v10 }
0x10bc   :  { %6183 = vrcp.f32 %v1856_v7 }
0x10c6   :  { %v6184_v12 = vpop.eup %6183 }
0x1104   :  { %v1919_v63 = vpop.permute.xlu0 %1918 }
0x1105   :  { %v1921_v29 = vmul.f32 %v6180_v27, %v1919_v63 }
0x1107   :  { %1923 = vrot.lane.b32.xlu1 %v1921_v29, %s6401_s12 }
0x111d   :  { %v1866_v21 = vpop.permute.xlu0 %1865 }
0x111e   :  { %v1868_v42 = vmul.f32 %v6184_v12, %v1866_v21 }
0x1120   :  { %1870 = vrot.lane.b32.xlu1 %v1868_v42, %s6401_s12 }
0x1121   :  { %v1640_v44 = vpop.permute.xlu0 %1639 }
0x1122   :  { %v1642_v49 = vadd.f32 %v1640_v44, %v1636_v43 }
0x1124   :  { %1944 = vrot.lane.b32.xlu1 %v1943_v23, %s6402_s27  ;;  %v1861_v11 = vrot.slane %v1642_v49, 6  ;;  %v1889_v23 = vrot.slane %v1887_v48, 6  ;;  %v1898_v43 = vmul.f32 %v1642_v49, %v6858_v25 }
0x1126   :  { %v1863_v59 = vmul.f32 %v6184_v12, %v1861_v11 }
0x1179   :  { %v1924_v58 = vpop.permute.xlu1 %1923 }
0x117a   :  { %v1926_v37 = vadd.f32 %v1924_v58, %v1916_v47 }
0x117c   :  { %6185 = vtanh.f32 %v1926_v37  ;;  %v1949_v7 = vrot.slane %v1926_v37, 4 }
0x1186   :  { %v6186_v39 = vpop.eup %6185 }
0x1187   :  { %1929 = vrot.lane.b32.xlu0 %v6186_v39, %s6400_s4 }
0x1192   :  { %v1871_v22 = vpop.permute.xlu1 %1870 }
0x1193   :  { %v1873_v62 = vadd.f32 %v1871_v22, %v1863_v59 }
0x1195   :  { %6187 = vtanh.f32 %v1873_v62  ;;  %v1893_v21 = vrot.slane %v1873_v62, 2 }
0x1196   :  { %v1945_v10 = vpop.permute.xlu1 %1944 }
0x119f   :  { %v6188_v28 = vpop.eup %6187 }
0x11a0   :  { %1876 = vrot.lane.b32.xlu0 %v6188_v28, %s6400_s4 }
0x11f9   :  { %v1930_v3 = vpop.permute.xlu0 %1929 }
0x11fa   :  { %v1932_v63 = vmul.f32 %v6180_v27, %v1930_v3 }
0x11fc   :  { %v7064_v29 = vmul.f32 %v1932_v63, %v1071_v17 }
0x11fe   :  { %v1947_v8 = vadd.f32 %v1945_v10, %v7064_v29 }
0x1200   :  { %v2037_v31 = vrot.slane %v1947_v8, 4 }
0x1202   :  { %2038 = vrot.lane.b32.xlu1 %v2037_v31, %s6401_s12 }
0x1206   :  { %1950 = vrot.lane.b32.xlu1 %v1949_v7, %s6402_s27 }
0x120a   :  { %1894 = vrot.lane.b32.xlu1 %v1893_v21, %s6402_s27 }
0x1212   :  { %v1877_v27 = vpop.permute.xlu0 %1876 }
0x1213   :  { %v1879_v42 = vmul.f32 %v6184_v12, %v1877_v27 }
0x1215   :  { %v7074_v17 = vmul.f32 %v1879_v42, %v1133_v55  ;;  %v1954_v55 = vmul.f32 %v7041_v1, %v6866_v24 }
0x1217   :  { %v1891_v6 = vadd.f32 %v1889_v23, %v7074_v17 }
0x1219   :  { %v1957_v47 = vrot.slane %v1891_v6, 2 }
0x121b   :  { %1958 = vrot.lane.b32.xlu0 %v1957_v47, %s6401_s12 }
0x1274   :  { %v2039_v58 = vpop.permute.xlu1 %2038 }
0x1275   :  { %5430 = vmatmul.mubr.msk.f32.vlgmr.msra.gmra.mrb[14].mxu0 %vm253_vm5, %v2039_v58  ;;  %v2205_v6 = vmul.f32 %v2039_v58, %v6800_v13 }
0x1276   :  { %5725 = vmatpush3.bf16.msra.mxu0 %v6635_v34  ;;  %5451 = vmatprep.mubr.msk.f32.mxu0 %vm6398_vm4, %v6396_v9 }
0x1277   :  { %5726 = vmatprep.subr.bf16.mxu0 %v6397_v26 }
0x1278   :  { %v1951_v18 = vpop.permute.xlu1 %1950 }
0x1279   :  { %v1953_v12 = vmul.f32 %v1951_v18, %v6882_v16 }
0x127a   :  { %5728 = vmatpush3.bf16.msra.mxu0 %v6646_v38 }
0x127b   :  { %v7087_v37 = vadd.f32 %v1954_v55, %v1953_v12 }
0x127c   :  { %v1895_v25 = vpop.permute.xlu1 %1894 }
0x127d   :  { %v2176_v39 = vrot.slane %v7087_v37, 6  ;;  %v1897_v8 = vmul.f32 %v1895_v25, %v6871_v53  ;;  %v2207_v53 = vrot.slane %v2205_v6, 6  ;;  %v2218_v6 = vmul.f32 %v7087_v37, %v6800_v13 }
0x127f   :  { %2177 = vrot.lane.b32.xlu1 %v2176_v39, %s6401_s12 }
0x128d   :  { %v1959_v34 = vpop.permute.xlu0 %1958 }
0x128e   :  { %5419 = vmatmul.mubr.msk.f32.vlgmr.msra.gmra.mrb[16].mxu1 %vm253_vm5, %v1959_v34  ;;  %v2153_v18 = vmul.f32 %v1959_v34, %v6781_v35 }
0x128f   :  { %5719 = vmatpush3.bf16.msra.mxu1 %v6665_v41  ;;  %5440 = vmatprep.mubr.msk.f32.mxu1 %vm6398_vm4, %v6396_v9 }
0x1290   :  { %5720 = vmatprep.subr.bf16.mxu1 %v6397_v26  ;;  %v2155_v55 = vrot.slane %v2153_v18, 4 }
0x1293   :  { %5722 = vmatpush3.bf16.msra.mxu1 %v6676_v46 }
0x12f1   :  { %v2178_v12 = vpop.permute.xlu1 %2177 }
0x1348   :  { %v2108_v24 = vpop.f32.mrb[14].mxu0 }
0x1349   :  { %v2113_v38 = vrot.slane %v2108_v24, 6  ;;  %v5431_v16 = vpop.f32.mrb[15].mxu0 }
0x134b   :  { %v2115_v1 = vadd.f32 %v2113_v38, %v6703_v57 }
0x134d   :  { %6189 = vtanh.f32 %v2115_v1  ;;  %v4970_v22 = vmul.f32 -1.442695, %v2115_v1 }
0x1357   :  { %v6190_v44 = vpop.eup %6189 }
0x1358   :  { %2182 = vrot.lane.b32.xlu0 %v6190_v44, %s6400_s4 }
0x135c   :  { %1900 = vrot.lane.b32.xlu0 %v1898_v43, %s6402_s27 }
0x1361   :  { %v2028_v41 = vpop.f32.mrb[16].mxu1 }
0x1362   :  { %v2033_v11 = vrot.slane %v2028_v41, 4  ;;  %v5420_v59 = vpop.f32.mrb[17].mxu1 }
0x1364   :  { %v2035_v26 = vadd.f32 %v2033_v11, %v6706_v61 }
0x1366   :  { %6191 = vtanh.f32 %v2035_v26  ;;  %v4969_v3 = vmul.f32 -1.442695, %v2035_v26 }
0x1367   :  { %6193 = vpow2.f32 %v4970_v22 }
0x1370   :  { %v6192_v46 = vpop.eup %6191 }
0x1371   :  { %2130 = vrot.lane.b32.xlu0 %v6192_v46, %s6400_s4  ;;  %v6194_v62 = vpop.eup %6193 }
0x1372   :  { %v2171_v28 = vadd.f32 1.0, %v6194_v62 }
0x1374   :  { %6195 = vrcp.f32 %v2171_v28 }
0x1375   :  { %6197 = vpow2.f32 %v4969_v3 }
0x137e   :  { %v6196_v63 = vpop.eup %6195 }
0x137f   :  { %v6198_v48 = vpop.eup %6197  ;;  %v2180_v39 = vmul.f32 %v6196_v63, %v2178_v12 }
0x1380   :  { %v2119_v27 = vadd.f32 1.0, %v6198_v48 }
0x1382   :  { %6199 = vrcp.f32 %v2119_v27 }
0x138c   :  { %v6200_v42 = vpop.eup %6199 }
0x13ca   :  { %v2183_v49 = vpop.permute.xlu0 %2182 }
0x13cb   :  { %v2185_v10 = vmul.f32 %v6196_v63, %v2183_v49 }
0x13cd   :  { %2187 = vrot.lane.b32.xlu1 %v2185_v10, %s6401_s12 }
0x13ce   :  { %v1901_v31 = vpop.permute.xlu0 %1900 }
0x13cf   :  { %v7105_v7 = vadd.f32 %v1901_v31, %v1897_v8 }
0x13d1   :  { %v2124_v21 = vrot.slane %v7105_v7, 4 }
0x13d3   :  { %2125 = vrot.lane.b32.xlu0 %v2124_v21, %s6401_s12 }
0x13e3   :  { %v2131_v23 = vpop.permute.xlu0 %2130 }
0x13e4   :  { %v2133_v47 = vmul.f32 %v6200_v42, %v2131_v23 }
0x13e6   :  { %2135 = vrot.lane.b32.xlu1 %v2133_v47, %s6401_s12 }
0x13ea   :  { %2208 = vrot.lane.b32.xlu1 %v2207_v53, %s6402_s27 }
0x13ee   :  { %2156 = vrot.lane.b32.xlu1 %v2155_v55, %s6402_s27 }
0x143f   :  { %v2188_v24 = vpop.permute.xlu1 %2187 }
0x1440   :  { %v2190_v38 = vadd.f32 %v2188_v24, %v2180_v39 }
0x1442   :  { %6201 = vtanh.f32 %v2190_v38  ;;  %v2213_v62 = vrot.slane %v2190_v38, 2 }
0x1445   :  { %v2126_v58 = vpop.permute.xlu0 %2125 }
0x1446   :  { %v2128_v1 = vmul.f32 %v6200_v42, %v2126_v58 }
0x144c   :  { %v6202_v16 = vpop.eup %6201 }
0x144d   :  { %2193 = vrot.lane.b32.xlu0 %v6202_v16, %s6400_s4  ;;  %v2166_v16 = vmul.f32 %v7105_v7, %v6781_v35 }
0x1458   :  { %v2136_v44 = vpop.permute.xlu1 %2135 }
0x1459   :  { %v2138_v43 = vadd.f32 %v2136_v44, %v2128_v1 }
0x145b   :  { %6203 = vtanh.f32 %v2138_v43  ;;  %v2161_v28 = vrot.slane %v2138_v43, 4 }
0x145c   :  { %v2209_v26 = vpop.permute.xlu1 %2208 }
0x1465   :  { %v6204_v41 = vpop.eup %6203 }
0x1466   :  { %2141 = vrot.lane.b32.xlu0 %v6204_v41, %s6400_s4 }
0x14bf   :  { %v2194_v34 = vpop.permute.xlu0 %2193 }
0x14c0   :  { %v2196_v11 = vmul.f32 %v6196_v63, %v2194_v34 }
0x14c2   :  { %v7118_v59 = vmul.f32 %v2196_v11, %v784_v15  ;;  %v2157_v15 = vpop.permute.xlu1 %2156 }
0x14c4   :  { %v2211_v46 = vadd.f32 %v2209_v26, %v7118_v59 }
0x14c6   :  { %v2301_v22 = vrot.slane %v2211_v46, 2 }
0x14c8   :  { %2302 = vrot.lane.b32.xlu0 %v2301_v22, %s6401_s12 }
0x14cc   :  { %2214 = vrot.lane.b32.xlu0 %v2213_v62, %s6402_s27 }
0x14d0   :  { %2162 = vrot.lane.b32.xlu0 %v2161_v28, %s6402_s27 }
0x14d8   :  { %v2142_v3 = vpop.permute.xlu0 %2141 }
0x14d9   :  { %v2144_v25 = vmul.f32 %v6200_v42, %v2142_v3 }
0x14db   :  { %v7126_v63 = vmul.f32 %v2144_v25, %v848_v4 }
0x14dd   :  { %v2159_v49 = vadd.f32 %v2157_v15, %v7126_v63 }
0x14df   :  { %v2221_v10 = vrot.slane %v2159_v49, 4 }
0x14e1   :  { %2222 = vrot.lane.b32.xlu1 %v2221_v10, %s6401_s12 }
0x153a   :  { %v2303_v8 = vpop.permute.xlu0 %2302 }
0x153b   :  { %5452 = vmatmul.mubr.msk.f32.vlgmr.msra.gmra.mrb[16].mxu0 %vm253_vm5, %v2303_v8 }
0x153c   :  { %2787 = vmatprep.mubr.f32.mxu0 %v6396_v9 }
0x153e   :  { %v2215_v27 = vpop.permute.xlu0 %2214 }
0x153f   :  { %v2217_v42 = vmul.f32 %v2215_v27, %v6803_v14  ;;  %v2549_v27 = vld [vmem:[#allocation7 + $0x10] sm:$0xff] }
0x1541   :  { %v2219_v47 = vadd.f32 %v2218_v6, %v2217_v42  ;;  %v2562_v42 = vld [vmem:[#allocation7 + $0x78] sm:$0xff]  ;;  %v2564_v6 = vld [vmem:[#allocation7 + $0x88] sm:$0xff] }
0x1542   :  { %v2163_v13 = vpop.permute.xlu0 %2162 }
0x1543   :  { %v2165_v38 = vmul.f32 %v2163_v13, %v6790_v60 }
0x1553   :  { %v2223_v31 = vpop.permute.xlu1 %2222 }
0x1554   :  { %5441 = vmatmul.mubr.msk.f32.vlgmr.msra.gmra.mrb[18].mxu1 %vm253_vm5, %v2223_v31  ;;  %v2547_v31 = vld [vmem:[#allocation7] sm:$0xff] }
0x1555   :  { %2710 = vmatprep.mubr.f32.mxu1 %v6396_v9 }
0x160e   :  { %v2372_v21 = vpop.f32.mrb[16].mxu0 }
0x160f   :  { %v2376_v4 = vadd.f32 %v2372_v21, %v6703_v57  ;;  %v5453_v48 = vpop.f32.mrb[17].mxu0  ;;  %v2554_v21 = vld [vmem:[#allocation7 + $0x38] sm:$0xff] }
0x1610   :  { %v5731_v48 = vpack.c.bf16 %v2554_v21, %v2547_v31 }
0x1611   :  { %6205 = vtanh.f32 %v2376_v4  ;;  %v4974_v39 = vmul.f32 -1.442695, %v2376_v4 }
0x161b   :  { %v6206_v23 = vpop.eup %6205 }
0x161c   :  { %2426 = vrot.lane.b32.xlu1 %v6206_v23, %s6400_s4  ;;  %v2569_v23 = vld [vmem:[#allocation7 + $0xb0] sm:$0xff] }
0x1620   :  { %2421 = vrot.lane.b32.xlu1 %v2219_v47, %s6401_s12  ;;  %v5733_v47 = vpack.c.bf16 %v2569_v23, %v2562_v42 }
0x1627   :  { %v2292_v53 = vpop.f32.mrb[18].mxu1 }
0x1628   :  { %v2297_v18 = vrot.slane %v2292_v53, 2  ;;  %v5442_v55 = vpop.f32.mrb[19].mxu1 }
0x1629   :  { %v2568_v55 = vld [vmem:[#allocation7 + $0xa8] sm:$0xff] }
0x162a   :  { %v2299_v12 = vadd.f32 %v2297_v18, %v6706_v61  ;;  %v2167_v61 = vadd.f32 %v2166_v16, %v2165_v38  ;;  %v2561_v18 = vld [vmem:[#allocation7 + $0x70] sm:$0xff]  ;;  %v2575_v16 = vld [vmem:[#allocation7 + $0xe0] sm:$0xff] }
0x162b   :  { %v2585_v38 = vld [vmem:[#allocation7 + $0x130] sm:$0xff] }
0x162c   :  { %6207 = vtanh.f32 %v2299_v12  ;;  %v4973_v37 = vmul.f32 -1.442695, %v2299_v12  ;;  %v2385_v43 = vrot.slane %v2167_v61, 2  ;;  %v2563_v12 = vld [vmem:[#allocation7 + $0x80] sm:$0xff]  ;;  %v2577_v61 = vld [vmem:[#allocation7 + $0xf0] sm:$0xff] }
0x162d   :  { %6209 = vpow2.f32 %v4974_v39  ;;  %v2576_v39 = vld [vmem:[#allocation7 + $0xe8] sm:$0xff] }
0x1636   :  { %v6208_v57 = vpop.eup %6207 }
0x1637   :  { %2391 = vrot.lane.b32.xlu1 %v6208_v57, %s6400_s4  ;;  %v6210_v14 = vpop.eup %6209  ;;  %v5735_v57 = vpack.c.bf16 %v2568_v55, %v2561_v18 }
0x1638   :  { %v2416_v24 = vadd.f32 1.0, %v6210_v14  ;;  %v2583_v14 = vld [vmem:[#allocation7 + $0x120] sm:$0xff] }
0x1639   :  { %v5737_v13 = vpack.c.bf16 %v2583_v14, %v2576_v39 }
0x163a   :  { %6211 = vrcp.f32 %v2416_v24 }
0x163b   :  { %6213 = vpow2.f32 %v4973_v37  ;;  %v2578_v37 = vld [vmem:[#allocation7 + $0xf8] sm:$0xff] }
0x1644   :  { %v6212_v58 = vpop.eup %6211 }
0x1645   :  { %v6214_v41 = vpop.eup %6213 }
0x1646   :  { %v2380_v34 = vadd.f32 1.0, %v6214_v41 }
0x1648   :  { %6215 = vrcp.f32 %v2380_v34  ;;  %v2590_v34 = vld [vmem:[#allocation7 + $0x158] sm:$0xff] }
0x1652   :  { %v7147_v26 = vpop.eup %6215 }
0x168e   :  { %v2427_v1 = vpop.permute.xlu1 %2426 }
0x168f   :  { %v2429_v44 = vmul.f32 %v6212_v58, %v2427_v1  ;;  %v2582_v1 = vld [vmem:[#allocation7 + $0x118] sm:$0xff] }
0x1690   :  { %v5739_v41 = vpack.c.bf16 %v2582_v1, %v2575_v16 }
0x1691   :  { %2431 = vrot.lane.b32.xlu0 %v2429_v44, %s6401_s12  ;;  %v2584_v44 = vld [vmem:[#allocation7 + $0x128] sm:$0xff] }
0x1692   :  { %v2422_v11 = vpop.permute.xlu1 %2421 }
0x1693   :  { %v2424_v35 = vmul.f32 %v6212_v58, %v2422_v11  ;;  %v2597_v11 = vld [vmem:[#allocation7 + $0x190] sm:$0xff] }
0x1695   :  { %2386 = vrot.lane.b32.xlu0 %v2385_v43, %s6401_s12 }
0x16a9   :  { %v2392_v60 = vpop.permute.xlu1 %2391 }
0x16aa   :  { %v2394_v46 = vmul.f32 %v7147_v26, %v2392_v60  ;;  %v2592_v60 = vld [vmem:[#allocation7 + $0x168] sm:$0xff] }
0x16ac   :  { %2396 = vrot.lane.b32.xlu1 %v2394_v46, %s6401_s12 }
0x16b0   :  { %2199 = vrot.lane.b32.xlu1 %v7118_v59, %s6401_s12 }
0x16b4   :  { %1672 = vrot.lane.b32.xlu1 %v7013_v32, %s6401_s12 }
0x16b8   :  { %1137 = vrot.lane.b32.xlu1 %v6876_v52, %s6401_s12 }
0x1703   :  { %v2432_v7 = vpop.permute.xlu0 %2431 }
0x1704   :  { %v2434_v22 = vadd.f32 %v2432_v7, %v2424_v35  ;;  %v5755_v35 = vpack.c.bf16 %v2584_v44, %v2577_v61  ;;  %v2599_v7 = vld [vmem:[#allocation7 + $0x1a0] sm:$0xff] }
0x1706   :  { %6217 = vtanh.f32 %v2434_v22  ;;  %v2589_v22 = vld [vmem:[#allocation7 + $0x150] sm:$0xff] }
0x1707   :  { %v2387_v59 = vpop.permute.xlu0 %2386 }
0x1708   :  { %v2389_v28 = vmul.f32 %v7147_v26, %v2387_v59  ;;  %v5741_v59 = vpack.c.bf16 %v2597_v11, %v2590_v34 }
0x1710   :  { %v6218_v62 = vpop.eup %6217 }
0x1711   :  { %2437 = vrot.lane.b32.xlu0 %v6218_v62, %s6400_s4  ;;  %v2596_v62 = vld [vmem:[#allocation7 + $0x188] sm:$0xff] }
0x1715   :  { %1935 = vrot.lane.b32.xlu0 %v7064_v29, %s6401_s12 }
0x1719   :  { %1415 = vrot.lane.b32.xlu0 %v6953_v36, %s6401_s12 }
0x171e   :  { %v2397_v32 = vpop.permute.xlu1 %2396 }
0x171f   :  { %v2399_v3 = vadd.f32 %v2397_v32, %v2389_v28  ;;  %v5757_v28 = vpack.c.bf16 %v2599_v7, %v2592_v60  ;;  %v2591_v32 = vld [vmem:[#allocation7 + $0x160] sm:$0xff] }
0x1721   :  { %6219 = vtanh.f32 %v2399_v3  ;;  %v2598_v3 = vld [vmem:[#allocation7 + $0x198] sm:$0xff] }
0x1722   :  { %v2200_v52 = vpop.permute.xlu1 %2199 }
0x1723   :  { %2203 = vst.msk [vmem:[#allocation3] sm:$0xc] %vm792_vm6, %v2200_v52 }
0x1726   :  { %v1673_v25 = vpop.permute.xlu1 %1672 }
0x1727   :  { %1676 = vst.msk [vmem:[#allocation3] sm:$0xc0] %vm576_vm7, %v1673_v25 }
0x172a   :  { %v1138_v15 = vpop.permute.xlu1 %1137 }
0x172b   :  { %v6220_v49 = vpop.eup %6219  ;;  %1141 = vst.msk [vmem:[#allocation3 + $0x8] sm:$0xc] %vm792_vm6, %v1138_v15  ;;  %v5743_v15 = vpack.c.bf16 %v2596_v62, %v2589_v22 }
0x172c   :  { %2402 = vrot.lane.b32.xlu0 %v6220_v49, %s6400_s4 }
0x172e   :  { %v2458_v21 = vld [vmem:[#allocation3 + $0x6] sm:$0x3] }
0x1730   :  { %852 = vrot.lane.b32.xlu0 %v6795_v5, %s6401_s12 }
0x1734   :  { %788 = vrot.lane.b32.xlu0 %v6810_v19, %s6401_s12  ;;  %v2550_v19 = vld [vmem:[#allocation7 + $0x18] sm:$0xff] }
0x1738   :  { %525 = vrot.lane.b32.xlu0 %v6747_v56, %s6401_s12  ;;  %v2548_v56 = vld [vmem:[#allocation7 + $0x8] sm:$0xff] }
0x173c   :  { %1624 = vrot.lane.b32.xlu0 %v7019_v30, %s6401_s12 }
0x1740   :  { %2147 = vrot.lane.b32.xlu0 %v7126_v63, %s6401_s12  ;;  %v2557_v63 = vld [vmem:[#allocation7 + $0x50] sm:$0xff] }
0x1741   :  { %v5745_v4 = vpack.c.bf16 %v2557_v63, %v2550_v19  ;;  %v2456_v63 = vld [vmem:[#allocation3 + $0x2] sm:$0x3] }
0x1743   :  { %5746 = vmatprep.subr.bf16.mxu0 %v5745_v4 }
0x1783   :  { %v2438_v36 = vpop.permute.xlu0 %2437 }
0x1784   :  { %v2440_v29 = vmul.f32 %v6212_v58, %v2438_v36  ;;  %v5753_v58 = vpack.c.bf16 %v2585_v38, %v2578_v37 }
0x1786   :  { %v2441_v10 = vmul.f32 %v2440_v29, %v6741_v45  ;;  %v2555_v45 = vld [vmem:[#allocation7 + $0x40] sm:$0xff] }
0x1787   :  { %v1936_v8 = vpop.permute.xlu0 %1935  ;;  %v5729_v30 = vpack.c.bf16 %v2555_v45, %v2548_v56  ;;  %v2560_v45 = vld [vmem:[#allocation7 + $0x68] sm:$0xff] }
0x1788   :  { %1939 = vst.msk [vmem:[#allocation3] sm:$0x30] %vm856_vm8, %v1936_v8  ;;  %2443 = vrot.lane.b32.xlu1 %v2441_v10, %s6401_s12  ;;  %v2552_v10 = vld [vmem:[#allocation7 + $0x28] sm:$0xff]  ;;  %v2559_v8 = vld [vmem:[#allocation7 + $0x60] sm:$0xff] }
0x1789   :  { %5730 = vmatprep.subr.bf16.mxu1 %v5729_v30  ;;  %v5761_v56 = vpack.c.bf16 %v2559_v8, %v2552_v10 }
0x178a   :  { %5732 = vmatpush1.bf16.msra.mxu1 %v5731_v48  ;;  %v2460_v48 = vld [vmem:[#allocation3 + $0xa] sm:$0x3] }
0x178b   :  { %v1416_v5 = vpop.permute.xlu0 %1415  ;;  %5734 = vmatprep.subr.bf16.mxu1 %v5733_v47 }
0x178c   :  { %1419 = vst.msk [vmem:[#allocation3 + $0x8] sm:$0x3] %vm528_vm9, %v1416_v5  ;;  %572 = vrot.lane.b32.xlu1 %v6736_v40, %s6401_s12  ;;  %v2556_v40 = vld [vmem:[#allocation7 + $0x48] sm:$0xff]  ;;  %v2553_v5 = vld [vmem:[#allocation7 + $0x30] sm:$0xff] }
0x178d   :  { %v7199_v19 = vpack.c.bf16 %v2560_v45, %v2553_v5 }
0x178e   :  { %5736 = vmatpush1.bf16.msra.mxu1 %v5735_v57 }
0x178f   :  { %5738 = vmatprep.subr.bf16.mxu1 %v5737_v13  ;;  %v2457_v31 = vld [vmem:[#allocation3 + $0x4] sm:$0x3] }
0x1790   :  { %1075 = vrot.lane.b32.xlu1 %v6887_v20, %s6401_s12  ;;  %v5747_v20 = vpack.c.bf16 %v2556_v40, %v2549_v27  ;;  %v2501_v27 = vrot.slane %v2456_v63, 7 }
0x1792   :  { %5748 = vmatpush1.bf16.msra.mxu0 %v5747_v20  ;;  %5740 = vmatpush1.bf16.msra.mxu1 %v5739_v41  ;;  %v2503_v20 = vrot.slane %v2457_v31, 6  ;;  %v2551_v31 = vld [vmem:[#allocation7 + $0x20] sm:$0xff] }
0x1793   :  { %5742 = vmatprep.subr.bf16.mxu1 %v5741_v59  ;;  %v2459_v4 = vld [vmem:[#allocation3 + $0x8] sm:$0x3] }
0x1794   :  { %1356 = vrot.lane.b32.xlu1 %v6965_v2, %s6401_s12  ;;  %v2571_v2 = vld [vmem:[#allocation7 + $0xc0] sm:$0xff] }
0x1795   :  { %v5749_v53 = vpack.c.bf16 %v2571_v2, %v2564_v6  ;;  %v2505_v6 = vrot.slane %v2458_v21, 5  ;;  %v2558_v21 = vld [vmem:[#allocation7 + $0x58] sm:$0xff] }
0x1796   :  { %5744 = vmatpush1.bf16.msra.mxu1 %v5743_v15 }
0x1797   :  { %5750 = vmatprep.subr.bf16.mxu0 %v5749_v53  ;;  %5762 = vmatprep.subr.bf16.mxu1 %v5761_v56  ;;  %v2507_v53 = vrot.slane %v2459_v4, 4  ;;  %v2566_v4 = vld [vmem:[#allocation7 + $0x98] sm:$0xff] }
0x1798   :  { %1882 = vrot.lane.b32.xlu1 %v7074_v17, %s6401_s12  ;;  %v2570_v17 = vld [vmem:[#allocation7 + $0xb8] sm:$0xff] }
0x1799   :  { %v5751_v24 = vpack.c.bf16 %v2570_v17, %v2563_v12  ;;  %v2509_v12 = vrot.slane %v2460_v48, 3  ;;  %v2573_v48 = vld [vmem:[#allocation7 + $0xd0] sm:$0xff] }
0x179b   :  { %5752 = vmatpush1.bf16.msra.mxu0 %v5751_v24 }
0x179c   :  { %5754 = vmatprep.subr.bf16.mxu0 %v5753_v58 }
0x179e   :  { %v2403_v43 = vpop.permute.xlu0 %2402 }
0x179f   :  { %v2405_v46 = vmul.f32 %v7147_v26, %v2403_v43  ;;  %5756 = vmatpush1.bf16.msra.mxu0 %v5755_v35  ;;  %v5759_v26 = vpack.c.bf16 %v2598_v3, %v2591_v32 }
0x17a0   :  { %5758 = vmatprep.subr.bf16.mxu0 %v5757_v28 }
0x17a1   :  { %v2406_v52 = vmul.f32 %v2405_v46, %v568_v0 }
0x17a2   :  { %v853_v25 = vpop.permute.xlu0 %852 }
0x17a3   :  { %857 = vst.msk [vmem:[#allocation3 + $0x8] sm:$0x30] %vm856_vm8, %v853_v25  ;;  %2408 = vrot.lane.b32.xlu1 %v2406_v52, %s6401_s12  ;;  %5760 = vmatpush1.bf16.msra.mxu0 %v5759_v26 }
0x17a4   :  { %5778 = vmatprep.subr.bf16.mxu0 %v7199_v19 }
0x17a6   :  { %v789_v49 = vpop.permute.xlu0 %788 }
0x17a7   :  { %793 = vst.msk [vmem:[#allocation2] sm:$0xc] %vm792_vm6, %v789_v49 }
0x17aa   :  { %v526_v36 = vpop.permute.xlu0 %525  ;;  %v2461_v23 = vld [vmem:[#allocation3 + $0xc] sm:$0x3] }
0x17ab   :  { %529 = vst.msk [vmem:[#allocation2] sm:$0x3] %vm528_vm9, %v526_v36  ;;  %v2511_v14 = vrot.slane %v2461_v23, 2 }
0x17ae   :  { %v1625_v33 = vpop.permute.xlu0 %1624  ;;  %v2448_v34 = vld [vmem:[#allocation2 + $0x2] sm:$0x3] }
0x17af   :  { %1628 = vst.msk [vmem:[#allocation2 + $0x8] sm:$0x3] %vm528_vm9, %v1625_v33  ;;  %v2471_v35 = vrot.slane %v2448_v34, 7 }
0x17b2   :  { %v2148_v0 = vpop.permute.xlu0 %2147  ;;  %v2447_v60 = vld [vmem:[#allocation2] sm:$0x3] }
0x17b3   :  { %2151 = vst.msk [vmem:[#allocation2 + $0x8] sm:$0x30] %vm856_vm8, %v2148_v0  ;;  %v2519_v62 = vsel %vm2475_vm11, %v2471_v35, %v2447_v60  ;;  %v2473_v59 = vsel %vm2472_vm13, %v2471_v35, %v2447_v60  ;;  %v2593_v35 = vld [vmem:[#allocation7 + $0x170] sm:$0xff] }
0x17b6   :  { %v2451_v46 = vld [vmem:[#allocation2 + $0x8] sm:$0x3] }
0x17b7   :  { %v2480_v28 = vrot.slane %v2451_v46, 4 }
0x17ba   :  { %v2453_v52 = vld [vmem:[#allocation2 + $0xc] sm:$0x3] }
0x17bb   :  { %v2486_v0 = vrot.slane %v2453_v52, 2 }
0x17fa   :  { %v2444_v29 = vpop.permute.xlu1 %2443 }
0x17fb   :  { %2446 = vst.msk [vmem:[#allocation3] sm:$0x3] %vm528_vm9, %v2444_v29 }
0x17fe   :  { %v573_v30 = vpop.permute.xlu1 %572 }
0x17ff   :  { %577 = vst.msk [vmem:[#allocation3 + $0x8] sm:$0xc0] %vm576_vm7, %v573_v30 }
0x1802   :  { %v1076_v40 = vpop.permute.xlu1 %1075  ;;  %v2455_v42 = vld [vmem:[#allocation3] sm:$0x3] }
0x1803   :  { %1079 = vst.msk [vmem:[#allocation2] sm:$0x30] %vm856_vm8, %v1076_v40  ;;  %v2527_v2 = vsel %vm2475_vm11, %v2501_v27, %v2455_v42  ;;  %v2502_v47 = vsel %vm2472_vm13, %v2501_v27, %v2455_v42  ;;  %v2567_v27 = vld [vmem:[#allocation7 + $0xa0] sm:$0xff]  ;;  %v2574_v40 = vld [vmem:[#allocation7 + $0xd8] sm:$0xff]  ;;  %v5763_v42 = vpack.c.bf16 %v2558_v21, %v2551_v31 }
0x1804   :  { %v2528_v18 = vsel %vm2478_vm10, %v2503_v20, %v2527_v2  ;;  %v2504_v55 = vsel %vm2475_vm11, %v2503_v20, %v2502_v47  ;;  %v5781_v2 = vpack.c.bf16 %v2574_v40, %v2567_v27  ;;  %v2565_v47 = vld [vmem:[#allocation7 + $0x90] sm:$0xff]  ;;  %v3023_v31 = vld [vmem:[#allocation9 + $0x118] sm:$0xff]  ;;  %v3008_v21 = vld [vmem:[#allocation9 + $0xa0] sm:$0xff] }
0x1805   :  { %v2529_v57 = vsel %vm2481_vm12, %v2505_v6, %v2528_v18  ;;  %v2506_v17 = vsel %vm2478_vm10, %v2505_v6, %v2504_v55  ;;  %v5765_v6 = vpack.c.bf16 %v2573_v48, %v2566_v4  ;;  %v2580_v18 = vld [vmem:[#allocation7 + $0x108] sm:$0xff]  ;;  %v3040_v48 = vld [vmem:[#allocation9 + $0x1a0] sm:$0xff] }
0x1806   :  { %v1357_v39 = vpop.permute.xlu1 %1356  ;;  %v2530_v24 = vsel %vm2484_vm14, %v2507_v53, %v2529_v57  ;;  %v2462_v13 = vld [vmem:[#allocation3 + $0xe] sm:$0x3]  ;;  %v2508_v37 = vsel %vm2481_vm12, %v2507_v53, %v2506_v17  ;;  %v2572_v53 = vld [vmem:[#allocation7 + $0xc8] sm:$0xff]  ;;  %v2581_v57 = vld [vmem:[#allocation7 + $0x110] sm:$0xff] }
0x1807   :  { %1360 = vst.msk [vmem:[#allocation2] sm:$0xc0] %vm576_vm7, %v1357_v39  ;;  %v2531_v38 = vsel %vm2487_vm15, %v2509_v12, %v2530_v24  ;;  %v2510_v16 = vsel %vm2484_vm14, %v2509_v12, %v2508_v37  ;;  %v2513_v58 = vrot.slane %v2462_v13, 1  ;;  %v2587_v12 = vld [vmem:[#allocation7 + $0x140] sm:$0xff]  ;;  %v2588_v17 = vld [vmem:[#allocation7 + $0x148] sm:$0xff] }
0x1808   :  { %v2532_v1 = vsel %vm2490_vm0, %v2511_v14, %v2531_v38  ;;  %v2512_v61 = vsel %vm2487_vm15, %v2511_v14, %v2510_v16  ;;  %v5767_v14 = vpack.c.bf16 %v2572_v53, %v2565_v47  ;;  %v5769_v13 = vpack.c.bf16 %v2587_v12, %v2580_v18  ;;  %v2579_v38 = vld [vmem:[#allocation7 + $0x100] sm:$0xff]  ;;  %v2586_v16 = vld [vmem:[#allocation7 + $0x138] sm:$0xff]  ;;  %v3009_v4 = vld [vmem:[#allocation9 + $0xa8] sm:$0xff] }
0x1809   :  { %2533 = vrot.lane.b32.xlu1 %v2532_v1, %s6401_s12  ;;  %v2514_v44 = vsel %vm2490_vm0, %v2513_v58, %v2512_v61  ;;  %v5785_v37 = vpack.c.bf16 %v2588_v17, %v2581_v57  ;;  %v2601_v61 = vld [vmem:[#allocation7 + $0x1b0] sm:$0xff]  ;;  %v5771_v34 = vpack.c.bf16 %v2586_v16, %v2579_v38  ;;  %v3041_v27 = vld [vmem:[#allocation9 + $0x1a8] sm:$0xff]  ;;  %v3043_v57 = vld [vmem:[#allocation9 + $0x1b8] sm:$0xff] }
0x180a   :  { %v1883_v43 = vpop.permute.xlu1 %1882  ;;  %2515 = vrot.lane.b32.xlu0 %v2514_v44, %s6401_s12  ;;  %v2449_v41 = vld [vmem:[#allocation2 + $0x4] sm:$0x3]  ;;  %v5833_v47 = vpack.c.bf16 %v3041_v27, %v3040_v48  ;;  %v3025_v53 = vld [vmem:[#allocation9 + $0x128] sm:$0xff]  ;;  %v3010_v18 = vld [vmem:[#allocation9 + $0xb0] sm:$0xff] }
0x180b   :  { %1886 = vst.msk [vmem:[#allocation2 + $0x8] sm:$0xc] %vm792_vm6, %v1883_v43  ;;  %v2474_v11 = vrot.slane %v2449_v41, 6  ;;  %v2595_v44 = vld [vmem:[#allocation7 + $0x180] sm:$0xff]  ;;  %v2602_v43 = vld [vmem:[#allocation7 + $0x1b8] sm:$0xff]  ;;  %v3042_v12 = vld [vmem:[#allocation9 + $0x1b0] sm:$0xff] }
0x180c   :  { %v5789_v46 = vpack.c.bf16 %v2602_v43, %v2595_v44  ;;  %v5837_v38 = vpack.c.bf16 %v3043_v57, %v3042_v12  ;;  %v3027_v16 = vld [vmem:[#allocation9 + $0x138] sm:$0xff]  ;;  %v3045_v44 = vld [vmem:[#allocation9 + $0x1c8] sm:$0xff]  ;;  %v3018_v48 = vld [vmem:[#allocation9 + $0xf0] sm:$0xff]  ;;  %vm2984_vm6 = vcmask 1040384  }
0x180d   :  { %v2520_v32 = vsel %vm2478_vm10, %v2474_v11, %v2519_v62  ;;  %v2476_v3 = vsel %vm2475_vm11, %v2474_v11, %v2473_v59  ;;  %v3005_v62 = vld [vmem:[#allocation9 + $0x88] sm:$0xff]  ;;  %v3036_v59 = vld [vmem:[#allocation9 + $0x180] sm:$0xff]  ;;  %v3019_v27 = vld [vmem:[#allocation9 + $0xf8] sm:$0xff] }
0x180e   :  { %2535 = vrot.lane.b32.xlu0 %v2513_v58, %s6401_s12  ;;  %v2450_v7 = vld [vmem:[#allocation2 + $0x6] sm:$0x3]  ;;  %v2594_v58 = vld [vmem:[#allocation7 + $0x178] sm:$0xff]  ;;  %v3069_v57 = vld [vmem:[#allocation9 + $0x288] sm:$0xff] }
0x180f   :  { %v2477_v22 = vrot.slane %v2450_v7, 5  ;;  %v5773_v60 = vpack.c.bf16 %v2601_v61, %v2594_v58  ;;  %v2600_v7 = vld [vmem:[#allocation7 + $0x1a8] sm:$0xff]  ;;  %v3012_v58 = vld [vmem:[#allocation9 + $0xc0] sm:$0xff] }
0x1810   :  { %v3044_v61 = vld [vmem:[#allocation9 + $0x1c0] sm:$0xff] }
0x1811   :  { %v2521_v25 = vsel %vm2481_vm12, %v2477_v22, %v2520_v32  ;;  %v2479_v15 = vsel %vm2478_vm10, %v2477_v22, %v2476_v3  ;;  %v3004_v22 = vld [vmem:[#allocation9 + $0x80] sm:$0xff]  ;;  %v5775_v32 = vpack.c.bf16 %v2600_v7, %v2593_v35  ;;  %v3029_v35 = vld [vmem:[#allocation9 + $0x148] sm:$0xff]  ;;  %v3014_v7 = vld [vmem:[#allocation9 + $0xd0] sm:$0xff] }
0x1812   :  { %v2452_v26 = vld [vmem:[#allocation2 + $0xa] sm:$0x3]  ;;  %v2522_v49 = vsel %vm2484_vm14, %v2480_v28, %v2521_v25  ;;  %v2482_v36 = vsel %vm2481_vm12, %v2480_v28, %v2479_v15  ;;  %v5793_v3 = vpack.c.bf16 %v3005_v62, %v3004_v22  ;;  %v2988_v25 = vld [vmem:[#allocation9] sm:$0xff]  ;;  %v3015_v22 = vld [vmem:[#allocation9 + $0xd8] sm:$0xff] }
0x1813   :  { %v2483_v33 = vrot.slane %v2452_v26, 3  ;;  %v3037_v28 = vld [vmem:[#allocation9 + $0x188] sm:$0xff]  ;;  %v3020_v26 = vld [vmem:[#allocation9 + $0x100] sm:$0xff]  ;;  %v3046_v62 = vld [vmem:[#allocation9 + $0x1d0] sm:$0xff] }
0x1814   :  { %v5825_v52 = vpack.c.bf16 %v3037_v28, %v3036_v59  ;;  %v2989_v15 = vld [vmem:[#allocation9 + $0x8] sm:$0xff]  ;;  %v3047_v59 = vld [vmem:[#allocation9 + $0x1d8] sm:$0xff]  ;;  %v3068_v12 = vld [vmem:[#allocation9 + $0x280] sm:$0xff] }
0x1815   :  { %v2409_v29 = vpop.permute.xlu1 %2408  ;;  %v2523_v10 = vsel %vm2487_vm15, %v2483_v33, %v2522_v49  ;;  %v2485_v8 = vsel %vm2484_vm14, %v2483_v33, %v2482_v36  ;;  %v3021_v49 = vld [vmem:[#allocation9 + $0x108] sm:$0xff]  ;;  %v3006_v36 = vld [vmem:[#allocation9 + $0x90] sm:$0xff]  ;;  %v3007_v33 = vld [vmem:[#allocation9 + $0x98] sm:$0xff] }
0x1816   :  { %2412 = vst.msk [vmem:[#allocation2 + $0x8] sm:$0xc0] %vm576_vm7, %v2409_v29  ;;  %v2524_v5 = vsel %vm2490_vm0, %v2486_v0, %v2523_v10  ;;  %v2488_v56 = vsel %vm2487_vm15, %v2486_v0, %v2485_v8  ;;  %v3038_v0 = vld [vmem:[#allocation9 + $0x190] sm:$0xff]  ;;  %v3039_v29 = vld [vmem:[#allocation9 + $0x198] sm:$0xff]  ;;  %v5795_v10 = vpack.c.bf16 %v2989_v15, %v2988_v25  ;;  %v5827_v8 = vpack.c.bf16 %v3021_v49, %v3020_v26 }
0x1817   :  { %v2999_v25 = vld [vmem:[#allocation9 + $0x58] sm:$0xff]  ;;  %v3030_v15 = vld [vmem:[#allocation9 + $0x150] sm:$0xff]  ;;  %v5845_v26 = vpack.c.bf16 %v3047_v59, %v3046_v62  ;;  %vm2986_vm7 = vcmask 25600  }
0x1818   :  { %v3031_v49 = vld [vmem:[#allocation9 + $0x158] sm:$0xff]  ;;  %v3086_v59 = vld [vmem:[#allocation9 + $0x310] sm:$0xff] }
0x1819   :  { %v3071_v62 = vld [vmem:[#allocation9 + $0x298] sm:$0xff] }
0x181d   :  { %v2454_v45 = vld [vmem:[#allocation2 + $0xe] sm:$0x3] }
0x181e   :  { %v2489_v30 = vrot.slane %v2454_v45, 1  ;;  %v2991_v45 = vld [vmem:[#allocation9 + $0x18] sm:$0xff] }
0x1820   :  { %v2491_v63 = vsel %vm2490_vm0, %v2489_v30, %v2488_v56  ;;  %v2990_v56 = vld [vmem:[#allocation9 + $0x10] sm:$0xff] }
0x1821   :  { %v5799_v40 = vpack.c.bf16 %v2991_v45, %v2990_v56  ;;  %v3000_v56 = vld [vmem:[#allocation9 + $0x60] sm:$0xff]  ;;  %v3001_v45 = vld [vmem:[#allocation9 + $0x68] sm:$0xff] }
0x187b   :  { %v2534_v20 = vpop.permute.xlu1 %2533 }
0x187c   :  { %v2516_v23 = vpop.permute.xlu0 %2515  ;;  %v2539_v39 = vsel %vm253_vm5, %v2524_v5, %v2534_v20  ;;  %v5797_v5 = vpack.c.bf16 %v3007_v33, %v3006_v36  ;;  %v5801_v20 = vpack.c.bf16 %v3009_v4, %v3008_v21  ;;  %v3016_v36 = vld [vmem:[#allocation9 + $0xe0] sm:$0xff]  ;;  %v3017_v33 = vld [vmem:[#allocation9 + $0xe8] sm:$0xff]  ;;  %v5819_v21 = vpack.c.bf16 %v3001_v45, %v3000_v56 }
0x187d   :  { %v7237_v55 = vsel %vm253_vm5, %v2491_v63, %v2516_v23  ;;  %v5829_v63 = vpack.c.bf16 %v3039_v29, %v3038_v0  ;;  %v2992_v23 = vld [vmem:[#allocation9 + $0x20] sm:$0xff]  ;;  %v3049_v29 = vld [vmem:[#allocation9 + $0x1e8] sm:$0xff] }
0x187e   :  { %4975 = vmatmul.mubr.msk.f32.vlgmr.msra.gmra.mrb[20].mxu1 %vm2640_vm1, %v7237_v55  ;;  %4977 = vmatmul.mubr.msk.f32.vlgmr.msra.gmra.mrb[18].mxu0 %vm2640_vm1, %v7237_v55  ;;  %v3048_v0 = vld [vmem:[#allocation9 + $0x1e0] sm:$0xff] }
0x187f   :  { %5764 = vmatpush1.bf16.msra.mxu1 %v5763_v42  ;;  %5780 = vmatpush3.bf16.msra.mxu0 %v7199_v19  ;;  %v2544_v19 = vrot.slane %v2539_v39, 1 }
0x1880   :  { %v2536_v24 = vpop.permute.xlu0 %2535  ;;  %5766 = vmatprep.subr.bf16.mxu1 %v5765_v6  ;;  %5782 = vmatprep.subr.bf16.mxu0 %v5781_v2  ;;  %v2993_v6 = vld [vmem:[#allocation9 + $0x28] sm:$0xff] }
0x1881   :  { %v2540_v1 = vsel %vm253_vm5, %v2489_v30, %v2536_v24  ;;  %2716 = vmatprep.mubr.f32.mxu1 %v6396_v9  ;;  %2793 = vmatprep.mubr.f32.mxu0 %v6396_v9  ;;  %v3022_v30 = vld [vmem:[#allocation9 + $0x110] sm:$0xff]  ;;  %v5803_v17 = vpack.c.bf16 %v2993_v6, %v2992_v23  ;;  %v3003_v6 = vld [vmem:[#allocation9 + $0x78] sm:$0xff] }
0x1882   :  { %v2545_v41 = vrot.slane %v2540_v1, 1  ;;  %v5831_v42 = vpack.c.bf16 %v3023_v31, %v3022_v30  ;;  %v2994_v24 = vld [vmem:[#allocation9 + $0x30] sm:$0xff]  ;;  %v3013_v1 = vld [vmem:[#allocation9 + $0xc8] sm:$0xff]  ;;  %v5849_v30 = vpack.c.bf16 %v3049_v29, %v3048_v0 }
0x1883   :  { %5768 = vmatpush1.bf16.msra.mxu1 %v5767_v14  ;;  %5784 = vmatpush3.bf16.msra.mxu0 %v5781_v2  ;;  %v3024_v2 = vld [vmem:[#allocation9 + $0x120] sm:$0xff]  ;;  %v3033_v31 = vld [vmem:[#allocation9 + $0x168] sm:$0xff]  ;;  %v3002_v23 = vld [vmem:[#allocation9 + $0x70] sm:$0xff] }
0x1884   :  { %v7248_v11 = vsel %vm2543_vm2, %v2544_v19, %v2545_v41  ;;  %5770 = vmatprep.subr.bf16.mxu1 %v5769_v13  ;;  %5786 = vmatprep.subr.bf16.mxu0 %v5785_v37  ;;  %v5835_v39 = vpack.c.bf16 %v3025_v53, %v3024_v2  ;;  %v2995_v13 = vld [vmem:[#allocation9 + $0x38] sm:$0xff]  ;;  %v5809_v41 = vpack.c.bf16 %v3013_v1, %v3012_v58  ;;  %v3034_v53 = vld [vmem:[#allocation9 + $0x170] sm:$0xff] }
0x1885   :  { %4976 = vmatmul.mubr.msk.f32.gmra.mrb[22].mxu1 %vm2640_vm1, %v7248_v11  ;;  %4978 = vmatmul.mubr.msk.f32.gmra.mrb[20].mxu0 %vm2640_vm1, %v7248_v11  ;;  %v5807_v43 = vpack.c.bf16 %v2995_v13, %v2994_v24  ;;  %v2615_v13 = vsub.s32 2, %v6691_v50 }
0x1886   :  { %5470 = vmatprep.mubr.msk.f32.mxu0 %vm2640_vm1, %v7237_v55  ;;  %2864 = vmatprep.mubr.f32.mxu1 %v6396_v9 }
0x1887   :  { %5772 = vmatpush1.bf16.msra.mxu1 %v5771_v34  ;;  %5788 = vmatpush3.bf16.msra.mxu0 %v5785_v37  ;;  %v3026_v37 = vld [vmem:[#allocation9 + $0x130] sm:$0xff]  ;;  %v2996_v34 = vld [vmem:[#allocation9 + $0x40] sm:$0xff] }
0x1888   :  { %5774 = vmatprep.subr.bf16.mxu1 %v5773_v60  ;;  %5790 = vmatprep.subr.bf16.mxu0 %v5789_v46  ;;  %v5839_v19 = vpack.c.bf16 %v3027_v16, %v3026_v37  ;;  %v3028_v60 = vld [vmem:[#allocation9 + $0x140] sm:$0xff] }
0x1889   :  { %v7268_v37 = vld [vmem:[%s7468_s8] sm:$0xff] }
0x188a   :  { %v2608_v16 = vrot.slane %v7268_v37, %v6701_v54  ;;  %v2616_v58 = vrot.slane %v7268_v37, %v2615_v13  ;;  %v2612_v1 = vrot.slane %v7268_v37, %v6694_v51 }
0x188b   :  { %5776 = vmatpush1.bf16.msra.mxu1 %v5775_v32  ;;  %5792 = vmatpush3.bf16.msra.mxu0 %v5789_v46  ;;  %v5841_v46 = vpack.c.bf16 %v3045_v44, %v3044_v61  ;;  %v5843_v32 = vpack.c.bf16 %v3029_v35, %v3028_v60  ;;  %v3052_v60 = vld [vmem:[#allocation9 + $0x200] sm:$0xff]  ;;  %v3070_v35 = vld [vmem:[#allocation9 + $0x290] sm:$0xff] }
0x188c   :  { %5794 = vmatprep.subr.bf16.mxu1 %v5793_v3  ;;  %5826 = vmatprep.subr.bf16.mxu0 %v5825_v52  ;;  %v5813_v3 = vpack.c.bf16 %v3015_v22, %v3014_v7  ;;  %v2998_v52 = vld [vmem:[#allocation9 + $0x50] sm:$0xff] }
0x188e   :  { %4979 = vmatmul.mubr.msk.f32.vlgmr.msra.gmra.mrb[24].mxu1 %vm2640_vm1, %v7237_v55  ;;  %5471 = vmatmul.mubr.msk.f32.vlgmr.msra.gmra.mrb[22].mxu0 %vm2640_vm1, %v7248_v11  ;;  %v3011_v55 = vld [vmem:[#allocation9 + $0xb8] sm:$0xff] }
0x188f   :  { %2870 = vmatprep.mubr.f32.mxu1 %v6396_v9  ;;  %5796 = vmatpush3.bf16.msra.mxu1 %v5795_v10  ;;  %v5805_v14 = vpack.c.bf16 %v3011_v55, %v3010_v18  ;;  %v5815_v10 = vpack.c.bf16 %v2999_v25, %v2998_v52  ;;  %v3035_v18 = vld [vmem:[#allocation9 + $0x178] sm:$0xff] }
0x1890   :  { %5828 = vmatpush3.bf16.msra.mxu0 %v5827_v8  ;;  %5798 = vmatprep.subr.bf16.mxu1 %v5797_v5  ;;  %v5847_v8 = vpack.c.bf16 %v3031_v49, %v3030_v15  ;;  %v5817_v5 = vpack.c.bf16 %v3017_v33, %v3016_v36  ;;  %v5855_v55 = vpack.c.bf16 %v3035_v18, %v3034_v53  ;;  %v3054_v36 = vld [vmem:[#allocation9 + $0x210] sm:$0xff]  ;;  %v3055_v33 = vld [vmem:[#allocation9 + $0x218] sm:$0xff] }
0x1891   :  { %5830 = vmatprep.subr.bf16.mxu0 %v5829_v63  ;;  %v3032_v63 = vld [vmem:[#allocation9 + $0x160] sm:$0xff] }
0x1892   :  { %4980 = vmatmul.mubr.msk.f32.gmra.mrb[26].mxu1 %vm2640_vm1, %v7248_v11  ;;  %v2997_v11 = vld [vmem:[#allocation9 + $0x48] sm:$0xff]  ;;  %v5851_v4 = vpack.c.bf16 %v3033_v31, %v3032_v63  ;;  %v3088_v31 = vld [vmem:[#allocation9 + $0x320] sm:$0xff] }
0x1893   :  { %5800 = vmatpush3.bf16.msra.mxu1 %v5799_v40  ;;  %v5811_v28 = vpack.c.bf16 %v2997_v11, %v2996_v34  ;;  %v3050_v40 = vld [vmem:[#allocation9 + $0x1f0] sm:$0xff]  ;;  %v3073_v63 = vld [vmem:[#allocation9 + $0x2a8] sm:$0xff] }
0x1894   :  { %5832 = vmatpush3.bf16.msra.mxu0 %v5831_v42  ;;  %5802 = vmatprep.subr.bf16.mxu1 %v5801_v20  ;;  %v5821_v42 = vpack.c.bf16 %v3019_v27, %v3018_v48  ;;  %v3051_v20 = vld [vmem:[#allocation9 + $0x1f8] sm:$0xff]  ;;  %v2631_v27 = vsub.s32 6, %v6691_v50 }
0x1895   :  { %5834 = vmatprep.subr.bf16.mxu0 %v5833_v47  ;;  %v5853_v2 = vpack.c.bf16 %v3051_v20, %v3050_v40  ;;  %v5823_v47 = vpack.c.bf16 %v3003_v6, %v3002_v23  ;;  %v3056_v40 = vld [vmem:[#allocation9 + $0x220] sm:$0xff]  ;;  %v3074_v20 = vld [vmem:[#allocation9 + $0x2b0] sm:$0xff]  ;;  %v2627_v23 = vsub.s32 5, %v6691_v50  ;;  %v3075_v6 = vld [vmem:[#allocation9 + $0x2b8] sm:$0xff] }
0x1897   :  { %5804 = vmatpush3.bf16.msra.mxu1 %v5803_v17  ;;  %v3084_v17 = vld [vmem:[#allocation9 + $0x300] sm:$0xff] }
0x1898   :  { %5836 = vmatpush3.bf16.msra.mxu0 %v5835_v39  ;;  %5806 = vmatprep.subr.bf16.mxu1 %v5805_v14  ;;  %v5857_v39 = vpack.c.bf16 %v3069_v57, %v3068_v12  ;;  %v3085_v14 = vld [vmem:[#allocation9 + $0x308] sm:$0xff] }
0x1899   :  { %5838 = vmatprep.subr.bf16.mxu0 %v5837_v38  ;;  %v5889_v24 = vpack.c.bf16 %v3085_v14, %v3084_v17  ;;  %v2619_v38 = vsub.s32 3, %v6691_v50  ;;  %v2632_v14 = vrot.slane %v7268_v37, %v2631_v27 }
0x189b   :  { %5808 = vmatpush3.bf16.msra.mxu1 %v5807_v43  ;;  %v2620_v61 = vrot.slane %v7268_v37, %v2619_v38 }
0x189c   :  { %5840 = vmatpush3.bf16.msra.mxu0 %v5839_v19  ;;  %5810 = vmatprep.subr.bf16.mxu1 %v5809_v41 }
0x189d   :  { %5842 = vmatprep.subr.bf16.mxu0 %v5841_v46  ;;  %v3053_v46 = vld [vmem:[#allocation9 + $0x208] sm:$0xff] }
0x189e   :  { %v5859_v52 = vpack.c.bf16 %v3053_v46, %v3052_v60  ;;  %v3060_v46 = vld [vmem:[#allocation9 + $0x240] sm:$0xff] }
0x189f   :  { %5812 = vmatpush3.bf16.msra.mxu1 %v5811_v28  ;;  %v3087_v28 = vld [vmem:[#allocation9 + $0x318] sm:$0xff] }
0x18a0   :  { %5844 = vmatpush3.bf16.msra.mxu0 %v5843_v32  ;;  %5814 = vmatprep.subr.bf16.mxu1 %v5813_v3  ;;  %v5893_v49 = vpack.c.bf16 %v3087_v28, %v3086_v59 }
0x18a1   :  { %5846 = vmatprep.subr.bf16.mxu0 %v5845_v26  ;;  %v5861_v26 = vpack.c.bf16 %v3071_v62, %v3070_v35  ;;  %v3061_v35 = vld [vmem:[#allocation9 + $0x248] sm:$0xff] }
0x18a3   :  { %5816 = vmatpush3.bf16.msra.mxu1 %v5815_v10  ;;  %v3072_v10 = vld [vmem:[#allocation9 + $0x2a0] sm:$0xff] }
0x18a4   :  { %5848 = vmatpush3.bf16.msra.mxu0 %v5847_v8  ;;  %5818 = vmatprep.subr.bf16.mxu1 %v5817_v5 }
0x18a5   :  { %5850 = vmatprep.subr.bf16.mxu0 %v5849_v30  ;;  %v5863_v30 = vpack.c.bf16 %v3055_v33, %v3054_v36  ;;  %v3095_v36 = vld [vmem:[#allocation9 + $0x358] sm:$0xff] }
0x18a7   :  { %5820 = vmatpush3.bf16.msra.mxu1 %v5819_v21  ;;  %v3089_v21 = vld [vmem:[#allocation9 + $0x328] sm:$0xff] }
0x18a8   :  { %5852 = vmatpush3.bf16.msra.mxu0 %v5851_v4  ;;  %5822 = vmatprep.subr.bf16.mxu1 %v5821_v42  ;;  %v3057_v42 = vld [vmem:[#allocation9 + $0x228] sm:$0xff]  ;;  %v5897_v12 = vpack.c.bf16 %v3089_v21, %v3088_v31  ;;  %v3062_v21 = vld [vmem:[#allocation9 + $0x250] sm:$0xff] }
0x18a9   :  { %5854 = vmatprep.subr.bf16.mxu0 %v5853_v2  ;;  %v3090_v2 = vld [vmem:[#allocation9 + $0x330] sm:$0xff] }
0x18ab   :  { %5824 = vmatpush3.bf16.msra.mxu1 %v5823_v47  ;;  %v3091_v47 = vld [vmem:[#allocation9 + $0x338] sm:$0xff] }
0x18ac   :  { %5856 = vmatpush3.bf16.msra.mxu0 %v5855_v55  ;;  %5858 = vmatprep.subr.bf16.mxu1 %v5857_v39  ;;  %v5865_v55 = vpack.c.bf16 %v3073_v63, %v3072_v10  ;;  %v5867_v39 = vpack.c.bf16 %v3057_v42, %v3056_v40  ;;  %v3081_v42 = vld [vmem:[#allocation9 + $0x2e8] sm:$0xff] }
0x18ad   :  { %5890 = vmatprep.subr.bf16.mxu0 %v5889_v24 }
0x1951   :  { %v2712_v44 = vpop.f32.mrb[20].mxu1  ;;  %v2789_v43 = vpop.f32.mrb[18].mxu0 }
0x1952   :  { %v2713_v19 = vadd.f32 %v2712_v44, %v2608_v16  ;;  %v2790_v41 = vadd.f32 %v2789_v43, %v2616_v58  ;;  %v2714_v34 = vpop.f32.mrb[21].mxu1  ;;  %v2791_v11 = vpop.f32.mrb[19].mxu0  ;;  %v7301_v44 = vrot.slane %v7268_v37, %v2627_v23  ;;  %v3077_v43 = vld [vmem:[#allocation9 + $0x2c8] sm:$0xff] }
0x1953   :  { %v2715_v7 = vadd.f32 %v2714_v34, %v2612_v1  ;;  %v2792_v22 = vadd.f32 %v2791_v11, %v2620_v61 }
0x1954   :  { %v7281_v25 = vmax.f32 %v2713_v19, 0.0  ;;  %v7283_v15 = vmax.f32 %v2790_v41, 0.0  ;;  %v3092_v19 = vld [vmem:[#allocation9 + $0x340] sm:$0xff]  ;;  %v3093_v41 = vld [vmem:[#allocation9 + $0x348] sm:$0xff] }
0x1955   :  { %v2953_v32 = vmax.f32 %v2715_v7, 0.0  ;;  %v2955_v3 = vmax.f32 %v2792_v22, 0.0  ;;  %v5905_v28 = vpack.c.bf16 %v3093_v41, %v3092_v19 }
0x1957   :  { %3171 = vmatprep.mubr.f32.mxu1 %v2953_v32  ;;  %3246 = vmatprep.mubr.f32.mxu0 %v2955_v3  ;;  %v3078_v32 = vld [vmem:[#allocation9 + $0x2d0] sm:$0xff] }
0x1958   :  { %v2718_v0 = vpop.f32.mrb[22].mxu1  ;;  %v2795_v29 = vpop.f32.mrb[20].mxu0  ;;  %3172 = vmatmul.mubr.f32.vlgmr.msra.gmra.mrb[28].mxu1 %v7281_v25  ;;  %3247 = vmatmul.mubr.f32.vlgmr.msra.gmra.mrb[24].mxu0 %v7283_v15 }
0x1959   :  { %v2719_v8 = vadd.f32 %v2718_v0, %v2608_v16  ;;  %v2796_v5 = vadd.f32 %v2795_v29, %v2616_v58  ;;  %5860 = vmatpush3.bf16.msra.mxu1 %v5859_v52  ;;  %5892 = vmatpush3.bf16.msra.mxu0 %v5889_v24  ;;  %v2720_v56 = vpop.f32.mrb[23].mxu1  ;;  %v2797_v45 = vpop.f32.mrb[21].mxu0  ;;  %v5869_v24 = vpack.c.bf16 %v3075_v6, %v3074_v20  ;;  %v3058_v58 = vld [vmem:[#allocation9 + $0x230] sm:$0xff]  ;;  %v3096_v20 = vld [vmem:[#allocation9 + $0x360] sm:$0xff]  ;;  %v3097_v6 = vld [vmem:[#allocation9 + $0x368] sm:$0xff] }
0x195a   :  { %v2721_v4 = vadd.f32 %v2720_v56, %v2612_v1  ;;  %v2798_v48 = vadd.f32 %v2797_v45, %v2620_v61  ;;  %5862 = vmatprep.subr.bf16.mxu1 %v5861_v26  ;;  %5894 = vmatprep.subr.bf16.mxu0 %v5893_v49  ;;  %v5901_v16 = vpack.c.bf16 %v3091_v47, %v3090_v2  ;;  %v3059_v1 = vld [vmem:[#allocation9 + $0x238] sm:$0xff]  ;;  %v3076_v61 = vld [vmem:[#allocation9 + $0x2c0] sm:$0xff] }
0x195b   :  { %v7289_v57 = vmax.f32 %v2719_v8, 0.0  ;;  %v7291_v17 = vmax.f32 %v2796_v5, 0.0  ;;  %v5871_v60 = vpack.c.bf16 %v3059_v1, %v3058_v58  ;;  %v5873_v59 = vpack.c.bf16 %v3077_v43, %v3076_v61  ;;  %v3079_v26 = vld [vmem:[#allocation9 + $0x2d8] sm:$0xff]  ;;  %v3098_v61 = vld [vmem:[#allocation9 + $0x370] sm:$0xff] }
0x195c   :  { %v2960_v53 = vmax.f32 %v2721_v4, 0.0  ;;  %v2962_v18 = vmax.f32 %v2798_v48, 0.0  ;;  %v5875_v0 = vpack.c.bf16 %v3061_v35, %v3060_v46  ;;  %v5877_v63 = vpack.c.bf16 %v3079_v26, %v3078_v32  ;;  %v3063_v4 = vld [vmem:[#allocation9 + $0x258] sm:$0xff]  ;;  %v3080_v48 = vld [vmem:[#allocation9 + $0x2e0] sm:$0xff] }
0x195d   :  { %5864 = vmatpush3.bf16.msra.mxu1 %v5863_v30  ;;  %5896 = vmatpush3.bf16.msra.mxu0 %v5893_v49  ;;  %v3094_v49 = vld [vmem:[#allocation9 + $0x350] sm:$0xff]  ;;  %v3083_v1 = vld [vmem:[#allocation9 + $0x2f8] sm:$0xff] }
0x195e   :  { %3176 = vmatprep.mubr.f32.mxu1 %v2960_v53  ;;  %3251 = vmatprep.mubr.f32.mxu0 %v2962_v18  ;;  %v5909_v31 = vpack.c.bf16 %v3095_v36, %v3094_v49  ;;  %v5879_v53 = vpack.c.bf16 %v3063_v4, %v3062_v21  ;;  %v2623_v18 = vsub.s32 4, %v6691_v50  ;;  %v3099_v43 = vld [vmem:[#allocation9 + $0x378] sm:$0xff] }
0x195f   :  { %3177 = vmatmul.mubr.f32.gmra.mrb[30].mxu1 %v7289_v57  ;;  %3252 = vmatmul.mubr.f32.gmra.mrb[26].mxu0 %v7291_v17  ;;  %v3419_v26 = vld [vmem:[#allocation12 + $0x50] sm:$0xff]  ;;  %v3424_v21 = vld [vmem:[#allocation12 + $0x78] sm:$0xff] }
0x1960   :  { %5866 = vmatprep.subr.bf16.mxu1 %v5865_v55  ;;  %5898 = vmatprep.subr.bf16.mxu0 %v5897_v12  ;;  %v3431_v4 = vld [vmem:[#allocation12 + $0xb0] sm:$0xff] }
0x1961   :  { %v7303_v34 = vpop.f32.mrb[24].mxu1  ;;  %v5472_v11 = vpop.f32.mrb[22].mxu0  ;;  %5868 = vmatpush3.bf16.msra.mxu1 %v5867_v39  ;;  %5900 = vmatpush3.bf16.msra.mxu0 %v5897_v12  ;;  %v5881_v12 = vpack.c.bf16 %v3081_v42, %v3080_v48  ;;  %v5913_v39 = vpack.c.bf16 %v3097_v6, %v3096_v20  ;;  %v3426_v48 = vld [vmem:[#allocation12 + $0x88] sm:$0xff] }
0x1962   :  { %v7305_v7 = vadd.f32 %v5472_v11, %v2632_v14  ;;  %v2868_v22 = vpop.f32.mrb[25].mxu1  ;;  %v2943_v62 = vpop.f32.mrb[23].mxu0  ;;  %5870 = vmatprep.subr.bf16.mxu1 %v5869_v24  ;;  %5902 = vmatprep.subr.bf16.mxu0 %v5901_v16  ;;  %v3065_v24 = vld [vmem:[#allocation9 + $0x268] sm:$0xff] }
0x1963   :  { %v2869_v3 = vadd.f32 %v2868_v22, %v7301_v44  ;;  %v2944_v52 = vadd.f32 %v2943_v62, %v2632_v14  ;;  %v3064_v14 = vld [vmem:[#allocation9 + $0x260] sm:$0xff]  ;;  %v5917_v22 = vpack.c.bf16 %v3099_v43, %v3098_v61  ;;  %v3066_v62 = vld [vmem:[#allocation9 + $0x270] sm:$0xff] }
0x1964   :  { %v2976_v33 = vsel %vm2966_vm3, %v7305_v7, 0.0  ;;  %v5883_v11 = vpack.c.bf16 %v3065_v24, %v3064_v14  ;;  %v3432_v14 = vld [vmem:[#allocation12 + $0xb8] sm:$0xff]  ;;  %v3438_v24 = vld [vmem:[#allocation12 + $0xe8] sm:$0xff] }
0x1965   :  { %v2977_v29 = vrot.slane %v2976_v33, 4  ;;  %v2957_v10 = vmax.f32 %v2869_v3, 0.0  ;;  %v2958_v8 = vmax.f32 %v2944_v52, 0.0  ;;  %v2967_v5 = vsel %vm2966_vm3, %v2944_v52, 0.0  ;;  %v7311_v56 = vpop.f32.mrb[26].mxu1  ;;  %5872 = vmatpush3.bf16.msra.mxu1 %v5871_v60  ;;  %5904 = vmatpush3.bf16.msra.mxu0 %v5901_v16  ;;  %v3082_v16 = vld [vmem:[#allocation9 + $0x2f0] sm:$0xff] }
0x1966   :  { %v2968_v45 = vrot.slane %v2967_v5, 4  ;;  %v7313_v30 = vpop.f32.mrb[27].mxu1  ;;  %5874 = vmatprep.subr.bf16.mxu1 %v5873_v59  ;;  %5906 = vmatprep.subr.bf16.mxu0 %v5905_v28  ;;  %v2624_v60 = vrot.slane %v7268_v37, %v2623_v18  ;;  %v5885_v35 = vpack.c.bf16 %v3083_v1, %v3082_v16  ;;  %v3067_v59 = vld [vmem:[#allocation9 + $0x278] sm:$0xff]  ;;  %v3417_v3 = vld [vmem:[#allocation12 + $0x40] sm:$0xff] }
0x1967   :  { %v2978_v40 = vadd.f32 %v2977_v29, %v2976_v33  ;;  %3321 = vmatprep.mubr.f32.mxu1 %v2957_v10  ;;  %5505 = vmatprep.mubr.f32.mxu0 %v2958_v8  ;;  %v3412_v52 = vld [vmem:[#allocation12 + $0x18] sm:$0xff]  ;;  %v5887_v33 = vpack.c.bf16 %v3067_v59, %v3066_v62  ;;  %v3445_v16 = vld [vmem:[#allocation12 + $0x120] sm:$0xff]  ;;  %v3447_v1 = vld [vmem:[#allocation12 + $0x130] sm:$0xff] }
0x1968   :  { %v2969_v2 = vadd.f32 %v2968_v45, %v2967_v5  ;;  %v2867_v37 = vadd.f32 %v7303_v34, %v2624_v60  ;;  %v5953_v8 = vpack.c.bf16 %v3419_v26, %v3412_v52  ;;  %v3416_v5 = vld [vmem:[#allocation12 + $0x38] sm:$0xff]  ;;  %v3411_v45 = vld [vmem:[#allocation12 + $0x10] sm:$0xff]  ;;  %v5929_v43 = vpack.c.bf16 %v3445_v16, %v3438_v24  ;;  %v3454_v62 = vld [vmem:[#allocation12 + $0x168] sm:$0xff] }
0x1969   :  { %v2979_v47 = vrot.slane %v2978_v40, 2  ;;  %5876 = vmatpush3.bf16.msra.mxu1 %v5875_v0  ;;  %5908 = vmatpush3.bf16.msra.mxu0 %v5905_v28  ;;  %v3410_v28 = vld [vmem:[#allocation12 + $0x8] sm:$0xff]  ;;  %v3409_v0 = vld [vmem:[#allocation12] sm:$0xff]  ;;  %v3451_v52 = vld [vmem:[#allocation12 + $0x150] sm:$0xff] }
0x196a   :  { %v2970_v55 = vrot.slane %v2969_v2, 2  ;;  %5878 = vmatprep.subr.bf16.mxu1 %v5877_v63  ;;  %5910 = vmatprep.subr.bf16.mxu0 %v5909_v31  ;;  %v5921_v10 = vpack.c.bf16 %v3417_v3, %v3410_v28  ;;  %v3418_v63 = vld [vmem:[#allocation12 + $0x48] sm:$0xff]  ;;  %v5923_v34 = vpack.c.bf16 %v3416_v5, %v3409_v0  ;;  %v2956_v6 = vmax.f32 %v2867_v37, 0.0  ;;  %v3461_v59 = vld [vmem:[#allocation12 + $0x1a0] sm:$0xff]  ;;  %v3496_v24 = vld [vmem:[#allocation12 + $0x2b8] sm:$0xff] }
0x196b   :  { %v2980_v58 = vadd.f32 %v2979_v47, %v2978_v40  ;;  %v3433_v40 = vld [vmem:[#allocation12 + $0xc0] sm:$0xff]  ;;  %v5955_v20 = vpack.c.bf16 %v3418_v63, %v3411_v45  ;;  %v2873_v47 = vadd.f32 %v7311_v56, %v2624_v60  ;;  %v3458_v26 = vld [vmem:[#allocation12 + $0x188] sm:$0xff]  ;;  %v3503_v16 = vld [vmem:[#allocation12 + $0x2f0] sm:$0xff] }
0x196c   :  { %v2971_v19 = vadd.f32 %v2970_v55, %v2969_v2  ;;  %v2965_v2 = vmax.f32 %v7305_v7, 0.0  ;;  %v3425_v55 = vld [vmem:[#allocation12 + $0x80] sm:$0xff]  ;;  %v3466_v0 = vld [vmem:[#allocation12 + $0x1c8] sm:$0xff] }
0x196d   :  { %v2981_v41 = vrot.slane %v2980_v58, 1  ;;  %5880 = vmatpush3.bf16.msra.mxu1 %v5879_v53  ;;  %5912 = vmatpush3.bf16.msra.mxu0 %v5909_v31  ;;  %v2875_v31 = vadd.f32 %v7313_v30, %v7301_v44  ;;  %v5925_v44 = vpack.c.bf16 %v3431_v4, %v3424_v21  ;;  %v3423_v30 = vld [vmem:[#allocation12 + $0x70] sm:$0xff]  ;;  %v3430_v53 = vld [vmem:[#allocation12 + $0xa8] sm:$0xff]  ;;  %v2963_v61 = vmax.f32 %v2873_v47, 0.0  ;;  %v3473_v37 = vld [vmem:[#allocation12 + $0x200] sm:$0xff] }
0x196e   :  { %v2972_v46 = vrot.slane %v2971_v19, 1  ;;  %5882 = vmatprep.subr.bf16.mxu1 %v5881_v12  ;;  %5914 = vmatprep.subr.bf16.mxu0 %v5913_v39  ;;  %v5927_v7 = vpack.c.bf16 %v3430_v53, %v3423_v30  ;;  %v5959_v56 = vpack.c.bf16 %v3432_v14, %v3425_v55  ;;  %v5937_v45 = vpack.c.bf16 %v3473_v37, %v3466_v0  ;;  %v3465_v63 = vld [vmem:[#allocation12 + $0x1c0] sm:$0xff]  ;;  %v3467_v21 = vld [vmem:[#allocation12 + $0x1d0] sm:$0xff]  ;;  %v3486_v30 = vld [vmem:[#allocation12 + $0x268] sm:$0xff] }
0x196f   :  { %v2982_v32 = vadd.f32 %v2981_v41, %v2980_v58  ;;  %v2964_v12 = vmax.f32 %v2875_v31, 0.0  ;;  %v3440_v58 = vld [vmem:[#allocation12 + $0xf8] sm:$0xff]  ;;  %v3481_v53 = vld [vmem:[#allocation12 + $0x240] sm:$0xff]  ;;  %v3422_v0 = vld [vmem:[#allocation12 + $0x68] sm:$0xff] }
0x1970   :  { %v2973_v49 = vadd.f32 %v2972_v46, %v2971_v19  ;;  %v3437_v19 = vld [vmem:[#allocation12 + $0xe0] sm:$0xff]  ;;  %v3444_v41 = vld [vmem:[#allocation12 + $0x118] sm:$0xff]  ;;  %v5961_v60 = vpack.c.bf16 %v3447_v1, %v3440_v58  ;;  %v3446_v46 = vld [vmem:[#allocation12 + $0x128] sm:$0xff] }
0x1971   :  { %v2983_v36 = vmul.f32 0.125, %v2982_v32  ;;  %5884 = vmatpush3.bf16.msra.mxu1 %v5883_v11  ;;  %5916 = vmatpush3.bf16.msra.mxu0 %v5913_v39  ;;  %v5957_v39 = vpack.c.bf16 %v3433_v40, %v3426_v48  ;;  %v3439_v11 = vld [vmem:[#allocation12 + $0xf0] sm:$0xff]  ;;  %v5931_v28 = vpack.c.bf16 %v3444_v41, %v3437_v19  ;;  %v3472_v31 = vld [vmem:[#allocation12 + $0x1f8] sm:$0xff]  ;;  %v3474_v48 = vld [vmem:[#allocation12 + $0x208] sm:$0xff]  ;;  %v5977_v19 = vpack.c.bf16 %v3503_v16, %v3496_v24 }
0x1972   :  { %v2975_v29 = vmul.f32 0.125, %v2973_v49  ;;  %5886 = vmatprep.subr.bf16.mxu1 %v5885_v35  ;;  %5918 = vmatprep.subr.bf16.mxu0 %v5917_v22  ;;  %v3452_v35 = vld [vmem:[#allocation12 + $0x158] sm:$0xff]  ;;  %v5963_v32 = vpack.c.bf16 %v3446_v46, %v3439_v11  ;;  %v3453_v49 = vld [vmem:[#allocation12 + $0x160] sm:$0xff]  ;;  %v3502_v41 = vld [vmem:[#allocation12 + $0x2e8] sm:$0xff] }
0x1973   :  { %v3480_v40 = vld [vmem:[#allocation12 + $0x238] sm:$0xff]  ;;  %v3501_v14 = vld [vmem:[#allocation12 + $0x2e0] sm:$0xff]  ;;  %v3510_v46 = vld [vmem:[#allocation12 + $0x328] sm:$0xff] }
0x1974   :  { %v2985_v42 = vsel %vm2984_vm6, %v2975_v29, %v2983_v36  ;;  %v5965_v36 = vpack.c.bf16 %v3461_v59, %v3454_v62  ;;  %v3468_v29 = vld [vmem:[#allocation12 + $0x1d8] sm:$0xff]  ;;  %v3463_v24 = vld [vmem:[#allocation12 + $0x1b0] sm:$0xff]  ;;  %v3457_v16 = vld [vmem:[#allocation12 + $0x180] sm:$0xff] }
0x1975   :  { %5888 = vmatpush3.bf16.msra.mxu1 %v5887_v33  ;;  %5920 = vmatpush3.bf16.msra.mxu0 %v5917_v22  ;;  %2987 = vst.msk [vmem:[#allocation15] sm:$0x3] %vm2986_vm7, %v2985_v42  ;;  %v3459_v22 = vld [vmem:[#allocation12 + $0x190] sm:$0xff]  ;;  %v3460_v33 = vld [vmem:[#allocation12 + $0x198] sm:$0xff] }
0x1976   :  { %5922 = vmatprep.subr.bf16.mxu1 %v5921_v10  ;;  %5954 = vmatprep.subr.bf16.mxu0 %v5953_v8  ;;  %v5933_v3 = vpack.c.bf16 %v3459_v22, %v3452_v35  ;;  %v3475_v10 = vld [vmem:[#allocation12 + $0x210] sm:$0xff]  ;;  %v5935_v8 = vpack.c.bf16 %v3458_v26, %v3451_v52  ;;  %v5967_v5 = vpack.c.bf16 %v3460_v33, %v3453_v49  ;;  %v3508_v11 = vld [vmem:[#allocation12 + $0x318] sm:$0xff]  ;;  %v3517_v35 = vld [vmem:[#allocation12 + $0x360] sm:$0xff] }
0x1977   :  { %v5969_v4 = vpack.c.bf16 %v3475_v10, %v3468_v29  ;;  %v3487_v42 = vld [vmem:[#allocation12 + $0x270] sm:$0xff]  ;;  %v5981_v52 = vpack.c.bf16 %v3517_v35, %v3510_v46  ;;  %v3516_v26 = vld [vmem:[#allocation12 + $0x358] sm:$0xff]  ;;  %v3414_v49 = vld [vmem:[#allocation12 + $0x28] sm:$0xff] }
0x1978   :  { %3322 = vmatmul.mubr.f32.vlgmr.msra.gmra.mrb[32].mxu1 %v2956_v6  ;;  %5506 = vmatmul.mubr.f32.vlgmr.msra.gmra.mrb[28].mxu0 %v2965_v2  ;;  %v5939_v6 = vpack.c.bf16 %v3472_v31, %v3465_v63  ;;  %v5971_v2 = vpack.c.bf16 %v3474_v48, %v3467_v21  ;;  %v5941_v47 = vpack.c.bf16 %v3487_v42, %v3480_v40  ;;  %v3415_v33 = vld [vmem:[#allocation12 + $0x30] sm:$0xff]  ;;  %v3428_v63 = vld [vmem:[#allocation12 + $0x98] sm:$0xff]  ;;  %v3434_v42 = vld [vmem:[#allocation12 + $0xc8] sm:$0xff] }
0x1979   :  { %3326 = vmatprep.mubr.f32.mxu1 %v2964_v12  ;;  %5924 = vmatpush1.bf16.msra.mxu1 %v5923_v34  ;;  %v3482_v34 = vld [vmem:[#allocation12 + $0x248] sm:$0xff]  ;;  %v3488_v12 = vld [vmem:[#allocation12 + $0x278] sm:$0xff]  ;;  %v3435_v31 = vld [vmem:[#allocation12 + $0xd0] sm:$0xff] }
0x197a   :  { %5956 = vmatpush1.bf16.msra.mxu0 %v5955_v20  ;;  %5926 = vmatprep.subr.bf16.mxu1 %v5925_v44  ;;  %v3489_v20 = vld [vmem:[#allocation12 + $0x280] sm:$0xff]  ;;  %v3479_v44 = vld [vmem:[#allocation12 + $0x230] sm:$0xff]  ;;  %v5975_v1 = vpack.c.bf16 %v3488_v12, %v3481_v53  ;;  %v3436_v48 = vld [vmem:[#allocation12 + $0xd8] sm:$0xff] }
0x197b   :  { %5958 = vmatprep.subr.bf16.mxu0 %v5957_v39  ;;  %3699 = vmatprep.mubr.f32.mxu0 %v6396_v9  ;;  %v5973_v55 = vpack.c.bf16 %v3489_v20, %v3482_v34  ;;  %v3494_v39 = vld [vmem:[#allocation12 + $0x2a8] sm:$0xff]  ;;  %v5943_v58 = vpack.c.bf16 %v3486_v30, %v3479_v44  ;;  %v3427_v40 = vld [vmem:[#allocation12 + $0x90] sm:$0xff]  ;;  %v5989_v34 = vpack.c.bf16 %v3435_v31, %v3428_v63  ;;  %v3441_v53 = vld [vmem:[#allocation12 + $0x100] sm:$0xff] }
0x197c   :  { %3327 = vmatmul.mubr.f32.gmra.mrb[34].mxu1 %v2963_v61  ;;  %v3493_v61 = vld [vmem:[#allocation12 + $0x2a0] sm:$0xff]  ;;  %v3442_v20 = vld [vmem:[#allocation12 + $0x108] sm:$0xff]  ;;  %v5991_v30 = vpack.c.bf16 %v3434_v42, %v3427_v40  ;;  %v3504_v31 = vld [vmem:[#allocation12 + $0x2f8] sm:$0xff] }
0x197d   :  { %5928 = vmatpush1.bf16.msra.mxu1 %v5927_v7  ;;  %3622 = vmatprep.mubr.f32.mxu1 %v6396_v9  ;;  %v5945_v7 = vpack.c.bf16 %v3501_v14, %v3494_v39  ;;  %v3450_v44 = vld [vmem:[#allocation12 + $0x148] sm:$0xff]  ;;  %v3456_v14 = vld [vmem:[#allocation12 + $0x178] sm:$0xff]  ;;  %v3497_v63 = vld [vmem:[#allocation12 + $0x2c0] sm:$0xff] }
0x197e   :  { %5960 = vmatpush1.bf16.msra.mxu0 %v5959_v56  ;;  %5930 = vmatprep.subr.bf16.mxu1 %v5929_v43  ;;  %v3500_v56 = vld [vmem:[#allocation12 + $0x2d8] sm:$0xff]  ;;  %v3495_v43 = vld [vmem:[#allocation12 + $0x2b0] sm:$0xff]  ;;  %v3513_v40 = vld [vmem:[#allocation12 + $0x340] sm:$0xff] }
0x197f   :  { %5962 = vmatprep.subr.bf16.mxu0 %v5961_v60  ;;  %v3515_v60 = vld [vmem:[#allocation12 + $0x350] sm:$0xff]  ;;  %v5947_v22 = vpack.c.bf16 %v3500_v56, %v3493_v61  ;;  %v5979_v62 = vpack.c.bf16 %v3502_v41, %v3495_v43  ;;  %v3462_v56 = vld [vmem:[#allocation12 + $0x1a8] sm:$0xff]  ;;  %v3477_v41 = vld [vmem:[#allocation12 + $0x220] sm:$0xff] }
0x1980   :  { %v5949_v59 = vpack.c.bf16 %v3515_v60, %v3508_v11  ;;  %v3455_v61 = vld [vmem:[#allocation12 + $0x170] sm:$0xff]  ;;  %v3478_v60 = vld [vmem:[#allocation12 + $0x228] sm:$0xff]  ;;  %v3520_v42 = vld [vmem:[#allocation12 + $0x378] sm:$0xff] }
0x1981   :  { %5932 = vmatpush1.bf16.msra.mxu1 %v5931_v28  ;;  %v3507_v28 = vld [vmem:[#allocation12 + $0x310] sm:$0xff]  ;;  %v5999_v46 = vpack.c.bf16 %v3462_v56, %v3455_v61 }
0x1982   :  { %5964 = vmatpush1.bf16.msra.mxu0 %v5963_v32  ;;  %5934 = vmatprep.subr.bf16.mxu1 %v5933_v3  ;;  %v3514_v32 = vld [vmem:[#allocation12 + $0x348] sm:$0xff]  ;;  %v3509_v3 = vld [vmem:[#allocation12 + $0x320] sm:$0xff]  ;;  %v3471_v11 = vld [vmem:[#allocation12 + $0x1f0] sm:$0xff] }
0x1983   :  { %5966 = vmatprep.subr.bf16.mxu0 %v5965_v36  ;;  %v3421_v36 = vld [vmem:[#allocation12 + $0x60] sm:$0xff]  ;;  %v5951_v37 = vpack.c.bf16 %v3514_v32, %v3507_v28  ;;  %v5983_v29 = vpack.c.bf16 %v3516_v26, %v3509_v3  ;;  %v3484_v28 = vld [vmem:[#allocation12 + $0x258] sm:$0xff]  ;;  %v3491_v32 = vld [vmem:[#allocation12 + $0x290] sm:$0xff] }
0x1984   :  { %v5985_v10 = vpack.c.bf16 %v3421_v36, %v3414_v49  ;;  %v3485_v3 = vld [vmem:[#allocation12 + $0x260] sm:$0xff]  ;;  %v6005_v49 = vpack.c.bf16 %v3491_v32, %v3484_v28  ;;  %v3483_v36 = vld [vmem:[#allocation12 + $0x250] sm:$0xff] }
0x1985   :  { %5936 = vmatpush1.bf16.msra.mxu1 %v5935_v8  ;;  %v3413_v8 = vld [vmem:[#allocation12 + $0x20] sm:$0xff] }
0x1986   :  { %5968 = vmatpush1.bf16.msra.mxu0 %v5967_v5  ;;  %5938 = vmatprep.subr.bf16.mxu1 %v5937_v45  ;;  %v3420_v5 = vld [vmem:[#allocation12 + $0x58] sm:$0xff]  ;;  %v6017_v45 = vpack.c.bf16 %v3422_v0, %v3415_v33  ;;  %v3490_v33 = vld [vmem:[#allocation12 + $0x288] sm:$0xff] }
0x1987   :  { %5970 = vmatprep.subr.bf16.mxu0 %v5969_v4  ;;  %v5987_v21 = vpack.c.bf16 %v3420_v5, %v3413_v8  ;;  %v3429_v4 = vld [vmem:[#allocation12 + $0xa0] sm:$0xff]  ;;  %v3506_v8 = vld [vmem:[#allocation12 + $0x308] sm:$0xff]  ;;  %v6007_v5 = vpack.c.bf16 %v3490_v33, %v3483_v36 }
0x1989   :  { %5940 = vmatpush1.bf16.msra.mxu1 %v5939_v6  ;;  %v6021_v6 = vpack.c.bf16 %v3436_v48, %v3429_v4  ;;  %v3512_v4 = vld [vmem:[#allocation12 + $0x338] sm:$0xff]  ;;  %v3519_v48 = vld [vmem:[#allocation12 + $0x370] sm:$0xff] }
0x198a   :  { %5972 = vmatpush1.bf16.msra.mxu0 %v5971_v2  ;;  %5942 = vmatprep.subr.bf16.mxu1 %v5941_v47  ;;  %v3449_v2 = vld [vmem:[#allocation12 + $0x140] sm:$0xff]  ;;  %v3443_v47 = vld [vmem:[#allocation12 + $0x110] sm:$0xff] }
0x198b   :  { %5974 = vmatprep.subr.bf16.mxu0 %v5973_v55  ;;  %v3448_v55 = vld [vmem:[#allocation12 + $0x138] sm:$0xff]  ;;  %v5993_v12 = vpack.c.bf16 %v3449_v2, %v3442_v20  ;;  %v6025_v39 = vpack.c.bf16 %v3450_v44, %v3443_v47  ;;  %v6013_v20 = vpack.c.bf16 %v3519_v48, %v3512_v4  ;;  %v3518_v2 = vld [vmem:[#allocation12 + $0x368] sm:$0xff]  ;;  %v6045_v47 = vpack.c.bf16 %v3520_v42, %v3513_v40 }
0x198d   :  { %5944 = vmatpush1.bf16.msra.mxu1 %v5943_v58  ;;  %v3464_v58 = vld [vmem:[#allocation12 + $0x1b8] sm:$0xff] }
0x198e   :  { %5976 = vmatpush1.bf16.msra.mxu0 %v5975_v1  ;;  %5946 = vmatprep.subr.bf16.mxu1 %v5945_v7  ;;  %v5995_v1 = vpack.c.bf16 %v3448_v55, %v3441_v53  ;;  %v5997_v7 = vpack.c.bf16 %v3463_v24, %v3456_v14  ;;  %v6029_v43 = vpack.c.bf16 %v3464_v58, %v3457_v16  ;;  %v4983_v55 = vld [vmem:[#allocation10] ss:$0 sm:$0xff] }
0x198f   :  { %5978 = vmatprep.subr.bf16.mxu0 %v5977_v19  ;;  %v3470_v19 = vld [vmem:[#allocation12 + $0x1e8] sm:$0xff] }
0x1990   :  { %v6001_v35 = vpack.c.bf16 %v3477_v41, %v3470_v19 }
0x1991   :  { %5948 = vmatpush1.bf16.msra.mxu1 %v5947_v22  ;;  %v3469_v22 = vld [vmem:[#allocation12 + $0x1e0] sm:$0xff] }
0x1992   :  { %5980 = vmatpush1.bf16.msra.mxu0 %v5979_v62  ;;  %5950 = vmatprep.subr.bf16.mxu1 %v5949_v59  ;;  %v3476_v62 = vld [vmem:[#allocation12 + $0x218] sm:$0xff]  ;;  %v6033_v59 = vpack.c.bf16 %v3478_v60, %v3471_v11 }
0x1993   :  { %5982 = vmatprep.subr.bf16.mxu0 %v5981_v52  ;;  %v3492_v52 = vld [vmem:[#allocation12 + $0x298] sm:$0xff]  ;;  %v6003_v26 = vpack.c.bf16 %v3476_v62, %v3469_v22 }
0x1994   :  { %v6037_v0 = vpack.c.bf16 %v3492_v52, %v3485_v3 }
0x1995   :  { %5952 = vmatpush1.bf16.msra.mxu1 %v5951_v37  ;;  %v3498_v37 = vld [vmem:[#allocation12 + $0x2c8] sm:$0xff] }
0x1996   :  { %5984 = vmatpush1.bf16.msra.mxu0 %v5983_v29  ;;  %5986 = vmatprep.subr.bf16.mxu1 %v5985_v10  ;;  %v3505_v29 = vld [vmem:[#allocation12 + $0x300] sm:$0xff]  ;;  %v3499_v10 = vld [vmem:[#allocation12 + $0x2d0] sm:$0xff] }
0x1997   :  { %6018 = vmatprep.subr.bf16.mxu0 %v6017_v45 }
0x1998   :  { %3623 = vmatmul.mubr.f32.vlgmr.msra.gmra.mrb[36].mxu1 %v7281_v25 }
0x1999   :  { %3700 = vmatmul.mubr.f32.vlgmr.msra.gmra.mrb[30].mxu0 %v7281_v25  ;;  %5988 = vmatpush1.bf16.msra.mxu1 %v5987_v21  ;;  %v6041_v21 = vpack.c.bf16 %v3506_v8, %v3499_v10 }
0x199a   :  { %6020 = vmatpush3.bf16.msra.mxu0 %v6017_v45  ;;  %3628 = vmatprep.mubr.f32.mxu1 %v6396_v9  ;;  %v6009_v45 = vpack.c.bf16 %v3505_v29, %v3498_v37 }
0x199b   :  { %3705 = vmatprep.mubr.f32.mxu0 %v6396_v9  ;;  %5990 = vmatprep.subr.bf16.mxu1 %v5989_v34  ;;  %v6011_v34 = vpack.c.bf16 %v3504_v31, %v3497_v63 }
0x199c   :  { %3629 = vmatmul.mubr.f32.gmra.mrb[38].mxu1 %v7289_v57  ;;  %6022 = vmatprep.subr.bf16.mxu0 %v6021_v6 }
0x199d   :  { %3706 = vmatmul.mubr.f32.gmra.mrb[32].mxu0 %v7289_v57  ;;  %5992 = vmatpush1.bf16.msra.mxu1 %v5991_v30 }
0x199e   :  { %6024 = vmatpush3.bf16.msra.mxu0 %v6021_v6  ;;  %5540 = vmatprep.mubr.f32.mxu0 %v7281_v25  ;;  %v3511_v6 = vld [vmem:[#allocation12 + $0x330] sm:$0xff] }
0x199f   :  { %5994 = vmatprep.subr.bf16.mxu1 %v5993_v12  ;;  %6026 = vmatprep.subr.bf16.mxu0 %v6025_v39  ;;  %v6015_v44 = vpack.c.bf16 %v3518_v2, %v3511_v6 }
0x19a0   :  { %3776 = vmatprep.mubr.f32.mxu1 %v6396_v9 }
0x19a1   :  { %5996 = vmatpush1.bf16.msra.mxu1 %v5995_v1 }
0x19a2   :  { %6028 = vmatpush3.bf16.msra.mxu0 %v6025_v39  ;;  %5998 = vmatprep.subr.bf16.mxu1 %v5997_v7 }
0x19a3   :  { %6030 = vmatprep.subr.bf16.mxu0 %v6029_v43 }
0x19a5   :  { %6000 = vmatpush1.bf16.msra.mxu1 %v5999_v46 }
0x19a6   :  { %6032 = vmatpush3.bf16.msra.mxu0 %v6029_v43  ;;  %6002 = vmatprep.subr.bf16.mxu1 %v6001_v35 }
0x19a7   :  { %6034 = vmatprep.subr.bf16.mxu0 %v6033_v59 }
0x19a9   :  { %6004 = vmatpush1.bf16.msra.mxu1 %v6003_v26  ;;  %v3521_v26 = vld [vmem:[#allocation13] sm:$0xff] }
0x19aa   :  { %6036 = vmatpush3.bf16.msra.mxu0 %v6033_v59  ;;  %6006 = vmatprep.subr.bf16.mxu1 %v6005_v49  ;;  %v3526_v49 = vrot.slane %v3521_v26, %v6701_v54  ;;  %v3530_v36 = vrot.slane %v3521_v26, %v6694_v51  ;;  %v3534_v37 = vrot.slane %v3521_v26, %v2615_v13 }
0x19ab   :  { %6038 = vmatprep.subr.bf16.mxu0 %v6037_v0  ;;  %v3542_v13 = vrot.slane %v3521_v26, %v2623_v18  ;;  %v3550_v42 = vrot.slane %v3521_v26, %v2631_v27 }
0x19ad   :  { %6008 = vmatpush1.bf16.msra.mxu1 %v6007_v5  ;;  %v3538_v5 = vrot.slane %v3521_v26, %v2619_v38  ;;  %v3546_v38 = vrot.slane %v3521_v26, %v2627_v23 }
0x19ae   :  { %6040 = vmatpush3.bf16.msra.mxu0 %v6037_v0  ;;  %6010 = vmatprep.subr.bf16.mxu1 %v6009_v45 }
0x19af   :  { %6042 = vmatprep.subr.bf16.mxu0 %v6041_v21 }
0x19b1   :  { %6012 = vmatpush1.bf16.msra.mxu1 %v6011_v34 }
0x19b2   :  { %6044 = vmatpush3.bf16.msra.mxu0 %v6041_v21  ;;  %6014 = vmatprep.subr.bf16.mxu1 %v6013_v20 }
0x19b3   :  { %6046 = vmatprep.subr.bf16.mxu0 %v6045_v47 }
0x19b5   :  { %6016 = vmatpush1.bf16.msra.mxu1 %v6015_v44 }
0x19b6   :  { %6048 = vmatpush3.bf16.msra.mxu0 %v6045_v47  ;;  %5543 = vmatprep.subr.mxu1 %v6396_v9 }
0x19b7   :  { %5548 = vmatprep.subr.mxu0 %v6396_v9 }
0x19b8   :  { %3777 = vmatmul.mubr.f32.vlgmr.msra.gmra.mrb[40].mxu1 %v7281_v25 }
0x19b9   :  { %5541 = vmatmul.mubr.f32.vlgmr.msra.gmra.mrb[34].mxu0 %v7289_v57  ;;  %3782 = vmatprep.mubr.f32.mxu1 %v6396_v9 }
0x19ba   :  { %5550 = vmatprep.mubr.msk.f32.mxu0 %vm6398_vm4, %v6396_v9 }
0x19bc   :  { %3783 = vmatmul.mubr.f32.gmra.mrb[42].mxu1 %v7289_v57 }
0x19bd   :  { %5545 = vmatprep.mubr.msk.f32.mxu1 %vm6398_vm4, %v6396_v9 }
0x1a2b   :  { %v5115_v30 = vpop.f32.mrb[28].mxu1  ;;  %v5153_v53 = vpop.f32.mrb[24].mxu0 }
0x1a2c   :  { %v5116_v12 = vpop.f32.mrb[29].mxu1  ;;  %v5154_v39 = vpop.f32.mrb[25].mxu0 }
0x1a2d   :  { %v5117_v14 = vadd.f32 %v5116_v12, %v5115_v30  ;;  %v5155_v24 = vadd.f32 %v5154_v39, %v5153_v53 }
0x1a2f   :  { %v3174_v25 = vadd.f32 %v5117_v14, %v4983_v55 }
0x1a31   :  { %v3249_v16 = vadd.f32 %v5155_v24, %v3174_v25 }
0x1a32   :  { %v5118_v58 = vpop.f32.mrb[30].mxu1  ;;  %v5156_v1 = vpop.f32.mrb[26].mxu0 }
0x1a33   :  { %v5119_v7 = vpop.f32.mrb[31].mxu1  ;;  %v5157_v61 = vpop.f32.mrb[27].mxu0 }
0x1a34   :  { %v5120_v56 = vadd.f32 %v5119_v7, %v5118_v58  ;;  %v5158_v43 = vadd.f32 %v5157_v61, %v5156_v1 }
0x1a36   :  { %v3179_v19 = vadd.f32 %v5120_v56, %v4983_v55 }
0x1a38   :  { %v3254_v57 = vadd.f32 %v5158_v43, %v3179_v19 }
0x1a4b   :  { %v5191_v41 = vpop.f32.mrb[32].mxu1  ;;  %v5507_v11 = vpop.f32.mrb[28].mxu0 }
0x1a4c   :  { %v5192_v60 = vpop.f32.mrb[33].mxu1  ;;  %v3398_v46 = vpop.f32.mrb[29].mxu0 }
0x1a4d   :  { %v5193_v35 = vadd.f32 %v5192_v60, %v5191_v41 }
0x1a4f   :  { %v3324_v22 = vadd.f32 %v5193_v35, %v3249_v16  ;;  %v5194_v62 = vpop.f32.mrb[34].mxu1 }
0x1a50   :  { %v5195_v59 = vpop.f32.mrb[35].mxu1 }
0x1a51   :  { %v3399_v28 = vadd.f32 %v3398_v46, %v3324_v22  ;;  %v5196_v32 = vadd.f32 %v5195_v59, %v5194_v62 }
0x1a53   :  { %3407 = vst [vmem:[%s7473_s13] sm:$0xff] %v3399_v28  ;;  %v3329_v3 = vadd.f32 %v5196_v32, %v3254_v57 }
0x1a55   :  { %v3404_v52 = vadd.f32 %v5507_v11, %v3329_v3 }
0x1a57   :  { %3408 = vst [vmem:[%s7473_s13 + $0x8] sm:$0xff] %v3404_v52  ;;  %s6409_s13 = smov 16  }
0x1a6b   :  { %v3624_v33 = vpop.f32.mrb[36].mxu1 }
0x1a6c   :  { %v3625_v0 = vadd.f32 %v3624_v33, %v3526_v49  ;;  %v3701_v29 = vpop.f32.mrb[30].mxu0  ;;  %v3626_v10 = vpop.f32.mrb[37].mxu1 }
0x1a6d   :  { %v3627_v8 = vadd.f32 %v3626_v10, %v3530_v36  ;;  %v3703_v45 = vpop.f32.mrb[31].mxu0  ;;  %v3702_v54 = vadd.f32 %v3701_v29, %v3534_v37 }
0x1a6e   :  { %5544 = vmatpush3.xpose.msra.mxu1 %v3625_v0  ;;  %v3704_v21 = vadd.f32 %v3703_v45, %v3538_v5 }
0x1a6f   :  { %v3630_v63 = vpop.f32.mrb[38].mxu1  ;;  %5549 = vmatpush3.xpose.msra.mxu0 %v3627_v8  ;;  %5553 = vmatprep.subr.mxu1 %v6396_v9 }
0x1a70   :  { %v3707_v31 = vpop.f32.mrb[32].mxu0  ;;  %v3632_v51 = vpop.f32.mrb[39].mxu1  ;;  %5558 = vmatprep.subr.mxu0 %v6396_v9  ;;  %v3631_v18 = vadd.f32 %v3630_v63, %v3526_v49 }
0x1a71   :  { %v3709_v4 = vpop.f32.mrb[33].mxu0  ;;  %5546 = vmatmul.mubr.f32.vlgmr.msra.gmra.mrb[44].mxu1 %v7283_v15  ;;  %v3633_v50 = vadd.f32 %v3632_v51, %v3530_v36  ;;  %v3708_v27 = vadd.f32 %v3707_v31, %v3534_v37 }
0x1a72   :  { %5551 = vmatmul.mubr.f32.vlgmr.msra.gmra.mrb[36].mxu0 %v7283_v15  ;;  %5554 = vmatpush3.xpose.msra.mxu1 %v3702_v54  ;;  %v3710_v23 = vadd.f32 %v3709_v4, %v3538_v5 }
0x1a73   :  { %5559 = vmatpush3.xpose.msra.mxu0 %v3704_v21  ;;  %5555 = vmatprep.mubr.msk.f32.mxu1 %vm6398_vm4, %v6396_v9 }
0x1a74   :  { %5560 = vmatprep.mubr.msk.f32.mxu0 %vm6398_vm4, %v6396_v9  ;;  %5563 = vmatprep.subr.mxu1 %v6396_v9 }
0x1a75   :  { %5556 = vmatmul.mubr.f32.vlgmr.msra.gmra.mrb[46].mxu1 %v7283_v15  ;;  %5568 = vmatprep.subr.mxu0 %v6396_v9 }
0x1a76   :  { %5561 = vmatmul.mubr.f32.vlgmr.msra.gmra.mrb[38].mxu0 %v7283_v15  ;;  %5565 = vmatprep.mubr.msk.f32.mxu1 %vm6398_vm4, %v6396_v9 }
0x1a77   :  { %5570 = vmatprep.mubr.msk.f32.mxu0 %vm6398_vm4, %v6396_v9 }
0x1a8b   :  { %v3778_v48 = vpop.f32.mrb[40].mxu1 }
0x1a8c   :  { %v3779_v40 = vadd.f32 %v3778_v48, %v3542_v13  ;;  %v5542_v34 = vpop.f32.mrb[34].mxu0  ;;  %v3780_v20 = vpop.f32.mrb[41].mxu1 }
0x1a8d   :  { %v3781_v6 = vadd.f32 %v3780_v20, %v3546_v38  ;;  %v3855_v2 = vpop.f32.mrb[35].mxu0  ;;  %v3861_v55 = vadd.f32 %v5542_v34, %v3550_v42 }
0x1a8e   :  { %5564 = vmatpush3.xpose.msra.mxu1 %v3779_v40  ;;  %v3856_v44 = vadd.f32 %v3855_v2, %v3550_v42 }
0x1a8f   :  { %v3784_v47 = vpop.f32.mrb[42].mxu1  ;;  %5569 = vmatpush3.xpose.msra.mxu0 %v3781_v6  ;;  %5573 = vmatprep.subr.mxu1 %v6396_v9 }
0x1a90   :  { %v3786_v30 = vpop.f32.mrb[43].mxu1  ;;  %5578 = vmatprep.subr.mxu0 %v6396_v9  ;;  %v3785_v53 = vadd.f32 %v3784_v47, %v3542_v13 }
0x1a91   :  { %5566 = vmatmul.mubr.f32.vlgmr.msra.gmra.mrb[48].mxu1 %v7283_v15 }
0x1a92   :  { %5571 = vmatmul.mubr.f32.vlgmr.msra.gmra.mrb[40].mxu0 %v7283_v15  ;;  %5574 = vmatpush3.xpose.msra.mxu1 %v3856_v44 }
0x1a93   :  { %5579 = vmatpush3.xpose.msra.mxu0 %v3631_v18  ;;  %5575 = vmatprep.mubr.msk.f32.mxu1 %vm6398_vm4, %v6396_v9 }
0x1a94   :  { %5580 = vmatprep.mubr.msk.f32.mxu0 %vm6398_vm4, %v6396_v9  ;;  %5583 = vmatprep.subr.mxu1 %v6396_v9 }
0x1a95   :  { %5576 = vmatmul.mubr.f32.vlgmr.msra.gmra.mrb[50].mxu1 %v7283_v15  ;;  %5588 = vmatprep.subr.mxu0 %v6396_v9  ;;  %v3787_v15 = vadd.f32 %v3786_v30, %v3546_v38 }
0x1a96   :  { %5581 = vmatmul.mubr.f32.vlgmr.msra.gmra.mrb[42].mxu0 %v7291_v17  ;;  %5584 = vmatpush3.xpose.msra.mxu1 %v3633_v50 }
0x1a97   :  { %5589 = vmatpush3.xpose.msra.mxu0 %v3708_v27  ;;  %5585 = vmatprep.mubr.msk.f32.mxu1 %vm6398_vm4, %v6396_v9 }
0x1a98   :  { %5590 = vmatprep.mubr.msk.f32.mxu0 %vm6398_vm4, %v6396_v9  ;;  %5593 = vmatprep.subr.mxu1 %v6396_v9 }
0x1a99   :  { %5586 = vmatmul.mubr.f32.vlgmr.msra.gmra.mrb[52].mxu1 %v7291_v17  ;;  %5598 = vmatprep.subr.mxu0 %v6396_v9 }
0x1a9a   :  { %5591 = vmatmul.mubr.f32.vlgmr.msra.gmra.mrb[44].mxu0 %v7291_v17  ;;  %5594 = vmatpush3.xpose.msra.mxu1 %v3710_v23 }
0x1a9b   :  { %5599 = vmatpush3.xpose.msra.mxu0 %v3785_v53  ;;  %5595 = vmatprep.mubr.msk.f32.mxu1 %vm6398_vm4, %v6396_v9 }
0x1a9c   :  { %5600 = vmatprep.mubr.msk.f32.mxu0 %vm6398_vm4, %v6396_v9  ;;  %5603 = vmatprep.subr.mxu1 %v6396_v9 }
0x1a9d   :  { %5596 = vmatmul.mubr.f32.vlgmr.msra.gmra.mrb[54].mxu1 %v7291_v17  ;;  %5608 = vmatprep.subr.mxu0 %v6396_v9 }
0x1a9e   :  { %5601 = vmatmul.mubr.f32.vlgmr.msra.gmra.mrb[46].mxu0 %v7291_v17  ;;  %5604 = vmatpush3.xpose.msra.mxu1 %v3787_v15 }
0x1a9f   :  { %5609 = vmatpush3.xpose.msra.mxu0 %v3861_v55  ;;  %5605 = vmatprep.mubr.msk.f32.mxu1 %vm6398_vm4, %v6396_v9 }
0x1aa0   :  { %5610 = vmatprep.mubr.msk.f32.mxu0 %vm6398_vm4, %v6396_v9 }
0x1aa1   :  { %5606 = vmatmul.mubr.f32.vlgmr.msra.gmra.mrb[56].mxu1 %v7291_v17 }
0x1aa2   :  { %5611 = vmatmul.mubr.f32.vlgmr.msra.gmra.mrb[48].mxu0 %v7291_v17 }
0x1b44   :  { %v7414_v12 = vpop.f32.mrb[44].mxu1 }
0x1b45   :  { %v5547_v39 = vpop.f32.mrb[45].mxu1  ;;  %v4000_v14 = vpop.f32.mrb[36].mxu0 }
0x1b46   :  { %4355 = vrot.lane.b32.xlu1 %v4000_v14, %s6392_s21  ;;  %v5552_v24 = vpop.f32.mrb[37].mxu0 }
0x1b48   :  { %v4070_v25 = vpop.f32.mrb[46].mxu1 }
0x1b49   :  { %v5557_v16 = vpop.f32.mrb[47].mxu1  ;;  %v4140_v58 = vpop.f32.mrb[38].mxu0 }
0x1b4a   :  { %v5562_v1 = vpop.f32.mrb[39].mxu0  ;;  %4359 = vrot.lane.b32.xlu1 %v4070_v25, %s6409_s13 }
0x1b4e   :  { %4363 = vrot.lane.b32.xlu1 %v4140_v58, %s6410_s24 }
0x1b64   :  { %v4210_v9 = vpop.f32.mrb[48].mxu1 }
0x1b65   :  { %v4280_v7 = vpop.f32.mrb[40].mxu0  ;;  %4367 = vrot.lane.b32.xlu1 %v4210_v9, %s6401_s12  ;;  %v5567_v17 = vpop.f32.mrb[49].mxu1 }
0x1b66   :  { %v5572_v61 = vpop.f32.mrb[41].mxu0 }
0x1b68   :  { %v4350_v56 = vpop.f32.mrb[50].mxu1 }
0x1b69   :  { %v7418_v43 = vpop.f32.mrb[42].mxu0  ;;  %4371 = vrot.lane.b32.xlu1 %v4280_v7, %s6411_s3  ;;  %v5577_v19 = vpop.f32.mrb[51].mxu1 }
0x1b6a   :  { %v5582_v57 = vpop.f32.mrb[43].mxu0 }
0x1b6c   :  { %v4525_v41 = vpop.f32.mrb[52].mxu1 }
0x1b6d   :  { %v4595_v11 = vpop.f32.mrb[44].mxu0  ;;  %4375 = vrot.lane.b32.xlu1 %v4350_v56, %s6412_s2  ;;  %4880 = vrot.lane.b32.xlu0 %v4525_v41, %s6392_s21  ;;  %v5587_v60 = vpop.f32.mrb[53].mxu1 }
0x1b6e   :  { %v5592_v46 = vpop.f32.mrb[45].mxu0 }
0x1b70   :  { %v4665_v35 = vpop.f32.mrb[54].mxu1 }
0x1b71   :  { %v4735_v22 = vpop.f32.mrb[46].mxu0  ;;  %4884 = vrot.lane.b32.xlu0 %v4595_v11, %s6409_s13  ;;  %v5597_v62 = vpop.f32.mrb[55].mxu1 }
0x1b72   :  { %v5602_v59 = vpop.f32.mrb[47].mxu0 }
0x1b74   :  { %v4805_v28 = vpop.f32.mrb[56].mxu1 }
0x1b75   :  { %v4875_v32 = vpop.f32.mrb[48].mxu0  ;;  %4888 = vrot.lane.b32.xlu0 %v4665_v35, %s6410_s24  ;;  %v5607_v3 = vpop.f32.mrb[57].mxu1 }
0x1b76   :  { %v5612_v52 = vpop.f32.mrb[49].mxu0 }
0x1b77   :  { %6364 = shalt.err (!%p6361_p10)
}
0x1b78   :  { %s6365_s30 = scalar_lea.hbm %s7474_s14, 32 }
0x1b79   :  { %p6366_p11 = scmp.ne.s32.totalorder %s7474_s14, %s6365_s30  ;;  %p6369_p12 = scmp.lt.u32.totalorder %s6365_s30, %s7474_s14 }
0x1b7b   :  { %p6371_p13 = pnand %p6369_p12, %p6366_p11 }
0x1b7d   :  { %6374 = shalt.err (!%p6371_p13)
}
0x1b7e   :  { %4923 = dma.vmem_to_hbm [thread:$0]  %s4921_s26, 32, %s7474_s14, [#allocation6]   ;;  %4892 = vrot.lane.b32.xlu0 %v4735_v22, %s6401_s12  ;;  %vm4378_vm4 = vcmask 64512   ;;  %vm4380_vm8 = vcmask 130048   ;;  %vm4382_vm9 = vcmask 195584   ;;  %vm4385_vm10 = vcmask 326656  }
0x1b7f   :  { %vm4387_vm11 = vcmask 392192   ;;  %vm4909_vm12 = vcmask 457728   ;;  %s7478_s10 = sld [smem:[#allocation21_spill]] }
0x1b82   :  { %4896 = vrot.lane.b32.xlu0 %v4805_v28, %s6411_s3 }
0x1b86   :  { %4900 = vrot.lane.b32.xlu0 %v4875_v32, %s6412_s2 }
0x1bb8   :  { %v4356_v26 = vpop.permute.xlu1 %4355 }
0x1bb9   :  { %v4379_v0 = vsel %vm4378_vm4, %v7414_v12, %v4356_v26 }
0x1bbc   :  { %v4360_v49 = vpop.permute.xlu1 %4359 }
0x1bbd   :  { %v4381_v29 = vsel %vm4380_vm8, %v4379_v0, %v4360_v49 }
0x1bc0   :  { %v4364_v36 = vpop.permute.xlu1 %4363 }
0x1bc1   :  { %v4383_v10 = vsel %vm4382_vm9, %v4381_v29, %v4364_v36 }
0x1bd7   :  { %v4368_v33 = vpop.permute.xlu1 %4367 }
0x1bd8   :  { %v4384_v8 = vsel %vm253_vm5, %v4383_v10, %v4368_v33 }
0x1bdb   :  { %v4372_v37 = vpop.permute.xlu1 %4371 }
0x1bdc   :  { %v4386_v5 = vsel %vm4385_vm10, %v4384_v8, %v4372_v37 }
0x1bdf   :  { %v4376_v45 = vpop.permute.xlu1 %4375  ;;  %v4881_v63 = vpop.permute.xlu0 %4880 }
0x1be0   :  { %v4388_v54 = vsel %vm4387_vm11, %v4386_v5, %v4376_v45  ;;  %v4903_v4 = vsel %vm4378_vm4, %v7418_v43, %v4881_v63 }
0x1be1   :  { %4910 = vst.msk [vmem:[%s7478_s10] sm:$0xff] %vm4909_vm12, %v4388_v54 }
0x1be3   :  { %v4885_v31 = vpop.permute.xlu0 %4884 }
0x1be4   :  { %v4904_v38 = vsel %vm4380_vm8, %v4903_v4, %v4885_v31 }
0x1be7   :  { %v4889_v51 = vpop.permute.xlu0 %4888 }
0x1be8   :  { %v4905_v48 = vsel %vm4382_vm9, %v4904_v38, %v4889_v51 }
0x1bf0   :  { %v4893_v21 = vpop.permute.xlu0 %4892 }
0x1bf1   :  { %v4906_v40 = vsel %vm253_vm5, %v4905_v48, %v4893_v21 }
0x1bf4   :  { %v4897_v13 = vpop.permute.xlu0 %4896 }
0x1bf5   :  { %v4907_v42 = vsel %vm4385_vm10, %v4906_v40, %v4897_v13 }
0x1bf8   :  { %v4901_v34 = vpop.permute.xlu0 %4900 }
0x1bf9   :  { %v4908_v20 = vsel %vm4387_vm11, %v4907_v42, %v4901_v34 }
0x1bfa   :  { %4911 = vst.msk [vmem:[%s7478_s10 + $0x8] sm:$0xff] %vm4909_vm12, %v4908_v20 }
0x1bfb   :  { %6383 = dma.done.wait [#allocation6], 32  }
0x1bfc   :  { %6384 = vsyncadd [#allocation6], 4294967264 }
0x1bfd   :  { %4933 = vsyncpa [#allocation5], 1 }
0x1bfe   :  { %4934 = vsyncpa [#allocation8], 1 }
0x1bff   :  { %4935 = vsyncpa [#allocation11], 1 }
0x1c00   :  { %4936 = vsyncpa [#allocation14], 1 }
0x1c01   :  { %4937 = vsyncpa [#allocation6], 1 }

</bundles_post_ra>
